<compile_context>
chip_gen: v7x
topology: tpu7x:2x2x1
jax: 0.10.0
libtpu: 0.0.40
codegen_flags: <defaults>
</compile_context>

<pallas_src>
import functools
import math

import numpy as np
import jax
import jax.numpy as jnp
from jax.experimental import pallas as pl
from jax.experimental.pallas import tpu as pltpu

NEG_INF = -1e30          # finite stand-in for float('-inf') in additive masks
N_HEAD = 4               # nn.TransformerDecoderLayer(nhead=4)


# ----------------------------- host-side constants -----------------------------
@functools.lru_cache(maxsize=None)
def _build_constants(frame_num, d_model, n_head, period, max_seq_len, dataset):
    """alibi+causal tgt mask (H,F,F), enc-dec mask (F,F), positional enc (F,D)."""
    def get_slopes(n):
        def pow2(n):
            start = 2 ** (-2 ** (-(math.log2(n) - 3)))
            return [start * start ** i for i in range(n)]
        if math.log2(n).is_integer():
            return pow2(n)
        c = 2 ** math.floor(math.log2(n))
        return pow2(c) + get_slopes(2 * c)[0::2][: n - c]

    slopes = np.asarray(get_slopes(n_head), dtype=np.float32)
    bias = np.repeat(np.arange(0, max_seq_len, period), period) // period
    bias = (-bias[::-1]).astype(np.float32)
    Lb = bias.shape[0]
    # only the F x F slice of the (max_seq_len x max_seq_len) alibi is needed
    alibi = np.zeros((frame_num, frame_num), np.float32)
    for i in range(frame_num):
        alibi[i, : i + 1] = bias[Lb - (i + 1):]
    alibi = slopes[:, None, None] * alibi[None]
    causal = np.where(np.tril(np.ones((frame_num, frame_num), bool)),
                      0.0, NEG_INF).astype(np.float32)
    tgt_mask = (causal[None] + alibi).astype(np.float32)          # (H, F, F)

    mem_mask = np.full((frame_num, frame_num), NEG_INF, np.float32)
    if dataset == "BIWI":
        for i in range(frame_num):
            mem_mask[i, i * 2: i * 2 + 2] = 0.0
    else:
        for i in range(frame_num):
            mem_mask[i, i] = 0.0

    pe = np.zeros((period, d_model), np.float32)
    pos = np.arange(period, dtype=np.float32)[:, None]
    div = np.exp(np.arange(0, d_model, 2, dtype=np.float32)
                 * (-math.log(10000.0) / d_model))
    pe[:, 0::2] = np.sin(pos * div)
    pe[:, 1::2] = np.cos(pos * div)
    pe = np.tile(pe, (max_seq_len // period + 1, 1))[:frame_num]
    return tgt_mask, mem_mask, pe


# ----------------------------- fused Pallas kernel -----------------------------
def _faceformer_kernel(
        frames_ref, one_hot_ref,
        aud_W_ref, aud_b_ref, afm_W_ref, afm_b_ref, obj_W_ref,
        sa_Wq_ref, sa_Wk_ref, sa_Wv_ref, sa_bq_ref, sa_bk_ref, sa_bv_ref,
        sa_Wo_ref, sa_bo_ref,
        ca_Wq_ref, ca_Wk_ref, ca_Wv_ref, ca_bq_ref, ca_bk_ref, ca_bv_ref,
        ca_Wo_ref, ca_bo_ref,
        ff1_W_ref, ff1_b_ref, ff2_W_ref, ff2_b_ref,
        ln_g_ref, ln_b_ref,
        vmr_W_ref, vmr_b_ref, vm_W_ref, vm_b_ref,
        pe_ref, tgt_mask_ref, mem_mask_ref,
        o_ref):
    f32 = jnp.float32
    F_, D = pe_ref.shape
    nb = vmr_W_ref.shape[0]
    dh = D // N_HEAD
    scale = 1.0 / math.sqrt(dh)

    def dot_t(x, w):
        # x:(M,K) , w:(N,K)  ->  x @ w^T  (no in-kernel transpose), f32 accum
        return jax.lax.dot_general(x, w, (((1,), (1,)), ((), ())),
                                   preferred_element_type=f32)

    def layernorm(x, g, b):
        mu = jnp.mean(x, axis=-1, keepdims=True)
        var = jnp.mean(jnp.square(x - mu), axis=-1, keepdims=True)
        return (x - mu) * jax.lax.rsqrt(var + 1e-5) * g + b

    # ---- audio front-end stub (bf16 MXU, f32 accumulation) ----
    # TODO(synk): pretrained frozen Wav2Vec2 feature extractor has no clean
    # Pallas equivalent; replaced by deterministic framing + linear stub.
    feats = dot_t(frames_ref[...].astype(jnp.bfloat16), aud_W_ref[...]) + aud_b_ref[...]
    hidden = dot_t(feats.astype(jnp.bfloat16), afm_W_ref[...]) + afm_b_ref[...]   # (F, D)

    # ---- style / object embedding (obj_vector has no bias) ----
    style = dot_t(one_hot_ref[...], obj_W_ref[...])                               # (1, D)

    # ---- loop-invariant cross-attention K/V, hoisted out of the frame loop ----
    kv_mem = [(dot_t(hidden, ca_Wk_ref[h]) + ca_bk_ref[h],
               dot_t(hidden, ca_Wv_ref[h]) + ca_bv_ref[h]) for h in range(N_HEAD)]

    # ---- preload weights / constants into values (hoisted out of fori_loop) ----
    pe = pe_ref[...]
    tgt_bias = [tgt_mask_ref[h] for h in range(N_HEAD)]
    mem_bias = [mem_mask_ref[...]] * N_HEAD
    sa_q = [(sa_Wq_ref[h], sa_bq_ref[h]) for h in range(N_HEAD)]
    sa_k = [(sa_Wk_ref[h], sa_bk_ref[h]) for h in range(N_HEAD)]
    sa_v = [(sa_Wv_ref[h], sa_bv_ref[h]) for h in range(N_HEAD)]
    sa_o = [sa_Wo_ref[h] for h in range(N_HEAD)]
    ca_q = [(ca_Wq_ref[h], ca_bq_ref[h]) for h in range(N_HEAD)]
    ca_o = [ca_Wo_ref[h] for h in range(N_HEAD)]
    sa_bo = sa_bo_ref[...]
    ca_bo = ca_bo_ref[...]
    ff1_W, ff1_b = ff1_W_ref[...], ff1_b_ref[...]
    ff2_W, ff2_b = ff2_W_ref[...], ff2_b_ref[...]
    lng = [ln_g_ref[k] for k in range(3)]
    lnb = [ln_b_ref[k] for k in range(3)]
    vmr_W, vmr_b = vmr_W_ref[...], vmr_b_ref[...]
    vm_W, vm_b = vm_W_ref[...], vm_b_ref[...]

    def attend(q_src, q_proj, kv_heads, o_proj, o_bias, biases):
        # per-head weights are pre-split host-side -> only leading-dim indexing
        acc = None
        for h in range(N_HEAD):
            Wq_h, bq_h = q_proj[h]
            qh = dot_t(q_src, Wq_h) + bq_h                  # (T, dh)
            kh, vh = kv_heads[h]
            s = dot_t(qh, kh) * scale + biases[h]           # (T, S)
            s = s - jnp.max(s, axis=-1, keepdims=True)
            p = jnp.exp(s)
            p = p / jnp.sum(p, axis=-1, keepdims=True)
            oh = jnp.dot(p, vh, preferred_element_type=f32)  # (T, dh)
            c = dot_t(oh, o_proj[h])                        # (T, D)  (per-head slice of W_o)
            acc = c if acc is None else acc + c
        return acc + o_bias

    row_ids_v = jax.lax.broadcasted_iota(jnp.int32, (F_, D), 0)
    row_ids_b = jax.lax.broadcasted_iota(jnp.int32, (F_, nb), 0)

    vert0 = jnp.where(row_ids_v == 0, jnp.broadcast_to(style, (F_, D)),
                      jnp.zeros((F_, D), f32))
    bs0 = jnp.zeros((F_, nb), f32)

    def body(i, carry):
        vert, _ = carry
        x = vert + pe                                        # PPE (dropout = eval identity)
        # --- self-attention + post-norm ---
        kv_self = [(dot_t(x, sa_k[h][0]) + sa_k[h][1],
                    dot_t(x, sa_v[h][0]) + sa_v[h][1]) for h in range(N_HEAD)]
        x1 = layernorm(x + attend(x, sa_q, kv_self, sa_o, sa_bo, tgt_bias),
                       lng[0], lnb[0])
        # --- cross-attention + post-norm (memory K/V hoisted) ---
        x2 = layernorm(x1 + attend(x1, ca_q, kv_mem, ca_o, ca_bo, mem_bias),
                       lng[1], lnb[1])
        # --- feed-forward + post-norm ---
        h1 = jnp.maximum(dot_t(x2, ff1_W) + ff1_b, 0.0)
        x3 = layernorm(x2 + dot_t(h1, ff2_W) + ff2_b, lng[2], lnb[2])
        # --- blendshape readout ---
        bs = dot_t(x3, vmr_W) + vmr_b                        # (F, nb)
        # --- autoregressive feedback: row i -> vertice_map -> row i+1 of vert ---
        row_i = jnp.sum(jnp.where(row_ids_b == i, bs, 0.0), axis=0, keepdims=True)
        new_emb = dot_t(row_i, vm_W) + vm_b + style          # (1, D)
        vert = jnp.where(row_ids_v == i + 1,
                         jnp.broadcast_to(new_emb, (F_, D)), vert)
        return vert, bs

    _, bs_final = jax.lax.fori_loop(0, F_, body, (vert0, bs0))
    o_ref[...] = bs_final


def _full_block_specs(arrays):
    specs = []
    for a in arrays:
        nd = a.ndim
        specs.append(pl.BlockSpec(tuple(a.shape), lambda i, _nd=nd: (0,) * _nd))
    return specs


# ----------------------------- forward wrapper -----------------------------
def faceformer_forward(params, audio, one_hot, blendshape, feature_dim,
                       period=25, max_seq_len=600, dataset="vocaset"):
    # audio:      (1, frame_num * audio_win)  raw waveform
    # one_hot:    (1, 2)
    # blendshape: (1, frame_num, n_blendshape)  -- only shape[1] is used
    B, frame_num, nb = blendshape.shape
    assert B == 1, "module docstring: batch_size = 1"
    D = feature_dim
    audio_win = audio.shape[1] // frame_num
    frames = audio.reshape(frame_num, audio_win).astype(jnp.float32)

    tgt_np, mem_np, pe_np = _build_constants(frame_num, D, N_HEAD, period,
                                             max_seq_len, dataset)

    args = (
        frames, one_hot.astype(jnp.float32),
        params["aud_W"], params["aud_b"], params["afm_W"], params["afm_b"],
        params["obj_W"],
        params["sa_Wq"], params["sa_Wk"], params["sa_Wv"],
        params["sa_bq"], params["sa_bk"], params["sa_bv"],
        params["sa_Wo"], params["sa_bo"],
        params["ca_Wq"], params["ca_Wk"], params["ca_Wv"],
        params["ca_bq"], params["ca_bk"], params["ca_bv"],
        params["ca_Wo"], params["ca_bo"],
        params["ff1_W"], params["ff1_b"], params["ff2_W"], params["ff2_b"],
        params["ln_g"], params["ln_b"],
        params["vmr_W"], params["vmr_b"], params["vm_W"], params["vm_b"],
        jnp.asarray(pe_np), jnp.asarray(tgt_np), jnp.asarray(mem_np),
    )

    out = pl.pallas_call(
        _faceformer_kernel,
        out_shape=jax.ShapeDtypeStruct((frame_num, nb), jnp.float32),
        grid=(1,),
        in_specs=_full_block_specs(args),
        out_specs=pl.BlockSpec((frame_num, nb), lambda i: (0, 0)),
        compiler_params=pltpu.CompilerParams(
            dimension_semantics=("arbitrary",)),
    )(*args)
    return out[None]                                          # (1, F, n_blendshape)


# ----------------------------- parameters -----------------------------
def init_params(key, feature_dim, blendshape_dim, wav2vec_dim, audio_win):
    D = feature_dim
    dh = D // N_HEAD
    keys = iter(jax.random.split(key, 32))

    def w(shape, scale=0.02):
        return (scale * jax.random.normal(next(keys), shape)).astype(jnp.float32)

    def split_out(W):     # (D_out, D_in) rows grouped by head -> (H, dh, D_in)
        return W.reshape(N_HEAD, dh, W.shape[1])

    def split_in(W):      # (D_out, D_in) cols grouped by head -> (H, D_out, dh)
        return W.reshape(W.shape[0], N_HEAD, dh).transpose(1, 0, 2)

    def mha_params():
        return dict(
            Wq=split_out(w((D, D))), bq=jnp.zeros((N_HEAD, 1, dh), jnp.float32),
            Wk=split_out(w((D, D))), bk=jnp.zeros((N_HEAD, 1, dh), jnp.float32),
            Wv=split_out(w((D, D))), bv=jnp.zeros((N_HEAD, 1, dh), jnp.float32),
            Wo=split_in(w((D, D))), bo=jnp.zeros((1, D), jnp.float32))

    sa, ca = mha_params(), mha_params()
    return dict(
        # TODO(synk): pretrained frozen Wav2Vec2 audio encoder stub (framing + linear).
        aud_W=w((wav2vec_dim, audio_win)).astype(jnp.bfloat16),
        aud_b=jnp.zeros((1, wav2vec_dim), jnp.float32),
        afm_W=w((D, wav2vec_dim)).astype(jnp.bfloat16),           # audio_feature_map
        afm_b=jnp.zeros((1, D), jnp.float32),
        obj_W=w((D, 2)),                                          # obj_vector (no bias)
        sa_Wq=sa["Wq"], sa_Wk=sa["Wk"], sa_Wv=sa["Wv"],
        sa_bq=sa["bq"], sa_bk=sa["bk"], sa_bv=sa["bv"],
        sa_Wo=sa["Wo"], sa_bo=sa["bo"],
        ca_Wq=ca["Wq"], ca_Wk=ca["Wk"], ca_Wv=ca["Wv"],
        ca_bq=ca["bq"], ca_bk=ca["bk"], ca_bv=ca["bv"],
        ca_Wo=ca["Wo"], ca_bo=ca["bo"],
        ff1_W=w((2 * D, D)), ff1_b=jnp.zeros((1, 2 * D), jnp.float32),
        ff2_W=w((D, 2 * D)), ff2_b=jnp.zeros((1, D), jnp.float32),
        ln_g=jnp.ones((3, 1, D), jnp.float32), ln_b=jnp.zeros((3, 1, D), jnp.float32),
        vmr_W=jnp.zeros((blendshape_dim, D), jnp.float32),        # nn.init.constant_(., 0)
        vmr_b=jnp.zeros((1, blendshape_dim), jnp.float32),
        vm_W=w((D, blendshape_dim)), vm_b=jnp.zeros((1, D), jnp.float32),
    )


# ----------------------------- main -----------------------------
if __name__ == "__main__":
    feature_dim = 32
    blendshape_dim = 16
    frame_num = 8
    audio_win = 64
    wav2vec_dim = 768
    period = 25

    key = jax.random.PRNGKey(0)
    k_audio, k_bs, k_param, k_vmr = jax.random.split(key, 4)
    audio = jax.random.normal(k_audio, (1, frame_num * audio_win), jnp.float32)
    blendshape = jax.random.normal(k_bs, (1, frame_num, blendshape_dim), jnp.float32)
    one_hot = jnp.zeros((1, 2), jnp.float32).at[0, 0].set(1.0)

    params = init_params(k_param, feature_dim, blendshape_dim, wav2vec_dim, audio_win)
    # The module zero-inits vertice_map_r; perturb it here so the smoke test
    # exercises the autoregressive feedback path with non-trivial values.
    params["vmr_W"] = 0.02 * jax.random.normal(k_vmr, params["vmr_W"].shape, jnp.float32)

    fwd = jax.jit(functools.partial(faceformer_forward,
                                    feature_dim=feature_dim, period=period))
    out = fwd(params, audio, one_hot, blendshape)
    out = jax.block_until_ready(out)
    assert out.shape == (1, frame_num, blendshape_dim)
    assert bool(jnp.all(jnp.isfinite(out)))
    print("KERNEL_OK")
</pallas_src>

<mosaic_0001>
module attributes {stable_mosaic.version = 11 : i64} {
  func.func @_faceformer_kernel(%arg0: i32, %arg1: memref<8x64xf32, #tpu.memory_space<vmem>>, %arg2: memref<1x2xf32, #tpu.memory_space<vmem>>, %arg3: memref<768x64xbf16, #tpu.memory_space<vmem>>, %arg4: memref<1x768xf32, #tpu.memory_space<vmem>>, %arg5: memref<32x768xbf16, #tpu.memory_space<vmem>>, %arg6: memref<1x32xf32, #tpu.memory_space<vmem>>, %arg7: memref<32x2xf32, #tpu.memory_space<vmem>>, %arg8: memref<4x8x32xf32, #tpu.memory_space<vmem>>, %arg9: memref<4x8x32xf32, #tpu.memory_space<vmem>>, %arg10: memref<4x8x32xf32, #tpu.memory_space<vmem>>, %arg11: memref<4x1x8xf32, #tpu.memory_space<vmem>>, %arg12: memref<4x1x8xf32, #tpu.memory_space<vmem>>, %arg13: memref<4x1x8xf32, #tpu.memory_space<vmem>>, %arg14: memref<4x32x8xf32, #tpu.memory_space<vmem>>, %arg15: memref<1x32xf32, #tpu.memory_space<vmem>>, %arg16: memref<4x8x32xf32, #tpu.memory_space<vmem>>, %arg17: memref<4x8x32xf32, #tpu.memory_space<vmem>>, %arg18: memref<4x8x32xf32, #tpu.memory_space<vmem>>, %arg19: memref<4x1x8xf32, #tpu.memory_space<vmem>>, %arg20: memref<4x1x8xf32, #tpu.memory_space<vmem>>, %arg21: memref<4x1x8xf32, #tpu.memory_space<vmem>>, %arg22: memref<4x32x8xf32, #tpu.memory_space<vmem>>, %arg23: memref<1x32xf32, #tpu.memory_space<vmem>>, %arg24: memref<64x32xf32, #tpu.memory_space<vmem>>, %arg25: memref<1x64xf32, #tpu.memory_space<vmem>>, %arg26: memref<32x64xf32, #tpu.memory_space<vmem>>, %arg27: memref<1x32xf32, #tpu.memory_space<vmem>>, %arg28: memref<3x1x32xf32, #tpu.memory_space<vmem>>, %arg29: memref<3x1x32xf32, #tpu.memory_space<vmem>>, %arg30: memref<16x32xf32, #tpu.memory_space<vmem>>, %arg31: memref<1x16xf32, #tpu.memory_space<vmem>>, %arg32: memref<32x16xf32, #tpu.memory_space<vmem>>, %arg33: memref<1x32xf32, #tpu.memory_space<vmem>>, %arg34: memref<8x32xf32, #tpu.memory_space<vmem>>, %arg35: memref<4x8x8xf32, #tpu.memory_space<vmem>>, %arg36: memref<8x8xf32, #tpu.memory_space<vmem>>, %arg37: memref<8x16xf32, #tpu.memory_space<vmem>>) attributes {dimension_semantics = [#tpu.dimension_semantics<arbitrary>], iteration_bounds = array<i64: 1>, scalar_prefetch = 0 : i64, scratch_operands = 0 : i64, tpu.core_type = #tpu.core_type<tc>, window_params = [{pipeline_mode = #tpu.pipeline_mode<synchronous>, transform_indices = @transform_0, window_bounds = array<i64: 8, 64>}, {pipeline_mode = #tpu.pipeline_mode<synchronous>, transform_indices = @transform_1, window_bounds = array<i64: 1, 2>}, {pipeline_mode = #tpu.pipeline_mode<synchronous>, transform_indices = @transform_2, window_bounds = array<i64: 768, 64>}, {pipeline_mode = #tpu.pipeline_mode<synchronous>, transform_indices = @transform_3, window_bounds = array<i64: 1, 768>}, {pipeline_mode = #tpu.pipeline_mode<synchronous>, transform_indices = @transform_4, window_bounds = array<i64: 32, 768>}, {pipeline_mode = #tpu.pipeline_mode<synchronous>, transform_indices = @transform_5, window_bounds = array<i64: 1, 32>}, {pipeline_mode = #tpu.pipeline_mode<synchronous>, transform_indices = @transform_6, window_bounds = array<i64: 32, 2>}, {pipeline_mode = #tpu.pipeline_mode<synchronous>, transform_indices = @transform_7, window_bounds = array<i64: 4, 8, 32>}, {pipeline_mode = #tpu.pipeline_mode<synchronous>, transform_indices = @transform_8, window_bounds = array<i64: 4, 8, 32>}, {pipeline_mode = #tpu.pipeline_mode<synchronous>, transform_indices = @transform_9, window_bounds = array<i64: 4, 8, 32>}, {pipeline_mode = #tpu.pipeline_mode<synchronous>, transform_indices = @transform_10, window_bounds = array<i64: 4, 1, 8>}, {pipeline_mode = #tpu.pipeline_mode<synchronous>, transform_indices = @transform_11, window_bounds = array<i64: 4, 1, 8>}, {pipeline_mode = #tpu.pipeline_mode<synchronous>, transform_indices = @transform_12, window_bounds = array<i64: 4, 1, 8>}, {pipeline_mode = #tpu.pipeline_mode<synchronous>, transform_indices = @transform_13, window_bounds = array<i64: 4, 32, 8>}, {pipeline_mode = #tpu.pipeline_mode<synchronous>, transform_indices = @transform_14, window_bounds = array<i64: 1, 32>}, {pipeline_mode = #tpu.pipeline_mode<synchronous>, transform_indices = @transform_15, window_bounds = array<i64: 4, 8, 32>}, {pipeline_mode = #tpu.pipeline_mode<synchronous>, transform_indices = @transform_16, window_bounds = array<i64: 4, 8, 32>}, {pipeline_mode = #tpu.pipeline_mode<synchronous>, transform_indices = @transform_17, window_bounds = array<i64: 4, 8, 32>}, {pipeline_mode = #tpu.pipeline_mode<synchronous>, transform_indices = @transform_18, window_bounds = array<i64: 4, 1, 8>}, {pipeline_mode = #tpu.pipeline_mode<synchronous>, transform_indices = @transform_19, window_bounds = array<i64: 4, 1, 8>}, {pipeline_mode = #tpu.pipeline_mode<synchronous>, transform_indices = @transform_20, window_bounds = array<i64: 4, 1, 8>}, {pipeline_mode = #tpu.pipeline_mode<synchronous>, transform_indices = @transform_21, window_bounds = array<i64: 4, 32, 8>}, {pipeline_mode = #tpu.pipeline_mode<synchronous>, transform_indices = @transform_22, window_bounds = array<i64: 1, 32>}, {pipeline_mode = #tpu.pipeline_mode<synchronous>, transform_indices = @transform_23, window_bounds = array<i64: 64, 32>}, {pipeline_mode = #tpu.pipeline_mode<synchronous>, transform_indices = @transform_24, window_bounds = array<i64: 1, 64>}, {pipeline_mode = #tpu.pipeline_mode<synchronous>, transform_indices = @transform_25, window_bounds = array<i64: 32, 64>}, {pipeline_mode = #tpu.pipeline_mode<synchronous>, transform_indices = @transform_26, window_bounds = array<i64: 1, 32>}, {pipeline_mode = #tpu.pipeline_mode<synchronous>, transform_indices = @transform_27, window_bounds = array<i64: 3, 1, 32>}, {pipeline_mode = #tpu.pipeline_mode<synchronous>, transform_indices = @transform_28, window_bounds = array<i64: 3, 1, 32>}, {pipeline_mode = #tpu.pipeline_mode<synchronous>, transform_indices = @transform_29, window_bounds = array<i64: 16, 32>}, {pipeline_mode = #tpu.pipeline_mode<synchronous>, transform_indices = @transform_30, window_bounds = array<i64: 1, 16>}, {pipeline_mode = #tpu.pipeline_mode<synchronous>, transform_indices = @transform_31, window_bounds = array<i64: 32, 16>}, {pipeline_mode = #tpu.pipeline_mode<synchronous>, transform_indices = @transform_32, window_bounds = array<i64: 1, 32>}, {pipeline_mode = #tpu.pipeline_mode<synchronous>, transform_indices = @transform_33, window_bounds = array<i64: 8, 32>}, {pipeline_mode = #tpu.pipeline_mode<synchronous>, transform_indices = @transform_34, window_bounds = array<i64: 4, 8, 8>}, {pipeline_mode = #tpu.pipeline_mode<synchronous>, transform_indices = @transform_35, window_bounds = array<i64: 8, 8>}, {pipeline_mode = #tpu.pipeline_mode<synchronous>, transform_indices = @transform_36, window_bounds = array<i64: 8, 16>}]} {
    %c0 = arith.constant 0 : index
    %c0_0 = arith.constant 0 : index
    %0 = vector.load %arg1[%c0, %c0_0] : memref<8x64xf32, #tpu.memory_space<vmem>>, vector<8x64xf32>
    %1 = arith.truncf %0 : vector<8x64xf32> to vector<8x64xbf16>
    %c0_1 = arith.constant 0 : index
    %c0_2 = arith.constant 0 : index
    %2 = vector.load %arg3[%c0_1, %c0_2] : memref<768x64xbf16, #tpu.memory_space<vmem>>, vector<768x64xbf16>
    %cst = arith.constant dense<0.000000e+00> : vector<8x768xf32>
    %3 = tpu.matmul %1, %2, %cst {dimension_numbers = #tpu.dot_dimension_numbers<[1], [1], [0], [0], [0, 0, 1, 0], [], []>} : vector<8x64xbf16>, vector<768x64xbf16>, vector<8x768xf32> -> vector<8x768xf32>
    %c0_3 = arith.constant 0 : index
    %c0_4 = arith.constant 0 : index
    %4 = vector.load %arg4[%c0_3, %c0_4] : memref<1x768xf32, #tpu.memory_space<vmem>>, vector<1x768xf32>
    %5 = vector.broadcast %4 : vector<1x768xf32> to vector<8x768xf32>
    %6 = arith.addf %3, %5 : vector<8x768xf32>
    %7 = arith.truncf %6 : vector<8x768xf32> to vector<8x768xbf16>
    %c0_5 = arith.constant 0 : index
    %c0_6 = arith.constant 0 : index
    %8 = vector.load %arg5[%c0_5, %c0_6] : memref<32x768xbf16, #tpu.memory_space<vmem>>, vector<32x768xbf16>
    %cst_7 = arith.constant dense<0.000000e+00> : vector<8x32xf32>
    %9 = tpu.matmul %7, %8, %cst_7 {dimension_numbers = #tpu.dot_dimension_numbers<[1], [1], [0], [0], [0, 0, 1, 0], [], []>} : vector<8x768xbf16>, vector<32x768xbf16>, vector<8x32xf32> -> vector<8x32xf32>
    %c0_8 = arith.constant 0 : index
    %c0_9 = arith.constant 0 : index
    %10 = vector.load %arg6[%c0_8, %c0_9] : memref<1x32xf32, #tpu.memory_space<vmem>>, vector<1x32xf32>
    %11 = vector.broadcast %10 : vector<1x32xf32> to vector<8x32xf32>
    %12 = arith.addf %9, %11 : vector<8x32xf32>
    %c0_10 = arith.constant 0 : index
    %c0_11 = arith.constant 0 : index
    %13 = vector.load %arg2[%c0_10, %c0_11] : memref<1x2xf32, #tpu.memory_space<vmem>>, vector<1x2xf32>
    %c0_12 = arith.constant 0 : index
    %c0_13 = arith.constant 0 : index
    %14 = vector.load %arg7[%c0_12, %c0_13] : memref<32x2xf32, #tpu.memory_space<vmem>>, vector<32x2xf32>
    %cst_14 = arith.constant dense<0.000000e+00> : vector<1x32xf32>
    %15 = tpu.matmul %13, %14, %cst_14 {dimension_numbers = #tpu.dot_dimension_numbers<[1], [1], [0], [0], [0, 0, 1, 0], [], []>} : vector<1x2xf32>, vector<32x2xf32>, vector<1x32xf32> -> vector<1x32xf32>
    %c0_15 = arith.constant 0 : index
    %c0_16 = arith.constant 0 : index
    %c0_17 = arith.constant 0 : index
    %16 = vector.load %arg17[%c0_15, %c0_16, %c0_17] : memref<4x8x32xf32, #tpu.memory_space<vmem>>, vector<1x8x32xf32>
    %17 = vector.shape_cast %16 : vector<1x8x32xf32> to vector<8x32xf32>
    %cst_18 = arith.constant dense<0.000000e+00> : vector<8x8xf32>
    %18 = tpu.matmul %12, %17, %cst_18 {dimension_numbers = #tpu.dot_dimension_numbers<[1], [1], [0], [0], [0, 0, 1, 0], [], []>} : vector<8x32xf32>, vector<8x32xf32>, vector<8x8xf32> -> vector<8x8xf32>
    %c0_19 = arith.constant 0 : index
    %c0_20 = arith.constant 0 : index
    %c0_21 = arith.constant 0 : index
    %19 = vector.load %arg20[%c0_19, %c0_20, %c0_21] : memref<4x1x8xf32, #tpu.memory_space<vmem>>, vector<1x1x8xf32>
    %20 = vector.shape_cast %19 : vector<1x1x8xf32> to vector<1x8xf32>
    %21 = vector.broadcast %20 : vector<1x8xf32> to vector<8x8xf32>
    %22 = arith.addf %18, %21 : vector<8x8xf32>
    %c0_22 = arith.constant 0 : index
    %c0_23 = arith.constant 0 : index
    %c0_24 = arith.constant 0 : index
    %23 = vector.load %arg18[%c0_22, %c0_23, %c0_24] : memref<4x8x32xf32, #tpu.memory_space<vmem>>, vector<1x8x32xf32>
    %24 = vector.shape_cast %23 : vector<1x8x32xf32> to vector<8x32xf32>
    %cst_25 = arith.constant dense<0.000000e+00> : vector<8x8xf32>
    %25 = tpu.matmul %12, %24, %cst_25 {dimension_numbers = #tpu.dot_dimension_numbers<[1], [1], [0], [0], [0, 0, 1, 0], [], []>} : vector<8x32xf32>, vector<8x32xf32>, vector<8x8xf32> -> vector<8x8xf32>
    %c0_26 = arith.constant 0 : index
    %c0_27 = arith.constant 0 : index
    %c0_28 = arith.constant 0 : index
    %26 = vector.load %arg21[%c0_26, %c0_27, %c0_28] : memref<4x1x8xf32, #tpu.memory_space<vmem>>, vector<1x1x8xf32>
    %27 = vector.shape_cast %26 : vector<1x1x8xf32> to vector<1x8xf32>
    %28 = vector.broadcast %27 : vector<1x8xf32> to vector<8x8xf32>
    %29 = arith.addf %25, %28 : vector<8x8xf32>
    %c1 = arith.constant 1 : index
    %c0_29 = arith.constant 0 : index
    %c0_30 = arith.constant 0 : index
    %30 = vector.load %arg17[%c1, %c0_29, %c0_30] : memref<4x8x32xf32, #tpu.memory_space<vmem>>, vector<1x8x32xf32>
    %31 = vector.shape_cast %30 : vector<1x8x32xf32> to vector<8x32xf32>
    %cst_31 = arith.constant dense<0.000000e+00> : vector<8x8xf32>
    %32 = tpu.matmul %12, %31, %cst_31 {dimension_numbers = #tpu.dot_dimension_numbers<[1], [1], [0], [0], [0, 0, 1, 0], [], []>} : vector<8x32xf32>, vector<8x32xf32>, vector<8x8xf32> -> vector<8x8xf32>
    %c1_32 = arith.constant 1 : index
    %c0_33 = arith.constant 0 : index
    %c0_34 = arith.constant 0 : index
    %33 = vector.load %arg20[%c1_32, %c0_33, %c0_34] : memref<4x1x8xf32, #tpu.memory_space<vmem>>, vector<1x1x8xf32>
    %34 = vector.shape_cast %33 : vector<1x1x8xf32> to vector<1x8xf32>
    %35 = vector.broadcast %34 : vector<1x8xf32> to vector<8x8xf32>
    %36 = arith.addf %32, %35 : vector<8x8xf32>
    %c1_35 = arith.constant 1 : index
    %c0_36 = arith.constant 0 : index
    %c0_37 = arith.constant 0 : index
    %37 = vector.load %arg18[%c1_35, %c0_36, %c0_37] : memref<4x8x32xf32, #tpu.memory_space<vmem>>, vector<1x8x32xf32>
    %38 = vector.shape_cast %37 : vector<1x8x32xf32> to vector<8x32xf32>
    %cst_38 = arith.constant dense<0.000000e+00> : vector<8x8xf32>
    %39 = tpu.matmul %12, %38, %cst_38 {dimension_numbers = #tpu.dot_dimension_numbers<[1], [1], [0], [0], [0, 0, 1, 0], [], []>} : vector<8x32xf32>, vector<8x32xf32>, vector<8x8xf32> -> vector<8x8xf32>
    %c1_39 = arith.constant 1 : index
    %c0_40 = arith.constant 0 : index
    %c0_41 = arith.constant 0 : index
    %40 = vector.load %arg21[%c1_39, %c0_40, %c0_41] : memref<4x1x8xf32, #tpu.memory_space<vmem>>, vector<1x1x8xf32>
    %41 = vector.shape_cast %40 : vector<1x1x8xf32> to vector<1x8xf32>
    %42 = vector.broadcast %41 : vector<1x8xf32> to vector<8x8xf32>
    %43 = arith.addf %39, %42 : vector<8x8xf32>
    %c2 = arith.constant 2 : index
    %c0_42 = arith.constant 0 : index
    %c0_43 = arith.constant 0 : index
    %44 = vector.load %arg17[%c2, %c0_42, %c0_43] : memref<4x8x32xf32, #tpu.memory_space<vmem>>, vector<1x8x32xf32>
    %45 = vector.shape_cast %44 : vector<1x8x32xf32> to vector<8x32xf32>
    %cst_44 = arith.constant dense<0.000000e+00> : vector<8x8xf32>
    %46 = tpu.matmul %12, %45, %cst_44 {dimension_numbers = #tpu.dot_dimension_numbers<[1], [1], [0], [0], [0, 0, 1, 0], [], []>} : vector<8x32xf32>, vector<8x32xf32>, vector<8x8xf32> -> vector<8x8xf32>
    %c2_45 = arith.constant 2 : index
    %c0_46 = arith.constant 0 : index
    %c0_47 = arith.constant 0 : index
    %47 = vector.load %arg20[%c2_45, %c0_46, %c0_47] : memref<4x1x8xf32, #tpu.memory_space<vmem>>, vector<1x1x8xf32>
    %48 = vector.shape_cast %47 : vector<1x1x8xf32> to vector<1x8xf32>
    %49 = vector.broadcast %48 : vector<1x8xf32> to vector<8x8xf32>
    %50 = arith.addf %46, %49 : vector<8x8xf32>
    %c2_48 = arith.constant 2 : index
    %c0_49 = arith.constant 0 : index
    %c0_50 = arith.constant 0 : index
    %51 = vector.load %arg18[%c2_48, %c0_49, %c0_50] : memref<4x8x32xf32, #tpu.memory_space<vmem>>, vector<1x8x32xf32>
    %52 = vector.shape_cast %51 : vector<1x8x32xf32> to vector<8x32xf32>
    %cst_51 = arith.constant dense<0.000000e+00> : vector<8x8xf32>
    %53 = tpu.matmul %12, %52, %cst_51 {dimension_numbers = #tpu.dot_dimension_numbers<[1], [1], [0], [0], [0, 0, 1, 0], [], []>} : vector<8x32xf32>, vector<8x32xf32>, vector<8x8xf32> -> vector<8x8xf32>
    %c2_52 = arith.constant 2 : index
    %c0_53 = arith.constant 0 : index
    %c0_54 = arith.constant 0 : index
    %54 = vector.load %arg21[%c2_52, %c0_53, %c0_54] : memref<4x1x8xf32, #tpu.memory_space<vmem>>, vector<1x1x8xf32>
    %55 = vector.shape_cast %54 : vector<1x1x8xf32> to vector<1x8xf32>
    %56 = vector.broadcast %55 : vector<1x8xf32> to vector<8x8xf32>
    %57 = arith.addf %53, %56 : vector<8x8xf32>
    %c3 = arith.constant 3 : index
    %c0_55 = arith.constant 0 : index
    %c0_56 = arith.constant 0 : index
    %58 = vector.load %arg17[%c3, %c0_55, %c0_56] : memref<4x8x32xf32, #tpu.memory_space<vmem>>, vector<1x8x32xf32>
    %59 = vector.shape_cast %58 : vector<1x8x32xf32> to vector<8x32xf32>
    %cst_57 = arith.constant dense<0.000000e+00> : vector<8x8xf32>
    %60 = tpu.matmul %12, %59, %cst_57 {dimension_numbers = #tpu.dot_dimension_numbers<[1], [1], [0], [0], [0, 0, 1, 0], [], []>} : vector<8x32xf32>, vector<8x32xf32>, vector<8x8xf32> -> vector<8x8xf32>
    %c3_58 = arith.constant 3 : index
    %c0_59 = arith.constant 0 : index
    %c0_60 = arith.constant 0 : index
    %61 = vector.load %arg20[%c3_58, %c0_59, %c0_60] : memref<4x1x8xf32, #tpu.memory_space<vmem>>, vector<1x1x8xf32>
    %62 = vector.shape_cast %61 : vector<1x1x8xf32> to vector<1x8xf32>
    %63 = vector.broadcast %62 : vector<1x8xf32> to vector<8x8xf32>
    %64 = arith.addf %60, %63 : vector<8x8xf32>
    %c3_61 = arith.constant 3 : index
    %c0_62 = arith.constant 0 : index
    %c0_63 = arith.constant 0 : index
    %65 = vector.load %arg18[%c3_61, %c0_62, %c0_63] : memref<4x8x32xf32, #tpu.memory_space<vmem>>, vector<1x8x32xf32>
    %66 = vector.shape_cast %65 : vector<1x8x32xf32> to vector<8x32xf32>
    %cst_64 = arith.constant dense<0.000000e+00> : vector<8x8xf32>
    %67 = tpu.matmul %12, %66, %cst_64 {dimension_numbers = #tpu.dot_dimension_numbers<[1], [1], [0], [0], [0, 0, 1, 0], [], []>} : vector<8x32xf32>, vector<8x32xf32>, vector<8x8xf32> -> vector<8x8xf32>
    %c3_65 = arith.constant 3 : index
    %c0_66 = arith.constant 0 : index
    %c0_67 = arith.constant 0 : index
    %68 = vector.load %arg21[%c3_65, %c0_66, %c0_67] : memref<4x1x8xf32, #tpu.memory_space<vmem>>, vector<1x1x8xf32>
    %69 = vector.shape_cast %68 : vector<1x1x8xf32> to vector<1x8xf32>
    %70 = vector.broadcast %69 : vector<1x8xf32> to vector<8x8xf32>
    %71 = arith.addf %67, %70 : vector<8x8xf32>
    %c0_68 = arith.constant 0 : index
    %c0_69 = arith.constant 0 : index
    %72 = vector.load %arg34[%c0_68, %c0_69] : memref<8x32xf32, #tpu.memory_space<vmem>>, vector<8x32xf32>
    %c0_70 = arith.constant 0 : index
    %c0_71 = arith.constant 0 : index
    %c0_72 = arith.constant 0 : index
    %73 = vector.load %arg35[%c0_70, %c0_71, %c0_72] : memref<4x8x8xf32, #tpu.memory_space<vmem>>, vector<1x8x8xf32>
    %74 = vector.shape_cast %73 : vector<1x8x8xf32> to vector<8x8xf32>
    %c1_73 = arith.constant 1 : index
    %c0_74 = arith.constant 0 : index
    %c0_75 = arith.constant 0 : index
    %75 = vector.load %arg35[%c1_73, %c0_74, %c0_75] : memref<4x8x8xf32, #tpu.memory_space<vmem>>, vector<1x8x8xf32>
    %76 = vector.shape_cast %75 : vector<1x8x8xf32> to vector<8x8xf32>
    %c2_76 = arith.constant 2 : index
    %c0_77 = arith.constant 0 : index
    %c0_78 = arith.constant 0 : index
    %77 = vector.load %arg35[%c2_76, %c0_77, %c0_78] : memref<4x8x8xf32, #tpu.memory_space<vmem>>, vector<1x8x8xf32>
    %78 = vector.shape_cast %77 : vector<1x8x8xf32> to vector<8x8xf32>
    %c3_79 = arith.constant 3 : index
    %c0_80 = arith.constant 0 : index
    %c0_81 = arith.constant 0 : index
    %79 = vector.load %arg35[%c3_79, %c0_80, %c0_81] : memref<4x8x8xf32, #tpu.memory_space<vmem>>, vector<1x8x8xf32>
    %80 = vector.shape_cast %79 : vector<1x8x8xf32> to vector<8x8xf32>
    %c0_82 = arith.constant 0 : index
    %c0_83 = arith.constant 0 : index
    %81 = vector.load %arg36[%c0_82, %c0_83] : memref<8x8xf32, #tpu.memory_space<vmem>>, vector<8x8xf32>
    %c0_84 = arith.constant 0 : index
    %c0_85 = arith.constant 0 : index
    %c0_86 = arith.constant 0 : index
    %82 = vector.load %arg8[%c0_84, %c0_85, %c0_86] : memref<4x8x32xf32, #tpu.memory_space<vmem>>, vector<1x8x32xf32>
    %83 = vector.shape_cast %82 : vector<1x8x32xf32> to vector<8x32xf32>
    %c0_87 = arith.constant 0 : index
    %c0_88 = arith.constant 0 : index
    %c0_89 = arith.constant 0 : index
    %84 = vector.load %arg11[%c0_87, %c0_88, %c0_89] : memref<4x1x8xf32, #tpu.memory_space<vmem>>, vector<1x1x8xf32>
    %85 = vector.shape_cast %84 : vector<1x1x8xf32> to vector<1x8xf32>
    %c1_90 = arith.constant 1 : index
    %c0_91 = arith.constant 0 : index
    %c0_92 = arith.constant 0 : index
    %86 = vector.load %arg8[%c1_90, %c0_91, %c0_92] : memref<4x8x32xf32, #tpu.memory_space<vmem>>, vector<1x8x32xf32>
    %87 = vector.shape_cast %86 : vector<1x8x32xf32> to vector<8x32xf32>
    %c1_93 = arith.constant 1 : index
    %c0_94 = arith.constant 0 : index
    %c0_95 = arith.constant 0 : index
    %88 = vector.load %arg11[%c1_93, %c0_94, %c0_95] : memref<4x1x8xf32, #tpu.memory_space<vmem>>, vector<1x1x8xf32>
    %89 = vector.shape_cast %88 : vector<1x1x8xf32> to vector<1x8xf32>
    %c2_96 = arith.constant 2 : index
    %c0_97 = arith.constant 0 : index
    %c0_98 = arith.constant 0 : index
    %90 = vector.load %arg8[%c2_96, %c0_97, %c0_98] : memref<4x8x32xf32, #tpu.memory_space<vmem>>, vector<1x8x32xf32>
    %91 = vector.shape_cast %90 : vector<1x8x32xf32> to vector<8x32xf32>
    %c2_99 = arith.constant 2 : index
    %c0_100 = arith.constant 0 : index
    %c0_101 = arith.constant 0 : index
    %92 = vector.load %arg11[%c2_99, %c0_100, %c0_101] : memref<4x1x8xf32, #tpu.memory_space<vmem>>, vector<1x1x8xf32>
    %93 = vector.shape_cast %92 : vector<1x1x8xf32> to vector<1x8xf32>
    %c3_102 = arith.constant 3 : index
    %c0_103 = arith.constant 0 : index
    %c0_104 = arith.constant 0 : index
    %94 = vector.load %arg8[%c3_102, %c0_103, %c0_104] : memref<4x8x32xf32, #tpu.memory_space<vmem>>, vector<1x8x32xf32>
    %95 = vector.shape_cast %94 : vector<1x8x32xf32> to vector<8x32xf32>
    %c3_105 = arith.constant 3 : index
    %c0_106 = arith.constant 0 : index
    %c0_107 = arith.constant 0 : index
    %96 = vector.load %arg11[%c3_105, %c0_106, %c0_107] : memref<4x1x8xf32, #tpu.memory_space<vmem>>, vector<1x1x8xf32>
    %97 = vector.shape_cast %96 : vector<1x1x8xf32> to vector<1x8xf32>
    %c0_108 = arith.constant 0 : index
    %c0_109 = arith.constant 0 : index
    %c0_110 = arith.constant 0 : index
    %98 = vector.load %arg9[%c0_108, %c0_109, %c0_110] : memref<4x8x32xf32, #tpu.memory_space<vmem>>, vector<1x8x32xf32>
    %99 = vector.shape_cast %98 : vector<1x8x32xf32> to vector<8x32xf32>
    %c0_111 = arith.constant 0 : index
    %c0_112 = arith.constant 0 : index
    %c0_113 = arith.constant 0 : index
    %100 = vector.load %arg12[%c0_111, %c0_112, %c0_113] : memref<4x1x8xf32, #tpu.memory_space<vmem>>, vector<1x1x8xf32>
    %101 = vector.shape_cast %100 : vector<1x1x8xf32> to vector<1x8xf32>
    %c1_114 = arith.constant 1 : index
    %c0_115 = arith.constant 0 : index
    %c0_116 = arith.constant 0 : index
    %102 = vector.load %arg9[%c1_114, %c0_115, %c0_116] : memref<4x8x32xf32, #tpu.memory_space<vmem>>, vector<1x8x32xf32>
    %103 = vector.shape_cast %102 : vector<1x8x32xf32> to vector<8x32xf32>
    %c1_117 = arith.constant 1 : index
    %c0_118 = arith.constant 0 : index
    %c0_119 = arith.constant 0 : index
    %104 = vector.load %arg12[%c1_117, %c0_118, %c0_119] : memref<4x1x8xf32, #tpu.memory_space<vmem>>, vector<1x1x8xf32>
    %105 = vector.shape_cast %104 : vector<1x1x8xf32> to vector<1x8xf32>
    %c2_120 = arith.constant 2 : index
    %c0_121 = arith.constant 0 : index
    %c0_122 = arith.constant 0 : index
    %106 = vector.load %arg9[%c2_120, %c0_121, %c0_122] : memref<4x8x32xf32, #tpu.memory_space<vmem>>, vector<1x8x32xf32>
    %107 = vector.shape_cast %106 : vector<1x8x32xf32> to vector<8x32xf32>
    %c2_123 = arith.constant 2 : index
    %c0_124 = arith.constant 0 : index
    %c0_125 = arith.constant 0 : index
    %108 = vector.load %arg12[%c2_123, %c0_124, %c0_125] : memref<4x1x8xf32, #tpu.memory_space<vmem>>, vector<1x1x8xf32>
    %109 = vector.shape_cast %108 : vector<1x1x8xf32> to vector<1x8xf32>
    %c3_126 = arith.constant 3 : index
    %c0_127 = arith.constant 0 : index
    %c0_128 = arith.constant 0 : index
    %110 = vector.load %arg9[%c3_126, %c0_127, %c0_128] : memref<4x8x32xf32, #tpu.memory_space<vmem>>, vector<1x8x32xf32>
    %111 = vector.shape_cast %110 : vector<1x8x32xf32> to vector<8x32xf32>
    %c3_129 = arith.constant 3 : index
    %c0_130 = arith.constant 0 : index
    %c0_131 = arith.constant 0 : index
    %112 = vector.load %arg12[%c3_129, %c0_130, %c0_131] : memref<4x1x8xf32, #tpu.memory_space<vmem>>, vector<1x1x8xf32>
    %113 = vector.shape_cast %112 : vector<1x1x8xf32> to vector<1x8xf32>
    %c0_132 = arith.constant 0 : index
    %c0_133 = arith.constant 0 : index
    %c0_134 = arith.constant 0 : index
    %114 = vector.load %arg10[%c0_132, %c0_133, %c0_134] : memref<4x8x32xf32, #tpu.memory_space<vmem>>, vector<1x8x32xf32>
    %115 = vector.shape_cast %114 : vector<1x8x32xf32> to vector<8x32xf32>
    %c0_135 = arith.constant 0 : index
    %c0_136 = arith.constant 0 : index
    %c0_137 = arith.constant 0 : index
    %116 = vector.load %arg13[%c0_135, %c0_136, %c0_137] : memref<4x1x8xf32, #tpu.memory_space<vmem>>, vector<1x1x8xf32>
    %117 = vector.shape_cast %116 : vector<1x1x8xf32> to vector<1x8xf32>
    %c1_138 = arith.constant 1 : index
    %c0_139 = arith.constant 0 : index
    %c0_140 = arith.constant 0 : index
    %118 = vector.load %arg10[%c1_138, %c0_139, %c0_140] : memref<4x8x32xf32, #tpu.memory_space<vmem>>, vector<1x8x32xf32>
    %119 = vector.shape_cast %118 : vector<1x8x32xf32> to vector<8x32xf32>
    %c1_141 = arith.constant 1 : index
    %c0_142 = arith.constant 0 : index
    %c0_143 = arith.constant 0 : index
    %120 = vector.load %arg13[%c1_141, %c0_142, %c0_143] : memref<4x1x8xf32, #tpu.memory_space<vmem>>, vector<1x1x8xf32>
    %121 = vector.shape_cast %120 : vector<1x1x8xf32> to vector<1x8xf32>
    %c2_144 = arith.constant 2 : index
    %c0_145 = arith.constant 0 : index
    %c0_146 = arith.constant 0 : index
    %122 = vector.load %arg10[%c2_144, %c0_145, %c0_146] : memref<4x8x32xf32, #tpu.memory_space<vmem>>, vector<1x8x32xf32>
    %123 = vector.shape_cast %122 : vector<1x8x32xf32> to vector<8x32xf32>
    %c2_147 = arith.constant 2 : index
    %c0_148 = arith.constant 0 : index
    %c0_149 = arith.constant 0 : index
    %124 = vector.load %arg13[%c2_147, %c0_148, %c0_149] : memref<4x1x8xf32, #tpu.memory_space<vmem>>, vector<1x1x8xf32>
    %125 = vector.shape_cast %124 : vector<1x1x8xf32> to vector<1x8xf32>
    %c3_150 = arith.constant 3 : index
    %c0_151 = arith.constant 0 : index
    %c0_152 = arith.constant 0 : index
    %126 = vector.load %arg10[%c3_150, %c0_151, %c0_152] : memref<4x8x32xf32, #tpu.memory_space<vmem>>, vector<1x8x32xf32>
    %127 = vector.shape_cast %126 : vector<1x8x32xf32> to vector<8x32xf32>
    %c3_153 = arith.constant 3 : index
    %c0_154 = arith.constant 0 : index
    %c0_155 = arith.constant 0 : index
    %128 = vector.load %arg13[%c3_153, %c0_154, %c0_155] : memref<4x1x8xf32, #tpu.memory_space<vmem>>, vector<1x1x8xf32>
    %129 = vector.shape_cast %128 : vector<1x1x8xf32> to vector<1x8xf32>
    %c0_156 = arith.constant 0 : index
    %c0_157 = arith.constant 0 : index
    %c0_158 = arith.constant 0 : index
    %130 = vector.load %arg14[%c0_156, %c0_157, %c0_158] : memref<4x32x8xf32, #tpu.memory_space<vmem>>, vector<1x32x8xf32>
    %131 = vector.shape_cast %130 : vector<1x32x8xf32> to vector<32x8xf32>
    %c1_159 = arith.constant 1 : index
    %c0_160 = arith.constant 0 : index
    %c0_161 = arith.constant 0 : index
    %132 = vector.load %arg14[%c1_159, %c0_160, %c0_161] : memref<4x32x8xf32, #tpu.memory_space<vmem>>, vector<1x32x8xf32>
    %133 = vector.shape_cast %132 : vector<1x32x8xf32> to vector<32x8xf32>
    %c2_162 = arith.constant 2 : index
    %c0_163 = arith.constant 0 : index
    %c0_164 = arith.constant 0 : index
    %134 = vector.load %arg14[%c2_162, %c0_163, %c0_164] : memref<4x32x8xf32, #tpu.memory_space<vmem>>, vector<1x32x8xf32>
    %135 = vector.shape_cast %134 : vector<1x32x8xf32> to vector<32x8xf32>
    %c3_165 = arith.constant 3 : index
    %c0_166 = arith.constant 0 : index
    %c0_167 = arith.constant 0 : index
    %136 = vector.load %arg14[%c3_165, %c0_166, %c0_167] : memref<4x32x8xf32, #tpu.memory_space<vmem>>, vector<1x32x8xf32>
    %137 = vector.shape_cast %136 : vector<1x32x8xf32> to vector<32x8xf32>
    %c0_168 = arith.constant 0 : index
    %c0_169 = arith.constant 0 : index
    %c0_170 = arith.constant 0 : index
    %138 = vector.load %arg16[%c0_168, %c0_169, %c0_170] : memref<4x8x32xf32, #tpu.memory_space<vmem>>, vector<1x8x32xf32>
    %139 = vector.shape_cast %138 : vector<1x8x32xf32> to vector<8x32xf32>
    %c0_171 = arith.constant 0 : index
    %c0_172 = arith.constant 0 : index
    %c0_173 = arith.constant 0 : index
    %140 = vector.load %arg19[%c0_171, %c0_172, %c0_173] : memref<4x1x8xf32, #tpu.memory_space<vmem>>, vector<1x1x8xf32>
    %141 = vector.shape_cast %140 : vector<1x1x8xf32> to vector<1x8xf32>
    %c1_174 = arith.constant 1 : index
    %c0_175 = arith.constant 0 : index
    %c0_176 = arith.constant 0 : index
    %142 = vector.load %arg16[%c1_174, %c0_175, %c0_176] : memref<4x8x32xf32, #tpu.memory_space<vmem>>, vector<1x8x32xf32>
    %143 = vector.shape_cast %142 : vector<1x8x32xf32> to vector<8x32xf32>
    %c1_177 = arith.constant 1 : index
    %c0_178 = arith.constant 0 : index
    %c0_179 = arith.constant 0 : index
    %144 = vector.load %arg19[%c1_177, %c0_178, %c0_179] : memref<4x1x8xf32, #tpu.memory_space<vmem>>, vector<1x1x8xf32>
    %145 = vector.shape_cast %144 : vector<1x1x8xf32> to vector<1x8xf32>
    %c2_180 = arith.constant 2 : index
    %c0_181 = arith.constant 0 : index
    %c0_182 = arith.constant 0 : index
    %146 = vector.load %arg16[%c2_180, %c0_181, %c0_182] : memref<4x8x32xf32, #tpu.memory_space<vmem>>, vector<1x8x32xf32>
    %147 = vector.shape_cast %146 : vector<1x8x32xf32> to vector<8x32xf32>
    %c2_183 = arith.constant 2 : index
    %c0_184 = arith.constant 0 : index
    %c0_185 = arith.constant 0 : index
    %148 = vector.load %arg19[%c2_183, %c0_184, %c0_185] : memref<4x1x8xf32, #tpu.memory_space<vmem>>, vector<1x1x8xf32>
    %149 = vector.shape_cast %148 : vector<1x1x8xf32> to vector<1x8xf32>
    %c3_186 = arith.constant 3 : index
    %c0_187 = arith.constant 0 : index
    %c0_188 = arith.constant 0 : index
    %150 = vector.load %arg16[%c3_186, %c0_187, %c0_188] : memref<4x8x32xf32, #tpu.memory_space<vmem>>, vector<1x8x32xf32>
    %151 = vector.shape_cast %150 : vector<1x8x32xf32> to vector<8x32xf32>
    %c3_189 = arith.constant 3 : index
    %c0_190 = arith.constant 0 : index
    %c0_191 = arith.constant 0 : index
    %152 = vector.load %arg19[%c3_189, %c0_190, %c0_191] : memref<4x1x8xf32, #tpu.memory_space<vmem>>, vector<1x1x8xf32>
    %153 = vector.shape_cast %152 : vector<1x1x8xf32> to vector<1x8xf32>
    %c0_192 = arith.constant 0 : index
    %c0_193 = arith.constant 0 : index
    %c0_194 = arith.constant 0 : index
    %154 = vector.load %arg22[%c0_192, %c0_193, %c0_194] : memref<4x32x8xf32, #tpu.memory_space<vmem>>, vector<1x32x8xf32>
    %155 = vector.shape_cast %154 : vector<1x32x8xf32> to vector<32x8xf32>
    %c1_195 = arith.constant 1 : index
    %c0_196 = arith.constant 0 : index
    %c0_197 = arith.constant 0 : index
    %156 = vector.load %arg22[%c1_195, %c0_196, %c0_197] : memref<4x32x8xf32, #tpu.memory_space<vmem>>, vector<1x32x8xf32>
    %157 = vector.shape_cast %156 : vector<1x32x8xf32> to vector<32x8xf32>
    %c2_198 = arith.constant 2 : index
    %c0_199 = arith.constant 0 : index
    %c0_200 = arith.constant 0 : index
    %158 = vector.load %arg22[%c2_198, %c0_199, %c0_200] : memref<4x32x8xf32, #tpu.memory_space<vmem>>, vector<1x32x8xf32>
    %159 = vector.shape_cast %158 : vector<1x32x8xf32> to vector<32x8xf32>
    %c3_201 = arith.constant 3 : index
    %c0_202 = arith.constant 0 : index
    %c0_203 = arith.constant 0 : index
    %160 = vector.load %arg22[%c3_201, %c0_202, %c0_203] : memref<4x32x8xf32, #tpu.memory_space<vmem>>, vector<1x32x8xf32>
    %161 = vector.shape_cast %160 : vector<1x32x8xf32> to vector<32x8xf32>
    %c0_204 = arith.constant 0 : index
    %c0_205 = arith.constant 0 : index
    %162 = vector.load %arg15[%c0_204, %c0_205] : memref<1x32xf32, #tpu.memory_space<vmem>>, vector<1x32xf32>
    %c0_206 = arith.constant 0 : index
    %c0_207 = arith.constant 0 : index
    %163 = vector.load %arg23[%c0_206, %c0_207] : memref<1x32xf32, #tpu.memory_space<vmem>>, vector<1x32xf32>
    %c0_208 = arith.constant 0 : index
    %c0_209 = arith.constant 0 : index
    %164 = vector.load %arg24[%c0_208, %c0_209] : memref<64x32xf32, #tpu.memory_space<vmem>>, vector<64x32xf32>
    %c0_210 = arith.constant 0 : index
    %c0_211 = arith.constant 0 : index
    %165 = vector.load %arg25[%c0_210, %c0_211] : memref<1x64xf32, #tpu.memory_space<vmem>>, vector<1x64xf32>
    %c0_212 = arith.constant 0 : index
    %c0_213 = arith.constant 0 : index
    %166 = vector.load %arg26[%c0_212, %c0_213] : memref<32x64xf32, #tpu.memory_space<vmem>>, vector<32x64xf32>
    %c0_214 = arith.constant 0 : index
    %c0_215 = arith.constant 0 : index
    %167 = vector.load %arg27[%c0_214, %c0_215] : memref<1x32xf32, #tpu.memory_space<vmem>>, vector<1x32xf32>
    %c0_216 = arith.constant 0 : index
    %c0_217 = arith.constant 0 : index
    %c0_218 = arith.constant 0 : index
    %168 = vector.load %arg28[%c0_216, %c0_217, %c0_218] : memref<3x1x32xf32, #tpu.memory_space<vmem>>, vector<1x1x32xf32>
    %169 = vector.shape_cast %168 : vector<1x1x32xf32> to vector<1x32xf32>
    %c1_219 = arith.constant 1 : index
    %c0_220 = arith.constant 0 : index
    %c0_221 = arith.constant 0 : index
    %170 = vector.load %arg28[%c1_219, %c0_220, %c0_221] : memref<3x1x32xf32, #tpu.memory_space<vmem>>, vector<1x1x32xf32>
    %171 = vector.shape_cast %170 : vector<1x1x32xf32> to vector<1x32xf32>
    %c2_222 = arith.constant 2 : index
    %c0_223 = arith.constant 0 : index
    %c0_224 = arith.constant 0 : index
    %172 = vector.load %arg28[%c2_222, %c0_223, %c0_224] : memref<3x1x32xf32, #tpu.memory_space<vmem>>, vector<1x1x32xf32>
    %173 = vector.shape_cast %172 : vector<1x1x32xf32> to vector<1x32xf32>
    %c0_225 = arith.constant 0 : index
    %c0_226 = arith.constant 0 : index
    %c0_227 = arith.constant 0 : index
    %174 = vector.load %arg29[%c0_225, %c0_226, %c0_227] : memref<3x1x32xf32, #tpu.memory_space<vmem>>, vector<1x1x32xf32>
    %175 = vector.shape_cast %174 : vector<1x1x32xf32> to vector<1x32xf32>
    %c1_228 = arith.constant 1 : index
    %c0_229 = arith.constant 0 : index
    %c0_230 = arith.constant 0 : index
    %176 = vector.load %arg29[%c1_228, %c0_229, %c0_230] : memref<3x1x32xf32, #tpu.memory_space<vmem>>, vector<1x1x32xf32>
    %177 = vector.shape_cast %176 : vector<1x1x32xf32> to vector<1x32xf32>
    %c2_231 = arith.constant 2 : index
    %c0_232 = arith.constant 0 : index
    %c0_233 = arith.constant 0 : index
    %178 = vector.load %arg29[%c2_231, %c0_232, %c0_233] : memref<3x1x32xf32, #tpu.memory_space<vmem>>, vector<1x1x32xf32>
    %179 = vector.shape_cast %178 : vector<1x1x32xf32> to vector<1x32xf32>
    %c0_234 = arith.constant 0 : index
    %c0_235 = arith.constant 0 : index
    %180 = vector.load %arg30[%c0_234, %c0_235] : memref<16x32xf32, #tpu.memory_space<vmem>>, vector<16x32xf32>
    %c0_236 = arith.constant 0 : index
    %c0_237 = arith.constant 0 : index
    %181 = vector.load %arg31[%c0_236, %c0_237] : memref<1x16xf32, #tpu.memory_space<vmem>>, vector<1x16xf32>
    %c0_238 = arith.constant 0 : index
    %c0_239 = arith.constant 0 : index
    %182 = vector.load %arg32[%c0_238, %c0_239] : memref<32x16xf32, #tpu.memory_space<vmem>>, vector<32x16xf32>
    %c0_240 = arith.constant 0 : index
    %c0_241 = arith.constant 0 : index
    %183 = vector.load %arg33[%c0_240, %c0_241] : memref<1x32xf32, #tpu.memory_space<vmem>>, vector<1x32xf32>
    %184 = tpu.iota {dimensions = array<i32: 0>} : vector<8x32xi32>
    %185 = tpu.iota {dimensions = array<i32: 0>} : vector<8x16xi32>
    %c0_i32 = arith.constant 0 : i32
    %186 = vector.broadcast %c0_i32 : i32 to vector<8x32xi32>
    %187 = arith.cmpi eq, %184, %186 : vector<8x32xi32>
    %188 = vector.shape_cast %15 : vector<1x32xf32> to vector<1x32xf32>
    %189 = vector.broadcast %188 : vector<1x32xf32> to vector<8x32xf32>
    %cst_242 = arith.constant 0.000000e+00 : f32
    %190 = vector.broadcast %cst_242 : f32 to vector<8x32xf32>
    %191 = arith.select %187, %189, %190 : vector<8x32xi1>, vector<8x32xf32>
    %cst_243 = arith.constant 0.000000e+00 : f32
    %192 = vector.broadcast %cst_243 : f32 to vector<8x16xf32>
    %c0_i32_244 = arith.constant 0 : i32
    %c8_i32 = arith.constant 8 : i32
    %193 = arith.addi %c0_i32_244, %c8_i32 : i32
    %c1_i32 = arith.constant 1 : i32
    %194:2 = scf.for %arg38 = %c0_i32_244 to %193 step %c1_i32 iter_args(%arg39 = %191, %arg40 = %192) -> (vector<8x32xf32>, vector<8x16xf32>)  : i32 {
      %196 = arith.addf %arg39, %72 : vector<8x32xf32>
      %cst_248 = arith.constant dense<0.000000e+00> : vector<8x8xf32>
      %197 = tpu.matmul %196, %99, %cst_248 {dimension_numbers = #tpu.dot_dimension_numbers<[1], [1], [0], [0], [0, 0, 1, 0], [], []>} : vector<8x32xf32>, vector<8x32xf32>, vector<8x8xf32> -> vector<8x8xf32>
      %198 = vector.broadcast %101 : vector<1x8xf32> to vector<8x8xf32>
      %199 = arith.addf %197, %198 : vector<8x8xf32>
      %cst_249 = arith.constant dense<0.000000e+00> : vector<8x8xf32>
      %200 = tpu.matmul %196, %115, %cst_249 {dimension_numbers = #tpu.dot_dimension_numbers<[1], [1], [0], [0], [0, 0, 1, 0], [], []>} : vector<8x32xf32>, vector<8x32xf32>, vector<8x8xf32> -> vector<8x8xf32>
      %201 = vector.broadcast %117 : vector<1x8xf32> to vector<8x8xf32>
      %202 = arith.addf %200, %201 : vector<8x8xf32>
      %cst_250 = arith.constant dense<0.000000e+00> : vector<8x8xf32>
      %203 = tpu.matmul %196, %103, %cst_250 {dimension_numbers = #tpu.dot_dimension_numbers<[1], [1], [0], [0], [0, 0, 1, 0], [], []>} : vector<8x32xf32>, vector<8x32xf32>, vector<8x8xf32> -> vector<8x8xf32>
      %204 = vector.broadcast %105 : vector<1x8xf32> to vector<8x8xf32>
      %205 = arith.addf %203, %204 : vector<8x8xf32>
      %cst_251 = arith.constant dense<0.000000e+00> : vector<8x8xf32>
      %206 = tpu.matmul %196, %119, %cst_251 {dimension_numbers = #tpu.dot_dimension_numbers<[1], [1], [0], [0], [0, 0, 1, 0], [], []>} : vector<8x32xf32>, vector<8x32xf32>, vector<8x8xf32> -> vector<8x8xf32>
      %207 = vector.broadcast %121 : vector<1x8xf32> to vector<8x8xf32>
      %208 = arith.addf %206, %207 : vector<8x8xf32>
      %cst_252 = arith.constant dense<0.000000e+00> : vector<8x8xf32>
      %209 = tpu.matmul %196, %107, %cst_252 {dimension_numbers = #tpu.dot_dimension_numbers<[1], [1], [0], [0], [0, 0, 1, 0], [], []>} : vector<8x32xf32>, vector<8x32xf32>, vector<8x8xf32> -> vector<8x8xf32>
      %210 = vector.broadcast %109 : vector<1x8xf32> to vector<8x8xf32>
      %211 = arith.addf %209, %210 : vector<8x8xf32>
      %cst_253 = arith.constant dense<0.000000e+00> : vector<8x8xf32>
      %212 = tpu.matmul %196, %123, %cst_253 {dimension_numbers = #tpu.dot_dimension_numbers<[1], [1], [0], [0], [0, 0, 1, 0], [], []>} : vector<8x32xf32>, vector<8x32xf32>, vector<8x8xf32> -> vector<8x8xf32>
      %213 = vector.broadcast %125 : vector<1x8xf32> to vector<8x8xf32>
      %214 = arith.addf %212, %213 : vector<8x8xf32>
      %cst_254 = arith.constant dense<0.000000e+00> : vector<8x8xf32>
      %215 = tpu.matmul %196, %111, %cst_254 {dimension_numbers = #tpu.dot_dimension_numbers<[1], [1], [0], [0], [0, 0, 1, 0], [], []>} : vector<8x32xf32>, vector<8x32xf32>, vector<8x8xf32> -> vector<8x8xf32>
      %216 = vector.broadcast %113 : vector<1x8xf32> to vector<8x8xf32>
      %217 = arith.addf %215, %216 : vector<8x8xf32>
      %cst_255 = arith.constant dense<0.000000e+00> : vector<8x8xf32>
      %218 = tpu.matmul %196, %127, %cst_255 {dimension_numbers = #tpu.dot_dimension_numbers<[1], [1], [0], [0], [0, 0, 1, 0], [], []>} : vector<8x32xf32>, vector<8x32xf32>, vector<8x8xf32> -> vector<8x8xf32>
      %219 = vector.broadcast %129 : vector<1x8xf32> to vector<8x8xf32>
      %220 = arith.addf %218, %219 : vector<8x8xf32>
      %cst_256 = arith.constant dense<0.000000e+00> : vector<8x8xf32>
      %221 = tpu.matmul %196, %83, %cst_256 {dimension_numbers = #tpu.dot_dimension_numbers<[1], [1], [0], [0], [0, 0, 1, 0], [], []>} : vector<8x32xf32>, vector<8x32xf32>, vector<8x8xf32> -> vector<8x8xf32>
      %222 = vector.broadcast %85 : vector<1x8xf32> to vector<8x8xf32>
      %223 = arith.addf %221, %222 : vector<8x8xf32>
      %cst_257 = arith.constant dense<0.000000e+00> : vector<8x8xf32>
      %224 = tpu.matmul %223, %199, %cst_257 {dimension_numbers = #tpu.dot_dimension_numbers<[1], [1], [0], [0], [0, 0, 1, 0], [], []>} : vector<8x8xf32>, vector<8x8xf32>, vector<8x8xf32> -> vector<8x8xf32>
      %cst_258 = arith.constant 0.353553385 : f32
      %225 = vector.broadcast %cst_258 : f32 to vector<8x8xf32>
      %226 = arith.mulf %224, %225 : vector<8x8xf32>
      %227 = arith.addf %226, %74 : vector<8x8xf32>
      %cst_259 = arith.constant dense<0xFF800000> : vector<8xf32>
      %228 = vector.multi_reduction <maximumf>, %227, %cst_259 [1] : vector<8x8xf32> to vector<8xf32>
      %229 = vector.shape_cast %228 : vector<8xf32> to vector<8x1xf32>
      %230 = vector.broadcast %229 : vector<8x1xf32> to vector<8x8xf32>
      %231 = arith.subf %227, %230 : vector<8x8xf32>
      %232 = math.exp %231 : vector<8x8xf32>
      %cst_260 = arith.constant dense<0.000000e+00> : vector<8xf32>
      %233 = vector.multi_reduction <add>, %232, %cst_260 [1] : vector<8x8xf32> to vector<8xf32>
      %234 = vector.shape_cast %233 : vector<8xf32> to vector<8x1xf32>
      %235 = vector.broadcast %234 : vector<8x1xf32> to vector<8x8xf32>
      %236 = arith.divf %232, %235 : vector<8x8xf32>
      %cst_261 = arith.constant dense<0.000000e+00> : vector<8x8xf32>
      %237 = tpu.matmul %236, %202, %cst_261 {dimension_numbers = #tpu.dot_dimension_numbers<[1], [0], [0], [1], [0, 0, 1, 1], [], []>} : vector<8x8xf32>, vector<8x8xf32>, vector<8x8xf32> -> vector<8x8xf32>
      %cst_262 = arith.constant dense<0.000000e+00> : vector<8x32xf32>
      %238 = tpu.matmul %237, %131, %cst_262 {dimension_numbers = #tpu.dot_dimension_numbers<[1], [1], [0], [0], [0, 0, 1, 0], [], []>} : vector<8x8xf32>, vector<32x8xf32>, vector<8x32xf32> -> vector<8x32xf32>
      %cst_263 = arith.constant dense<0.000000e+00> : vector<8x8xf32>
      %239 = tpu.matmul %196, %87, %cst_263 {dimension_numbers = #tpu.dot_dimension_numbers<[1], [1], [0], [0], [0, 0, 1, 0], [], []>} : vector<8x32xf32>, vector<8x32xf32>, vector<8x8xf32> -> vector<8x8xf32>
      %240 = vector.broadcast %89 : vector<1x8xf32> to vector<8x8xf32>
      %241 = arith.addf %239, %240 : vector<8x8xf32>
      %cst_264 = arith.constant dense<0.000000e+00> : vector<8x8xf32>
      %242 = tpu.matmul %241, %205, %cst_264 {dimension_numbers = #tpu.dot_dimension_numbers<[1], [1], [0], [0], [0, 0, 1, 0], [], []>} : vector<8x8xf32>, vector<8x8xf32>, vector<8x8xf32> -> vector<8x8xf32>
      %cst_265 = arith.constant 0.353553385 : f32
      %243 = vector.broadcast %cst_265 : f32 to vector<8x8xf32>
      %244 = arith.mulf %242, %243 : vector<8x8xf32>
      %245 = arith.addf %244, %76 : vector<8x8xf32>
      %cst_266 = arith.constant dense<0xFF800000> : vector<8xf32>
      %246 = vector.multi_reduction <maximumf>, %245, %cst_266 [1] : vector<8x8xf32> to vector<8xf32>
      %247 = vector.shape_cast %246 : vector<8xf32> to vector<8x1xf32>
      %248 = vector.broadcast %247 : vector<8x1xf32> to vector<8x8xf32>
      %249 = arith.subf %245, %248 : vector<8x8xf32>
      %250 = math.exp %249 : vector<8x8xf32>
      %cst_267 = arith.constant dense<0.000000e+00> : vector<8xf32>
      %251 = vector.multi_reduction <add>, %250, %cst_267 [1] : vector<8x8xf32> to vector<8xf32>
      %252 = vector.shape_cast %251 : vector<8xf32> to vector<8x1xf32>
      %253 = vector.broadcast %252 : vector<8x1xf32> to vector<8x8xf32>
      %254 = arith.divf %250, %253 : vector<8x8xf32>
      %cst_268 = arith.constant dense<0.000000e+00> : vector<8x8xf32>
      %255 = tpu.matmul %254, %208, %cst_268 {dimension_numbers = #tpu.dot_dimension_numbers<[1], [0], [0], [1], [0, 0, 1, 1], [], []>} : vector<8x8xf32>, vector<8x8xf32>, vector<8x8xf32> -> vector<8x8xf32>
      %cst_269 = arith.constant dense<0.000000e+00> : vector<8x32xf32>
      %256 = tpu.matmul %255, %133, %cst_269 {dimension_numbers = #tpu.dot_dimension_numbers<[1], [1], [0], [0], [0, 0, 1, 0], [], []>} : vector<8x8xf32>, vector<32x8xf32>, vector<8x32xf32> -> vector<8x32xf32>
      %257 = arith.addf %238, %256 : vector<8x32xf32>
      %cst_270 = arith.constant dense<0.000000e+00> : vector<8x8xf32>
      %258 = tpu.matmul %196, %91, %cst_270 {dimension_numbers = #tpu.dot_dimension_numbers<[1], [1], [0], [0], [0, 0, 1, 0], [], []>} : vector<8x32xf32>, vector<8x32xf32>, vector<8x8xf32> -> vector<8x8xf32>
      %259 = vector.broadcast %93 : vector<1x8xf32> to vector<8x8xf32>
      %260 = arith.addf %258, %259 : vector<8x8xf32>
      %cst_271 = arith.constant dense<0.000000e+00> : vector<8x8xf32>
      %261 = tpu.matmul %260, %211, %cst_271 {dimension_numbers = #tpu.dot_dimension_numbers<[1], [1], [0], [0], [0, 0, 1, 0], [], []>} : vector<8x8xf32>, vector<8x8xf32>, vector<8x8xf32> -> vector<8x8xf32>
      %cst_272 = arith.constant 0.353553385 : f32
      %262 = vector.broadcast %cst_272 : f32 to vector<8x8xf32>
      %263 = arith.mulf %261, %262 : vector<8x8xf32>
      %264 = arith.addf %263, %78 : vector<8x8xf32>
      %cst_273 = arith.constant dense<0xFF800000> : vector<8xf32>
      %265 = vector.multi_reduction <maximumf>, %264, %cst_273 [1] : vector<8x8xf32> to vector<8xf32>
      %266 = vector.shape_cast %265 : vector<8xf32> to vector<8x1xf32>
      %267 = vector.broadcast %266 : vector<8x1xf32> to vector<8x8xf32>
      %268 = arith.subf %264, %267 : vector<8x8xf32>
      %269 = math.exp %268 : vector<8x8xf32>
      %cst_274 = arith.constant dense<0.000000e+00> : vector<8xf32>
      %270 = vector.multi_reduction <add>, %269, %cst_274 [1] : vector<8x8xf32> to vector<8xf32>
      %271 = vector.shape_cast %270 : vector<8xf32> to vector<8x1xf32>
      %272 = vector.broadcast %271 : vector<8x1xf32> to vector<8x8xf32>
      %273 = arith.divf %269, %272 : vector<8x8xf32>
      %cst_275 = arith.constant dense<0.000000e+00> : vector<8x8xf32>
      %274 = tpu.matmul %273, %214, %cst_275 {dimension_numbers = #tpu.dot_dimension_numbers<[1], [0], [0], [1], [0, 0, 1, 1], [], []>} : vector<8x8xf32>, vector<8x8xf32>, vector<8x8xf32> -> vector<8x8xf32>
      %cst_276 = arith.constant dense<0.000000e+00> : vector<8x32xf32>
      %275 = tpu.matmul %274, %135, %cst_276 {dimension_numbers = #tpu.dot_dimension_numbers<[1], [1], [0], [0], [0, 0, 1, 0], [], []>} : vector<8x8xf32>, vector<32x8xf32>, vector<8x32xf32> -> vector<8x32xf32>
      %276 = arith.addf %257, %275 : vector<8x32xf32>
      %cst_277 = arith.constant dense<0.000000e+00> : vector<8x8xf32>
      %277 = tpu.matmul %196, %95, %cst_277 {dimension_numbers = #tpu.dot_dimension_numbers<[1], [1], [0], [0], [0, 0, 1, 0], [], []>} : vector<8x32xf32>, vector<8x32xf32>, vector<8x8xf32> -> vector<8x8xf32>
      %278 = vector.broadcast %97 : vector<1x8xf32> to vector<8x8xf32>
      %279 = arith.addf %277, %278 : vector<8x8xf32>
      %cst_278 = arith.constant dense<0.000000e+00> : vector<8x8xf32>
      %280 = tpu.matmul %279, %217, %cst_278 {dimension_numbers = #tpu.dot_dimension_numbers<[1], [1], [0], [0], [0, 0, 1, 0], [], []>} : vector<8x8xf32>, vector<8x8xf32>, vector<8x8xf32> -> vector<8x8xf32>
      %cst_279 = arith.constant 0.353553385 : f32
      %281 = vector.broadcast %cst_279 : f32 to vector<8x8xf32>
      %282 = arith.mulf %280, %281 : vector<8x8xf32>
      %283 = arith.addf %282, %80 : vector<8x8xf32>
      %cst_280 = arith.constant dense<0xFF800000> : vector<8xf32>
      %284 = vector.multi_reduction <maximumf>, %283, %cst_280 [1] : vector<8x8xf32> to vector<8xf32>
      %285 = vector.shape_cast %284 : vector<8xf32> to vector<8x1xf32>
      %286 = vector.broadcast %285 : vector<8x1xf32> to vector<8x8xf32>
      %287 = arith.subf %283, %286 : vector<8x8xf32>
      %288 = math.exp %287 : vector<8x8xf32>
      %cst_281 = arith.constant dense<0.000000e+00> : vector<8xf32>
      %289 = vector.multi_reduction <add>, %288, %cst_281 [1] : vector<8x8xf32> to vector<8xf32>
      %290 = vector.shape_cast %289 : vector<8xf32> to vector<8x1xf32>
      %291 = vector.broadcast %290 : vector<8x1xf32> to vector<8x8xf32>
      %292 = arith.divf %288, %291 : vector<8x8xf32>
      %cst_282 = arith.constant dense<0.000000e+00> : vector<8x8xf32>
      %293 = tpu.matmul %292, %220, %cst_282 {dimension_numbers = #tpu.dot_dimension_numbers<[1], [0], [0], [1], [0, 0, 1, 1], [], []>} : vector<8x8xf32>, vector<8x8xf32>, vector<8x8xf32> -> vector<8x8xf32>
      %cst_283 = arith.constant dense<0.000000e+00> : vector<8x32xf32>
      %294 = tpu.matmul %293, %137, %cst_283 {dimension_numbers = #tpu.dot_dimension_numbers<[1], [1], [0], [0], [0, 0, 1, 0], [], []>} : vector<8x8xf32>, vector<32x8xf32>, vector<8x32xf32> -> vector<8x32xf32>
      %295 = arith.addf %276, %294 : vector<8x32xf32>
      %296 = vector.broadcast %162 : vector<1x32xf32> to vector<8x32xf32>
      %297 = arith.addf %295, %296 : vector<8x32xf32>
      %298 = arith.addf %196, %297 : vector<8x32xf32>
      %cst_284 = arith.constant dense<0.000000e+00> : vector<8xf32>
      %299 = vector.multi_reduction <add>, %298, %cst_284 [1] : vector<8x32xf32> to vector<8xf32>
      %300 = vector.shape_cast %299 : vector<8xf32> to vector<8x1xf32>
      %cst_285 = arith.constant 3.200000e+01 : f32
      %301 = vector.broadcast %cst_285 : f32 to vector<8x1xf32>
      %302 = arith.divf %300, %301 : vector<8x1xf32>
      %303 = vector.broadcast %302 : vector<8x1xf32> to vector<8x32xf32>
      %304 = arith.subf %298, %303 : vector<8x32xf32>
      %305 = arith.mulf %304, %304 : vector<8x32xf32>
      %cst_286 = arith.constant dense<0.000000e+00> : vector<8xf32>
      %306 = vector.multi_reduction <add>, %305, %cst_286 [1] : vector<8x32xf32> to vector<8xf32>
      %307 = vector.shape_cast %306 : vector<8xf32> to vector<8x1xf32>
      %cst_287 = arith.constant 3.200000e+01 : f32
      %308 = vector.broadcast %cst_287 : f32 to vector<8x1xf32>
      %309 = arith.divf %307, %308 : vector<8x1xf32>
      %310 = vector.broadcast %302 : vector<8x1xf32> to vector<8x32xf32>
      %311 = arith.subf %298, %310 : vector<8x32xf32>
      %cst_288 = arith.constant 9.99999974E-6 : f32
      %312 = vector.broadcast %cst_288 : f32 to vector<8x1xf32>
      %313 = arith.addf %309, %312 : vector<8x1xf32>
      %314 = math.rsqrt %313 : vector<8x1xf32>
      %315 = vector.broadcast %314 : vector<8x1xf32> to vector<8x32xf32>
      %316 = arith.mulf %311, %315 : vector<8x32xf32>
      %317 = vector.broadcast %169 : vector<1x32xf32> to vector<8x32xf32>
      %318 = arith.mulf %316, %317 : vector<8x32xf32>
      %319 = vector.broadcast %175 : vector<1x32xf32> to vector<8x32xf32>
      %320 = arith.addf %318, %319 : vector<8x32xf32>
      %cst_289 = arith.constant dense<0.000000e+00> : vector<8x8xf32>
      %321 = tpu.matmul %320, %139, %cst_289 {dimension_numbers = #tpu.dot_dimension_numbers<[1], [1], [0], [0], [0, 0, 1, 0], [], []>} : vector<8x32xf32>, vector<8x32xf32>, vector<8x8xf32> -> vector<8x8xf32>
      %322 = vector.broadcast %141 : vector<1x8xf32> to vector<8x8xf32>
      %323 = arith.addf %321, %322 : vector<8x8xf32>
      %cst_290 = arith.constant dense<0.000000e+00> : vector<8x8xf32>
      %324 = tpu.matmul %323, %22, %cst_290 {dimension_numbers = #tpu.dot_dimension_numbers<[1], [1], [0], [0], [0, 0, 1, 0], [], []>} : vector<8x8xf32>, vector<8x8xf32>, vector<8x8xf32> -> vector<8x8xf32>
      %cst_291 = arith.constant 0.353553385 : f32
      %325 = vector.broadcast %cst_291 : f32 to vector<8x8xf32>
      %326 = arith.mulf %324, %325 : vector<8x8xf32>
      %327 = arith.addf %326, %81 : vector<8x8xf32>
      %cst_292 = arith.constant dense<0xFF800000> : vector<8xf32>
      %328 = vector.multi_reduction <maximumf>, %327, %cst_292 [1] : vector<8x8xf32> to vector<8xf32>
      %329 = vector.shape_cast %328 : vector<8xf32> to vector<8x1xf32>
      %330 = vector.broadcast %329 : vector<8x1xf32> to vector<8x8xf32>
      %331 = arith.subf %327, %330 : vector<8x8xf32>
      %332 = math.exp %331 : vector<8x8xf32>
      %cst_293 = arith.constant dense<0.000000e+00> : vector<8xf32>
      %333 = vector.multi_reduction <add>, %332, %cst_293 [1] : vector<8x8xf32> to vector<8xf32>
      %334 = vector.shape_cast %333 : vector<8xf32> to vector<8x1xf32>
      %335 = vector.broadcast %334 : vector<8x1xf32> to vector<8x8xf32>
      %336 = arith.divf %332, %335 : vector<8x8xf32>
      %cst_294 = arith.constant dense<0.000000e+00> : vector<8x8xf32>
      %337 = tpu.matmul %336, %29, %cst_294 {dimension_numbers = #tpu.dot_dimension_numbers<[1], [0], [0], [1], [0, 0, 1, 1], [], []>} : vector<8x8xf32>, vector<8x8xf32>, vector<8x8xf32> -> vector<8x8xf32>
      %cst_295 = arith.constant dense<0.000000e+00> : vector<8x32xf32>
      %338 = tpu.matmul %337, %155, %cst_295 {dimension_numbers = #tpu.dot_dimension_numbers<[1], [1], [0], [0], [0, 0, 1, 0], [], []>} : vector<8x8xf32>, vector<32x8xf32>, vector<8x32xf32> -> vector<8x32xf32>
      %cst_296 = arith.constant dense<0.000000e+00> : vector<8x8xf32>
      %339 = tpu.matmul %320, %143, %cst_296 {dimension_numbers = #tpu.dot_dimension_numbers<[1], [1], [0], [0], [0, 0, 1, 0], [], []>} : vector<8x32xf32>, vector<8x32xf32>, vector<8x8xf32> -> vector<8x8xf32>
      %340 = vector.broadcast %145 : vector<1x8xf32> to vector<8x8xf32>
      %341 = arith.addf %339, %340 : vector<8x8xf32>
      %cst_297 = arith.constant dense<0.000000e+00> : vector<8x8xf32>
      %342 = tpu.matmul %341, %36, %cst_297 {dimension_numbers = #tpu.dot_dimension_numbers<[1], [1], [0], [0], [0, 0, 1, 0], [], []>} : vector<8x8xf32>, vector<8x8xf32>, vector<8x8xf32> -> vector<8x8xf32>
      %cst_298 = arith.constant 0.353553385 : f32
      %343 = vector.broadcast %cst_298 : f32 to vector<8x8xf32>
      %344 = arith.mulf %342, %343 : vector<8x8xf32>
      %345 = arith.addf %344, %81 : vector<8x8xf32>
      %cst_299 = arith.constant dense<0xFF800000> : vector<8xf32>
      %346 = vector.multi_reduction <maximumf>, %345, %cst_299 [1] : vector<8x8xf32> to vector<8xf32>
      %347 = vector.shape_cast %346 : vector<8xf32> to vector<8x1xf32>
      %348 = vector.broadcast %347 : vector<8x1xf32> to vector<8x8xf32>
      %349 = arith.subf %345, %348 : vector<8x8xf32>
      %350 = math.exp %349 : vector<8x8xf32>
      %cst_300 = arith.constant dense<0.000000e+00> : vector<8xf32>
      %351 = vector.multi_reduction <add>, %350, %cst_300 [1] : vector<8x8xf32> to vector<8xf32>
      %352 = vector.shape_cast %351 : vector<8xf32> to vector<8x1xf32>
      %353 = vector.broadcast %352 : vector<8x1xf32> to vector<8x8xf32>
      %354 = arith.divf %350, %353 : vector<8x8xf32>
      %cst_301 = arith.constant dense<0.000000e+00> : vector<8x8xf32>
      %355 = tpu.matmul %354, %43, %cst_301 {dimension_numbers = #tpu.dot_dimension_numbers<[1], [0], [0], [1], [0, 0, 1, 1], [], []>} : vector<8x8xf32>, vector<8x8xf32>, vector<8x8xf32> -> vector<8x8xf32>
      %cst_302 = arith.constant dense<0.000000e+00> : vector<8x32xf32>
      %356 = tpu.matmul %355, %157, %cst_302 {dimension_numbers = #tpu.dot_dimension_numbers<[1], [1], [0], [0], [0, 0, 1, 0], [], []>} : vector<8x8xf32>, vector<32x8xf32>, vector<8x32xf32> -> vector<8x32xf32>
      %357 = arith.addf %338, %356 : vector<8x32xf32>
      %cst_303 = arith.constant dense<0.000000e+00> : vector<8x8xf32>
      %358 = tpu.matmul %320, %147, %cst_303 {dimension_numbers = #tpu.dot_dimension_numbers<[1], [1], [0], [0], [0, 0, 1, 0], [], []>} : vector<8x32xf32>, vector<8x32xf32>, vector<8x8xf32> -> vector<8x8xf32>
      %359 = vector.broadcast %149 : vector<1x8xf32> to vector<8x8xf32>
      %360 = arith.addf %358, %359 : vector<8x8xf32>
      %cst_304 = arith.constant dense<0.000000e+00> : vector<8x8xf32>
      %361 = tpu.matmul %360, %50, %cst_304 {dimension_numbers = #tpu.dot_dimension_numbers<[1], [1], [0], [0], [0, 0, 1, 0], [], []>} : vector<8x8xf32>, vector<8x8xf32>, vector<8x8xf32> -> vector<8x8xf32>
      %cst_305 = arith.constant 0.353553385 : f32
      %362 = vector.broadcast %cst_305 : f32 to vector<8x8xf32>
      %363 = arith.mulf %361, %362 : vector<8x8xf32>
      %364 = arith.addf %363, %81 : vector<8x8xf32>
      %cst_306 = arith.constant dense<0xFF800000> : vector<8xf32>
      %365 = vector.multi_reduction <maximumf>, %364, %cst_306 [1] : vector<8x8xf32> to vector<8xf32>
      %366 = vector.shape_cast %365 : vector<8xf32> to vector<8x1xf32>
      %367 = vector.broadcast %366 : vector<8x1xf32> to vector<8x8xf32>
      %368 = arith.subf %364, %367 : vector<8x8xf32>
      %369 = math.exp %368 : vector<8x8xf32>
      %cst_307 = arith.constant dense<0.000000e+00> : vector<8xf32>
      %370 = vector.multi_reduction <add>, %369, %cst_307 [1] : vector<8x8xf32> to vector<8xf32>
      %371 = vector.shape_cast %370 : vector<8xf32> to vector<8x1xf32>
      %372 = vector.broadcast %371 : vector<8x1xf32> to vector<8x8xf32>
      %373 = arith.divf %369, %372 : vector<8x8xf32>
      %cst_308 = arith.constant dense<0.000000e+00> : vector<8x8xf32>
      %374 = tpu.matmul %373, %57, %cst_308 {dimension_numbers = #tpu.dot_dimension_numbers<[1], [0], [0], [1], [0, 0, 1, 1], [], []>} : vector<8x8xf32>, vector<8x8xf32>, vector<8x8xf32> -> vector<8x8xf32>
      %cst_309 = arith.constant dense<0.000000e+00> : vector<8x32xf32>
      %375 = tpu.matmul %374, %159, %cst_309 {dimension_numbers = #tpu.dot_dimension_numbers<[1], [1], [0], [0], [0, 0, 1, 0], [], []>} : vector<8x8xf32>, vector<32x8xf32>, vector<8x32xf32> -> vector<8x32xf32>
      %376 = arith.addf %357, %375 : vector<8x32xf32>
      %cst_310 = arith.constant dense<0.000000e+00> : vector<8x8xf32>
      %377 = tpu.matmul %320, %151, %cst_310 {dimension_numbers = #tpu.dot_dimension_numbers<[1], [1], [0], [0], [0, 0, 1, 0], [], []>} : vector<8x32xf32>, vector<8x32xf32>, vector<8x8xf32> -> vector<8x8xf32>
      %378 = vector.broadcast %153 : vector<1x8xf32> to vector<8x8xf32>
      %379 = arith.addf %377, %378 : vector<8x8xf32>
      %cst_311 = arith.constant dense<0.000000e+00> : vector<8x8xf32>
      %380 = tpu.matmul %379, %64, %cst_311 {dimension_numbers = #tpu.dot_dimension_numbers<[1], [1], [0], [0], [0, 0, 1, 0], [], []>} : vector<8x8xf32>, vector<8x8xf32>, vector<8x8xf32> -> vector<8x8xf32>
      %cst_312 = arith.constant 0.353553385 : f32
      %381 = vector.broadcast %cst_312 : f32 to vector<8x8xf32>
      %382 = arith.mulf %380, %381 : vector<8x8xf32>
      %383 = arith.addf %382, %81 : vector<8x8xf32>
      %cst_313 = arith.constant dense<0xFF800000> : vector<8xf32>
      %384 = vector.multi_reduction <maximumf>, %383, %cst_313 [1] : vector<8x8xf32> to vector<8xf32>
      %385 = vector.shape_cast %384 : vector<8xf32> to vector<8x1xf32>
      %386 = vector.broadcast %385 : vector<8x1xf32> to vector<8x8xf32>
      %387 = arith.subf %383, %386 : vector<8x8xf32>
      %388 = math.exp %387 : vector<8x8xf32>
      %cst_314 = arith.constant dense<0.000000e+00> : vector<8xf32>
      %389 = vector.multi_reduction <add>, %388, %cst_314 [1] : vector<8x8xf32> to vector<8xf32>
      %390 = vector.shape_cast %389 : vector<8xf32> to vector<8x1xf32>
      %391 = vector.broadcast %390 : vector<8x1xf32> to vector<8x8xf32>
      %392 = arith.divf %388, %391 : vector<8x8xf32>
      %cst_315 = arith.constant dense<0.000000e+00> : vector<8x8xf32>
      %393 = tpu.matmul %392, %71, %cst_315 {dimension_numbers = #tpu.dot_dimension_numbers<[1], [0], [0], [1], [0, 0, 1, 1], [], []>} : vector<8x8xf32>, vector<8x8xf32>, vector<8x8xf32> -> vector<8x8xf32>
      %cst_316 = arith.constant dense<0.000000e+00> : vector<8x32xf32>
      %394 = tpu.matmul %393, %161, %cst_316 {dimension_numbers = #tpu.dot_dimension_numbers<[1], [1], [0], [0], [0, 0, 1, 0], [], []>} : vector<8x8xf32>, vector<32x8xf32>, vector<8x32xf32> -> vector<8x32xf32>
      %395 = arith.addf %376, %394 : vector<8x32xf32>
      %396 = vector.broadcast %163 : vector<1x32xf32> to vector<8x32xf32>
      %397 = arith.addf %395, %396 : vector<8x32xf32>
      %398 = arith.addf %320, %397 : vector<8x32xf32>
      %cst_317 = arith.constant dense<0.000000e+00> : vector<8xf32>
      %399 = vector.multi_reduction <add>, %398, %cst_317 [1] : vector<8x32xf32> to vector<8xf32>
      %400 = vector.shape_cast %399 : vector<8xf32> to vector<8x1xf32>
      %cst_318 = arith.constant 3.200000e+01 : f32
      %401 = vector.broadcast %cst_318 : f32 to vector<8x1xf32>
      %402 = arith.divf %400, %401 : vector<8x1xf32>
      %403 = vector.broadcast %402 : vector<8x1xf32> to vector<8x32xf32>
      %404 = arith.subf %398, %403 : vector<8x32xf32>
      %405 = arith.mulf %404, %404 : vector<8x32xf32>
      %cst_319 = arith.constant dense<0.000000e+00> : vector<8xf32>
      %406 = vector.multi_reduction <add>, %405, %cst_319 [1] : vector<8x32xf32> to vector<8xf32>
      %407 = vector.shape_cast %406 : vector<8xf32> to vector<8x1xf32>
      %cst_320 = arith.constant 3.200000e+01 : f32
      %408 = vector.broadcast %cst_320 : f32 to vector<8x1xf32>
      %409 = arith.divf %407, %408 : vector<8x1xf32>
      %410 = vector.broadcast %402 : vector<8x1xf32> to vector<8x32xf32>
      %411 = arith.subf %398, %410 : vector<8x32xf32>
      %cst_321 = arith.constant 9.99999974E-6 : f32
      %412 = vector.broadcast %cst_321 : f32 to vector<8x1xf32>
      %413 = arith.addf %409, %412 : vector<8x1xf32>
      %414 = math.rsqrt %413 : vector<8x1xf32>
      %415 = vector.broadcast %414 : vector<8x1xf32> to vector<8x32xf32>
      %416 = arith.mulf %411, %415 : vector<8x32xf32>
      %417 = vector.broadcast %171 : vector<1x32xf32> to vector<8x32xf32>
      %418 = arith.mulf %416, %417 : vector<8x32xf32>
      %419 = vector.broadcast %177 : vector<1x32xf32> to vector<8x32xf32>
      %420 = arith.addf %418, %419 : vector<8x32xf32>
      %cst_322 = arith.constant dense<0.000000e+00> : vector<8x64xf32>
      %421 = tpu.matmul %420, %164, %cst_322 {dimension_numbers = #tpu.dot_dimension_numbers<[1], [1], [0], [0], [0, 0, 1, 0], [], []>} : vector<8x32xf32>, vector<64x32xf32>, vector<8x64xf32> -> vector<8x64xf32>
      %422 = vector.broadcast %165 : vector<1x64xf32> to vector<8x64xf32>
      %423 = arith.addf %421, %422 : vector<8x64xf32>
      %cst_323 = arith.constant 0.000000e+00 : f32
      %424 = vector.broadcast %cst_323 : f32 to vector<8x64xf32>
      %425 = arith.maximumf %423, %424 : vector<8x64xf32>
      %cst_324 = arith.constant dense<0.000000e+00> : vector<8x32xf32>
      %426 = tpu.matmul %425, %166, %cst_324 {dimension_numbers = #tpu.dot_dimension_numbers<[1], [1], [0], [0], [0, 0, 1, 0], [], []>} : vector<8x64xf32>, vector<32x64xf32>, vector<8x32xf32> -> vector<8x32xf32>
      %427 = arith.addf %420, %426 : vector<8x32xf32>
      %428 = vector.broadcast %167 : vector<1x32xf32> to vector<8x32xf32>
      %429 = arith.addf %427, %428 : vector<8x32xf32>
      %cst_325 = arith.constant dense<0.000000e+00> : vector<8xf32>
      %430 = vector.multi_reduction <add>, %429, %cst_325 [1] : vector<8x32xf32> to vector<8xf32>
      %431 = vector.shape_cast %430 : vector<8xf32> to vector<8x1xf32>
      %cst_326 = arith.constant 3.200000e+01 : f32
      %432 = vector.broadcast %cst_326 : f32 to vector<8x1xf32>
      %433 = arith.divf %431, %432 : vector<8x1xf32>
      %434 = vector.broadcast %433 : vector<8x1xf32> to vector<8x32xf32>
      %435 = arith.subf %429, %434 : vector<8x32xf32>
      %436 = arith.mulf %435, %435 : vector<8x32xf32>
      %cst_327 = arith.constant dense<0.000000e+00> : vector<8xf32>
      %437 = vector.multi_reduction <add>, %436, %cst_327 [1] : vector<8x32xf32> to vector<8xf32>
      %438 = vector.shape_cast %437 : vector<8xf32> to vector<8x1xf32>
      %cst_328 = arith.constant 3.200000e+01 : f32
      %439 = vector.broadcast %cst_328 : f32 to vector<8x1xf32>
      %440 = arith.divf %438, %439 : vector<8x1xf32>
      %441 = vector.broadcast %433 : vector<8x1xf32> to vector<8x32xf32>
      %442 = arith.subf %429, %441 : vector<8x32xf32>
      %cst_329 = arith.constant 9.99999974E-6 : f32
      %443 = vector.broadcast %cst_329 : f32 to vector<8x1xf32>
      %444 = arith.addf %440, %443 : vector<8x1xf32>
      %445 = math.rsqrt %444 : vector<8x1xf32>
      %446 = vector.broadcast %445 : vector<8x1xf32> to vector<8x32xf32>
      %447 = arith.mulf %442, %446 : vector<8x32xf32>
      %448 = vector.broadcast %173 : vector<1x32xf32> to vector<8x32xf32>
      %449 = arith.mulf %447, %448 : vector<8x32xf32>
      %450 = vector.broadcast %179 : vector<1x32xf32> to vector<8x32xf32>
      %451 = arith.addf %449, %450 : vector<8x32xf32>
      %cst_330 = arith.constant dense<0.000000e+00> : vector<8x16xf32>
      %452 = tpu.matmul %451, %180, %cst_330 {dimension_numbers = #tpu.dot_dimension_numbers<[1], [1], [0], [0], [0, 0, 1, 0], [], []>} : vector<8x32xf32>, vector<16x32xf32>, vector<8x16xf32> -> vector<8x16xf32>
      %453 = vector.broadcast %181 : vector<1x16xf32> to vector<8x16xf32>
      %454 = arith.addf %452, %453 : vector<8x16xf32>
      %455 = vector.broadcast %arg38 : i32 to vector<8x16xi32>
      %456 = arith.cmpi eq, %185, %455 : vector<8x16xi32>
      %cst_331 = arith.constant 0.000000e+00 : f32
      %457 = vector.broadcast %cst_331 : f32 to vector<8x16xf32>
      %458 = arith.select %456, %454, %457 : vector<8x16xi1>, vector<8x16xf32>
      %cst_332 = arith.constant dense<0.000000e+00> : vector<16xf32>
      %459 = vector.multi_reduction <add>, %458, %cst_332 [0] : vector<8x16xf32> to vector<16xf32>
      %460 = vector.shape_cast %459 : vector<16xf32> to vector<1x16xf32>
      %cst_333 = arith.constant dense<0.000000e+00> : vector<1x32xf32>
      %461 = tpu.matmul %460, %182, %cst_333 {dimension_numbers = #tpu.dot_dimension_numbers<[1], [1], [0], [0], [0, 0, 1, 0], [], []>} : vector<1x16xf32>, vector<32x16xf32>, vector<1x32xf32> -> vector<1x32xf32>
      %462 = arith.addf %461, %183 : vector<1x32xf32>
      %463 = arith.addf %462, %15 : vector<1x32xf32>
      %c1_i32_334 = arith.constant 1 : i32
      %464 = arith.addi %arg38, %c1_i32_334 : i32
      %465 = vector.broadcast %464 : i32 to vector<8x32xi32>
      %466 = arith.cmpi eq, %184, %465 : vector<8x32xi32>
      %467 = vector.shape_cast %463 : vector<1x32xf32> to vector<1x32xf32>
      %468 = vector.broadcast %467 : vector<1x32xf32> to vector<8x32xf32>
      %469 = arith.select %466, %468, %arg39 : vector<8x32xi1>, vector<8x32xf32>
      scf.yield %469, %454 : vector<8x32xf32>, vector<8x16xf32>
    }
    %c8_i32_245 = arith.constant 8 : i32
    %c0_246 = arith.constant 0 : index
    %c0_247 = arith.constant 0 : index
    %195 = vector.load %arg37[%c0_246, %c0_247] : memref<8x16xf32, #tpu.memory_space<vmem>>, vector<8x16xf32>
    tpu.vector_store %arg37[%c0_246, %c0_247], %194#1 {strides = array<i32>} : memref<8x16xf32, #tpu.memory_space<vmem>>, vector<8x16xf32>,
    return
  }
  func.func @transform_0(%arg0: i32) -> (i32, i32) {
    %c0_i32 = arith.constant 0 : i32
    %c0_i32_0 = arith.constant 0 : i32
    %c0_i32_1 = arith.constant 0 : i32
    return %c0_i32, %c0_i32_0 : i32, i32
  }
  func.func @transform_1(%arg0: i32) -> (i32, i32) {
    %c0_i32 = arith.constant 0 : i32
    %c0_i32_0 = arith.constant 0 : i32
    %c0_i32_1 = arith.constant 0 : i32
    return %c0_i32, %c0_i32_0 : i32, i32
  }
  func.func @transform_2(%arg0: i32) -> (i32, i32) {
    %c0_i32 = arith.constant 0 : i32
    %c0_i32_0 = arith.constant 0 : i32
    %c0_i32_1 = arith.constant 0 : i32
    return %c0_i32, %c0_i32_0 : i32, i32
  }
  func.func @transform_3(%arg0: i32) -> (i32, i32) {
    %c0_i32 = arith.constant 0 : i32
    %c0_i32_0 = arith.constant 0 : i32
    %c0_i32_1 = arith.constant 0 : i32
    return %c0_i32, %c0_i32_0 : i32, i32
  }
  func.func @transform_4(%arg0: i32) -> (i32, i32) {
    %c0_i32 = arith.constant 0 : i32
    %c0_i32_0 = arith.constant 0 : i32
    %c0_i32_1 = arith.constant 0 : i32
    return %c0_i32, %c0_i32_0 : i32, i32
  }
  func.func @transform_5(%arg0: i32) -> (i32, i32) {
    %c0_i32 = arith.constant 0 : i32
    %c0_i32_0 = arith.constant 0 : i32
    %c0_i32_1 = arith.constant 0 : i32
    return %c0_i32, %c0_i32_0 : i32, i32
  }
  func.func @transform_6(%arg0: i32) -> (i32, i32) {
    %c0_i32 = arith.constant 0 : i32
    %c0_i32_0 = arith.constant 0 : i32
    %c0_i32_1 = arith.constant 0 : i32
    return %c0_i32, %c0_i32_0 : i32, i32
  }
  func.func @transform_7(%arg0: i32) -> (i32, i32, i32) {
    %c0_i32 = arith.constant 0 : i32
    %c0_i32_0 = arith.constant 0 : i32
    %c0_i32_1 = arith.constant 0 : i32
    %c0_i32_2 = arith.constant 0 : i32
    return %c0_i32, %c0_i32_0, %c0_i32_1 : i32, i32, i32
  }
  func.func @transform_8(%arg0: i32) -> (i32, i32, i32) {
    %c0_i32 = arith.constant 0 : i32
    %c0_i32_0 = arith.constant 0 : i32
    %c0_i32_1 = arith.constant 0 : i32
    %c0_i32_2 = arith.constant 0 : i32
    return %c0_i32, %c0_i32_0, %c0_i32_1 : i32, i32, i32
  }
  func.func @transform_9(%arg0: i32) -> (i32, i32, i32) {
    %c0_i32 = arith.constant 0 : i32
    %c0_i32_0 = arith.constant 0 : i32
    %c0_i32_1 = arith.constant 0 : i32
    %c0_i32_2 = arith.constant 0 : i32
    return %c0_i32, %c0_i32_0, %c0_i32_1 : i32, i32, i32
  }
  func.func @transform_10(%arg0: i32) -> (i32, i32, i32) {
    %c0_i32 = arith.constant 0 : i32
    %c0_i32_0 = arith.constant 0 : i32
    %c0_i32_1 = arith.constant 0 : i32
    %c0_i32_2 = arith.constant 0 : i32
    return %c0_i32, %c0_i32_0, %c0_i32_1 : i32, i32, i32
  }
  func.func @transform_11(%arg0: i32) -> (i32, i32, i32) {
    %c0_i32 = arith.constant 0 : i32
    %c0_i32_0 = arith.constant 0 : i32
    %c0_i32_1 = arith.constant 0 : i32
    %c0_i32_2 = arith.constant 0 : i32
    return %c0_i32, %c0_i32_0, %c0_i32_1 : i32, i32, i32
  }
  func.func @transform_12(%arg0: i32) -> (i32, i32, i32) {
    %c0_i32 = arith.constant 0 : i32
    %c0_i32_0 = arith.constant 0 : i32
    %c0_i32_1 = arith.constant 0 : i32
    %c0_i32_2 = arith.constant 0 : i32
    return %c0_i32, %c0_i32_0, %c0_i32_1 : i32, i32, i32
  }
  func.func @transform_13(%arg0: i32) -> (i32, i32, i32) {
    %c0_i32 = arith.constant 0 : i32
    %c0_i32_0 = arith.constant 0 : i32
    %c0_i32_1 = arith.constant 0 : i32
    %c0_i32_2 = arith.constant 0 : i32
    return %c0_i32, %c0_i32_0, %c0_i32_1 : i32, i32, i32
  }
  func.func @transform_14(%arg0: i32) -> (i32, i32) {
    %c0_i32 = arith.constant 0 : i32
    %c0_i32_0 = arith.constant 0 : i32
    %c0_i32_1 = arith.constant 0 : i32
    return %c0_i32, %c0_i32_0 : i32, i32
  }
  func.func @transform_15(%arg0: i32) -> (i32, i32, i32) {
    %c0_i32 = arith.constant 0 : i32
    %c0_i32_0 = arith.constant 0 : i32
    %c0_i32_1 = arith.constant 0 : i32
    %c0_i32_2 = arith.constant 0 : i32
    return %c0_i32, %c0_i32_0, %c0_i32_1 : i32, i32, i32
  }
  func.func @transform_16(%arg0: i32) -> (i32, i32, i32) {
    %c0_i32 = arith.constant 0 : i32
    %c0_i32_0 = arith.constant 0 : i32
    %c0_i32_1 = arith.constant 0 : i32
    %c0_i32_2 = arith.constant 0 : i32
    return %c0_i32, %c0_i32_0, %c0_i32_1 : i32, i32, i32
  }
  func.func @transform_17(%arg0: i32) -> (i32, i32, i32) {
    %c0_i32 = arith.constant 0 : i32
    %c0_i32_0 = arith.constant 0 : i32
    %c0_i32_1 = arith.constant 0 : i32
    %c0_i32_2 = arith.constant 0 : i32
    return %c0_i32, %c0_i32_0, %c0_i32_1 : i32, i32, i32
  }
  func.func @transform_18(%arg0: i32) -> (i32, i32, i32) {
    %c0_i32 = arith.constant 0 : i32
    %c0_i32_0 = arith.constant 0 : i32
    %c0_i32_1 = arith.constant 0 : i32
    %c0_i32_2 = arith.constant 0 : i32
    return %c0_i32, %c0_i32_0, %c0_i32_1 : i32, i32, i32
  }
  func.func @transform_19(%arg0: i32) -> (i32, i32, i32) {
    %c0_i32 = arith.constant 0 : i32
    %c0_i32_0 = arith.constant 0 : i32
    %c0_i32_1 = arith.constant 0 : i32
    %c0_i32_2 = arith.constant 0 : i32
    return %c0_i32, %c0_i32_0, %c0_i32_1 : i32, i32, i32
  }
  func.func @transform_20(%arg0: i32) -> (i32, i32, i32) {
    %c0_i32 = arith.constant 0 : i32
    %c0_i32_0 = arith.constant 0 : i32
    %c0_i32_1 = arith.constant 0 : i32
    %c0_i32_2 = arith.constant 0 : i32
    return %c0_i32, %c0_i32_0, %c0_i32_1 : i32, i32, i32
  }
  func.func @transform_21(%arg0: i32) -> (i32, i32, i32) {
    %c0_i32 = arith.constant 0 : i32
    %c0_i32_0 = arith.constant 0 : i32
    %c0_i32_1 = arith.constant 0 : i32
    %c0_i32_2 = arith.constant 0 : i32
    return %c0_i32, %c0_i32_0, %c0_i32_1 : i32, i32, i32
  }
  func.func @transform_22(%arg0: i32) -> (i32, i32) {
    %c0_i32 = arith.constant 0 : i32
    %c0_i32_0 = arith.constant 0 : i32
    %c0_i32_1 = arith.constant 0 : i32
    return %c0_i32, %c0_i32_0 : i32, i32
  }
  func.func @transform_23(%arg0: i32) -> (i32, i32) {
    %c0_i32 = arith.constant 0 : i32
    %c0_i32_0 = arith.constant 0 : i32
    %c0_i32_1 = arith.constant 0 : i32
    return %c0_i32, %c0_i32_0 : i32, i32
  }
  func.func @transform_24(%arg0: i32) -> (i32, i32) {
    %c0_i32 = arith.constant 0 : i32
    %c0_i32_0 = arith.constant 0 : i32
    %c0_i32_1 = arith.constant 0 : i32
    return %c0_i32, %c0_i32_0 : i32, i32
  }
  func.func @transform_25(%arg0: i32) -> (i32, i32) {
    %c0_i32 = arith.constant 0 : i32
    %c0_i32_0 = arith.constant 0 : i32
    %c0_i32_1 = arith.constant 0 : i32
    return %c0_i32, %c0_i32_0 : i32, i32
  }
  func.func @transform_26(%arg0: i32) -> (i32, i32) {
    %c0_i32 = arith.constant 0 : i32
    %c0_i32_0 = arith.constant 0 : i32
    %c0_i32_1 = arith.constant 0 : i32
    return %c0_i32, %c0_i32_0 : i32, i32
  }
  func.func @transform_27(%arg0: i32) -> (i32, i32, i32) {
    %c0_i32 = arith.constant 0 : i32
    %c0_i32_0 = arith.constant 0 : i32
    %c0_i32_1 = arith.constant 0 : i32
    %c0_i32_2 = arith.constant 0 : i32
    return %c0_i32, %c0_i32_0, %c0_i32_1 : i32, i32, i32
  }
  func.func @transform_28(%arg0: i32) -> (i32, i32, i32) {
    %c0_i32 = arith.constant 0 : i32
    %c0_i32_0 = arith.constant 0 : i32
    %c0_i32_1 = arith.constant 0 : i32
    %c0_i32_2 = arith.constant 0 : i32
    return %c0_i32, %c0_i32_0, %c0_i32_1 : i32, i32, i32
  }
  func.func @transform_29(%arg0: i32) -> (i32, i32) {
    %c0_i32 = arith.constant 0 : i32
    %c0_i32_0 = arith.constant 0 : i32
    %c0_i32_1 = arith.constant 0 : i32
    return %c0_i32, %c0_i32_0 : i32, i32
  }
  func.func @transform_30(%arg0: i32) -> (i32, i32) {
    %c0_i32 = arith.constant 0 : i32
    %c0_i32_0 = arith.constant 0 : i32
    %c0_i32_1 = arith.constant 0 : i32
    return %c0_i32, %c0_i32_0 : i32, i32
  }
  func.func @transform_31(%arg0: i32) -> (i32, i32) {
    %c0_i32 = arith.constant 0 : i32
    %c0_i32_0 = arith.constant 0 : i32
    %c0_i32_1 = arith.constant 0 : i32
    return %c0_i32, %c0_i32_0 : i32, i32
  }
  func.func @transform_32(%arg0: i32) -> (i32, i32) {
    %c0_i32 = arith.constant 0 : i32
    %c0_i32_0 = arith.constant 0 : i32
    %c0_i32_1 = arith.constant 0 : i32
    return %c0_i32, %c0_i32_0 : i32, i32
  }
  func.func @transform_33(%arg0: i32) -> (i32, i32) {
    %c0_i32 = arith.constant 0 : i32
    %c0_i32_0 = arith.constant 0 : i32
    %c0_i32_1 = arith.constant 0 : i32
    return %c0_i32, %c0_i32_0 : i32, i32
  }
  func.func @transform_34(%arg0: i32) -> (i32, i32, i32) {
    %c0_i32 = arith.constant 0 : i32
    %c0_i32_0 = arith.constant 0 : i32
    %c0_i32_1 = arith.constant 0 : i32
    %c0_i32_2 = arith.constant 0 : i32
    return %c0_i32, %c0_i32_0, %c0_i32_1 : i32, i32, i32
  }
  func.func @transform_35(%arg0: i32) -> (i32, i32) {
    %c0_i32 = arith.constant 0 : i32
    %c0_i32_0 = arith.constant 0 : i32
    %c0_i32_1 = arith.constant 0 : i32
    return %c0_i32, %c0_i32_0 : i32, i32
  }
  func.func @transform_36(%arg0: i32) -> (i32, i32) {
    %c0_i32 = arith.constant 0 : i32
    %c0_i32_0 = arith.constant 0 : i32
    %c0_i32_1 = arith.constant 0 : i32
    return %c0_i32, %c0_i32_0 : i32, i32
  }
}

</mosaic_0001>

<bundles_post_ra>
// kernel: faceformer_forward.1
= control target key start
LH: loop header
LB: loop body
LE: loop exit
PB: predicated region body
PF: predicated region fallthrough
CT: control target
= control target key end

     0   :  { %s6903_s6 = smov 1   ;;  %s6904_s10 = smov 2   ;;  %s8128_s0 = inlined_call_operand.smem [shape: u32[37], index: -1, kind: input, shape index: {}] }
   0x1   :  { %s6954_s5 = sld [smem:[%s8128_s0]]   ;;  %s6905_s14 = smov 3  }
   0x2   :  { %s6959_s9 = sld [smem:[%s8128_s0 + %s6903_s6]]   ;;  %s6906_s18 = smov 4  }
   0x3   :  { %s6964_s13 = sld [smem:[%s8128_s0 + %s6904_s10]]   ;;  %s6907_s22 = smov 5  }
   0x4   :  { %s6969_s17 = sld [smem:[%s8128_s0 + %s6905_s14]]   ;;  %s6908_s26 = smov 6  }
   0x5   :  { %s6974_s21 = sld [smem:[%s8128_s0 + %s6906_s18]]   ;;  %s6909_s30 = smov 7  }
   0x6   :  { %s6979_s25 = sld [smem:[%s8128_s0 + %s6907_s22]]   ;;  %s6910_s4 = smov 8  }
   0x7   :  { %s6984_s29 = sld [smem:[%s8128_s0 + %s6908_s26]]   ;;  %s6911_s10 = smov 9  }
   0x8   :  { %s6989_s3 = sld [smem:[%s8128_s0 + %s6909_s30]]   ;;  %s6912_s15 = smov 10  }
   0x9   :  { %s6994_s8 = sld [smem:[%s8128_s0 + %s6910_s4]]   ;;  %s6913_s20 = smov 11  }
   0xa   :  { %s6999_s14 = sld [smem:[%s8128_s0 + %s6911_s10]]   ;;  %s6914_s26 = smov 12  }
   0xb   :  { %s7004_s19 = sld [smem:[%s8128_s0 + %s6912_s15]]   ;;  %s6915_s1 = smov 13  }
   0xc   :  { %s7009_s24 = sld [smem:[%s8128_s0 + %s6913_s20]]   ;;  %s6916_s7 = smov 14  }
   0xd   :  { %s7014_s30 = sld [smem:[%s8128_s0 + %s6914_s26]]   ;;  %s6917_s15 = smov 15  }
   0xe   :  { %s7019_s6 = sld [smem:[%s8128_s0 + %s6915_s1]]   ;;  %s6918_s22 = smov 16  }
   0xf   :  { %s7024_s12 = sld [smem:[%s8128_s0 + %s6916_s7]]   ;;  %s6919_s28 = smov 17  }
  0x10   :  { %s7029_s20 = sld [smem:[%s8128_s0 + %s6917_s15]]   ;;  %s6920_s7 = smov 18  }
  0x11   :  { %s7034_s27 = sld [smem:[%s8128_s0 + %s6918_s22]]   ;;  %s6921_s15 = smov 19  }
  0x12   :  { %s7039_s4 = sld [smem:[%s8128_s0 + %s6919_s28]]   ;;  %s6922_s22 = smov 20  }
  0x13   :  { %8149 = sst [smem:[#allocation5_spill]] %s7014_s30  ;;  %s6923_s28 = smov 21  }
  0x14   :  { %8150 = sst [smem:[#allocation6_spill]] %s7019_s6 }
  0x15   :  { %8151 = sst [smem:[#allocation7_spill]] %s7024_s12 }
  0x16   :  { %8152 = sst [smem:[#allocation8_spill]] %s7029_s20 }
  0x17   :  { %s7044_s12 = sld [smem:[%s8128_s0 + %s6920_s7]]   ;;  %s6924_s7 = smov 22  }
  0x18   :  { %s7049_s20 = sld [smem:[%s8128_s0 + %s6921_s15]]   ;;  %s6925_s15 = smov 23  }
  0x19   :  { %s7054_s6 = sld [smem:[%s8128_s0 + %s6922_s22]]   ;;  %s6926_s22 = smov 24  }
  0x1a   :  { %s7059_s30 = sld [smem:[%s8128_s0 + %s6923_s28]]   ;;  %s6927_s28 = smov 25  }
  0x1d   :  { %8153 = sst [smem:[#allocation9_spill]] %s7044_s12 }
  0x1e   :  { %8154 = sst [smem:[#allocation10_spill]] %s7049_s20 }
  0x1f   :  { %8155 = sst [smem:[#allocation11_spill]] %s7054_s6 }
  0x20   :  { %8156 = sst [smem:[#allocation12_spill]] %s7059_s30 }
  0x21   :  { %s7064_s12 = sld [smem:[%s8128_s0 + %s6924_s7]]   ;;  %s6928_s7 = smov 26  }
  0x22   :  { %s7069_s20 = sld [smem:[%s8128_s0 + %s6925_s15]]   ;;  %s6929_s15 = smov 27  }
  0x23   :  { %s7074_s6 = sld [smem:[%s8128_s0 + %s6926_s22]]   ;;  %s6930_s22 = smov 28  }
  0x24   :  { %s7079_s30 = sld [smem:[%s8128_s0 + %s6927_s28]]   ;;  %s6931_s28 = smov 29  }
  0x27   :  { %8157 = sst [smem:[#allocation13_spill]] %s7064_s12 }
  0x28   :  { %8158 = sst [smem:[#allocation14_spill]] %s7069_s20 }
  0x29   :  { %8159 = sst [smem:[#allocation15_spill]] %s7074_s6 }
  0x2a   :  { %8160 = sst [smem:[#allocation16_spill]] %s7079_s30 }
  0x2b   :  { %s7084_s12 = sld [smem:[%s8128_s0 + %s6928_s7]]   ;;  %s6932_s7 = smov 30  }
  0x2c   :  { %s7089_s20 = sld [smem:[%s8128_s0 + %s6929_s15]]   ;;  %s6933_s15 = smov 31  }
  0x2d   :  { %s7094_s6 = sld [smem:[%s8128_s0 + %s6930_s22]]   ;;  %s6934_s22 = smov 32  }
  0x2e   :  { %s7099_s30 = sld [smem:[%s8128_s0 + %s6931_s28]]   ;;  %s6935_s28 = smov 33  }
  0x31   :  { %8161 = sst [smem:[#allocation17_spill]] %s7084_s12 }
  0x32   :  { %8162 = sst [smem:[#allocation18_spill]] %s7089_s20 }
  0x33   :  { %8163 = sst [smem:[#allocation19_spill]] %s7094_s6 }
  0x34   :  { %8164 = sst [smem:[#allocation20_spill]] %s7099_s30 }
  0x35   :  { %s7104_s12 = sld [smem:[%s8128_s0 + %s6932_s7]]   ;;  %s6936_s7 = smov 34  }
  0x36   :  { %s7109_s20 = sld [smem:[%s8128_s0 + %s6933_s15]]   ;;  %s6937_s15 = smov 35  }
  0x37   :  { %s7114_s6 = sld [smem:[%s8128_s0 + %s6934_s22]]   ;;  %s6938_s22 = smov 36  }
  0x38   :  { %s7119_s30 = sld [smem:[%s8128_s0 + %s6935_s28]]  }
  0x3b   :  { %8165 = sst [smem:[#allocation21_spill]] %s7104_s12 }
  0x3c   :  { %8166 = sst [smem:[#allocation22_spill]] %s7109_s20 }
  0x3d   :  { %8167 = sst [smem:[#allocation23_spill]] %s7114_s6 }
  0x3e   :  { %s7124_s12 = sld [smem:[%s8128_s0 + %s6936_s7]]  }
  0x3f   :  { %s7129_s20 = sld [smem:[%s8128_s0 + %s6937_s15]]  }
  0x40   :  { %s7134_s6 = sld [smem:[%s8128_s0 + %s6938_s22]]  }
  0x41   :  { %78 = vsyncpa [#allocation3], 0  ;;  %v6759_v0 = vld [vmem:[%s6964_s13 + $0x40] sm:$0xff]   ;;  %vm522_vm0 = vcmask 523264   ;;  %v6761_v2 = vld [vmem:[%s6964_s13 + $0x48] sm:$0xff]   ;;  %vm1097_vm1 = vcmask 261120  }
  0x42   :  { %v6760_v1 = vld [vmem:[%s6964_s13] sm:$0xff]   ;;  %6676 = vmatprep.subr.msk.bf16.mxu0 %vm522_vm0, %v6759_v0  ;;  %v6762_v4 = vld [vmem:[%s6964_s13 + $0x8] sm:$0xff]   ;;  %v6763_v6 = vld [vmem:[%s6964_s13 + $0x50] sm:$0xff]   ;;  %vm6940_vm2 = vmmov 0   ;;  %vm1003_vm3 = vcmask 15360   ;;  %s8175_s0 = sld [smem:[#allocation5_spill]] }
  0x43   :  { %v527_v3 = vsel %vm522_vm0, %v6760_v1, 0  ;;  %v530_v5 = vsel %vm522_vm0, %v6762_v4, 0  ;;  %v6764_v7 = vld [vmem:[%s6964_s13 + $0x10] sm:$0xff]   ;;  %v6771_v8 = vld [vmem:[%s6964_s13 + $0xc0] sm:$0xff]   ;;  %v6765_v10 = vld [vmem:[%s6964_s13 + $0x58] sm:$0xff]   ;;  %s8238_s28 = sld [smem:[#allocation11_spill]] }
  0x44   :  { %6012 = vmatpush3.bf16.xpose.msra.mxu0 %v527_v3  ;;  %v6772_v9 = vld [vmem:[%s6964_s13 + $0x80] sm:$0xff]   ;;  %6684 = vmatprep.subr.msk.bf16.mxu1 %vm522_vm0, %v6771_v8  ;;  %v6775_v12 = vld [vmem:[%s6964_s13 + $0xc8] sm:$0xff]   ;;  %v533_v13 = vsel %vm522_vm0, %v6764_v7, 0  ;;  %v6766_v15 = vld [vmem:[%s6964_s13 + $0x18] sm:$0xff]   ;;  %s7664_s1 = smov 0  }
  0x45   :  { %6677 = vmatprep.subr.msk.bf16.mxu0 %vm522_vm0, %v6761_v2  ;;  %v575_v11 = vsel %vm522_vm0, %v6772_v9, 0  ;;  %v6776_v14 = vld [vmem:[%s6964_s13 + $0x88] sm:$0xff]   ;;  %v152_v16 = vld [vmem:[%s6954_s5] sm:$0xff]  ;;  %v6779_v18 = vld [vmem:[%s6964_s13 + $0xd0] sm:$0xff]   ;;  %v536_v21 = vsel %vm522_vm0, %v6766_v15, 0  ;;  %s8178_s5 = sld [smem:[#allocation6_spill]] }
  0x46   :  { %6030 = vmatpush3.bf16.xpose.msra.mxu1 %v575_v11  ;;  %v578_v17 = vsel %vm522_vm0, %v6776_v14, 0  ;;  %v7161_v19 = vpack.c.bf16 %v152_v16, %v152_v16  ;;  %v6767_v20 = vld [vmem:[%s6964_s13 + $0x60] sm:$0xff]   ;;  %v6780_v22 = vld [vmem:[%s6964_s13 + $0x90] sm:$0xff]   ;;  %v6783_v25 = vld [vmem:[%s6964_s13 + $0xd8] sm:$0xff]   ;;  %v6939_v16 = vmov 0.0  }
  0x47   :  { %6685 = vmatprep.subr.msk.bf16.mxu1 %vm522_vm0, %v6775_v12  ;;  %v6768_v23 = vld [vmem:[%s6964_s13 + $0x20] sm:$0xff]   ;;  %v581_v24 = vsel %vm522_vm0, %v6780_v22, 0  ;;  %v6769_v26 = vld [vmem:[%s6964_s13 + $0x68] sm:$0xff]   ;;  %v6784_v28 = vld [vmem:[%s6964_s13 + $0x98] sm:$0xff]  }
  0x48   :  { %6027 = vmatprep.mubr.msk.bf16.mxu0 %vm522_vm0, %v7161_v19  ;;  %6045 = vmatprep.mubr.msk.bf16.mxu1 %vm522_vm0, %v7161_v19  ;;  %v539_v27 = vsel %vm522_vm0, %v6768_v23, 0  ;;  %v6770_v29 = vld [vmem:[%s6964_s13 + $0x28] sm:$0xff]   ;;  %v584_v30 = vsel %vm522_vm0, %v6784_v28, 0  ;;  %v6787_v31 = vld [vmem:[%s6964_s13 + $0xe0] sm:$0xff]   ;;  %v6773_v32 = vld [vmem:[%s6964_s13 + $0x70] sm:$0xff]  }
  0x49   :  { %v542_v33 = vsel %vm522_vm0, %v6770_v29, 0  ;;  %v6788_v34 = vld [vmem:[%s6964_s13 + $0xa0] sm:$0xff]   ;;  %v6774_v35 = vld [vmem:[%s6964_s13 + $0x30] sm:$0xff]   ;;  %v6791_v37 = vld [vmem:[%s6964_s13 + $0xe8] sm:$0xff]  }
  0x4a   :  { %v587_v36 = vsel %vm522_vm0, %v6788_v34, 0  ;;  %v6777_v38 = vld [vmem:[%s6964_s13 + $0x78] sm:$0xff]   ;;  %v545_v39 = vsel %vm522_vm0, %v6774_v35, 0  ;;  %v6792_v40 = vld [vmem:[%s6964_s13 + $0xa8] sm:$0xff]   ;;  %v6795_v43 = vld [vmem:[%s6964_s13 + $0xf0] sm:$0xff]  }
  0x4b   :  { %v6778_v41 = vld [vmem:[%s6964_s13 + $0x38] sm:$0xff]   ;;  %v590_v42 = vsel %vm522_vm0, %v6792_v40, 0  ;;  %v6781_v45 = vld [vmem:[%s6964_s13 + $0x140] sm:$0xff]   ;;  %v6796_v46 = vld [vmem:[%s6964_s13 + $0xb0] sm:$0xff]  }
  0x4c   :  { %6014 = vmatpush3.bf16.xpose.msra.mxu0 %v530_v5  ;;  %v548_v44 = vsel %vm522_vm0, %v6778_v41, 0  ;;  %v6782_v47 = vld [vmem:[%s6964_s13 + $0x100] sm:$0xff]   ;;  %v593_v48 = vsel %vm522_vm0, %v6796_v46, 0  ;;  %v6799_v49 = vld [vmem:[%s6964_s13 + $0xf8] sm:$0xff]   ;;  %v6785_v51 = vld [vmem:[%s6964_s13 + $0x148] sm:$0xff]  }
  0x4d   :  { %6678 = vmatprep.subr.msk.bf16.mxu0 %vm522_vm0, %v6763_v6  ;;  %v623_v50 = vsel %vm522_vm0, %v6782_v47, 0  ;;  %v6800_v52 = vld [vmem:[%s6964_s13 + $0xb8] sm:$0xff]   ;;  %v6786_v53 = vld [vmem:[%s6964_s13 + $0x108] sm:$0xff]   ;;  %v6789_v57 = vld [vmem:[%s6964_s13 + $0x150] sm:$0xff]  }
  0x4e   :  { %6032 = vmatpush3.bf16.xpose.msra.mxu1 %v578_v17  ;;  %v596_v54 = vsel %vm522_vm0, %v6800_v52, 0  ;;  %v6809_v55 = vld [vmem:[%s6974_s21 + $0x4] ss:$24 sps:$4 sm:$0xff]   ;;  %v626_v56 = vsel %vm522_vm0, %v6786_v53, 0  ;;  %v6807_v58 = vld [vmem:[%s6974_s21] ss:$24 sps:$4 sm:$0xff]   ;;  %v252_v17 = vlaneseq  ;;  %vm6561_vm4 = vmpackc.low %vm1003_vm3, %vm1003_vm3 }
  0x4f   :  { %6686 = vmatprep.subr.msk.bf16.mxu1 %vm522_vm0, %v6779_v18  ;;  %v6790_v59 = vld [vmem:[%s6964_s13 + $0x110] sm:$0xff]   ;;  %v6793_v62 = vld [vmem:[%s6964_s13 + $0x158] sm:$0xff]   ;;  %v6797_v2 = vld [vmem:[%s6964_s13 + $0x160] sm:$0xff]  }
  0x50   :  { %v6812_v60 = vld [vmem:[%s6974_s21 + $0x34] ss:$24 sps:$4 sm:$0xff]   ;;  %v629_v61 = vsel %vm522_vm0, %v6790_v59, 0  ;;  %v6810_v63 = vld [vmem:[%s6974_s21 + $0x30] ss:$24 sps:$4 sm:$0xff]   ;;  %v6794_v0 = vld [vmem:[%s6964_s13 + $0x118] sm:$0xff]  }
  0x51   :  { %v632_v1 = vsel %vm522_vm0, %v6794_v0, 0  ;;  %v6798_v3 = vld [vmem:[%s6964_s13 + $0x120] sm:$0xff]   ;;  %v6801_v5 = vld [vmem:[%s6964_s13 + $0x168] sm:$0xff]   ;;  %v6803_v8 = vld [vmem:[%s6964_s13 + $0x170] sm:$0xff]   ;;  %v7258_v18 = vshrl.u32 %v252_v17, 7 }
  0x52   :  { %v635_v4 = vsel %vm522_vm0, %v6798_v3, 0  ;;  %v6802_v6 = vld [vmem:[%s6964_s13 + $0x128] sm:$0xff]   ;;  %v6804_v9 = vld [vmem:[%s6964_s13 + $0x130] sm:$0xff]   ;;  %v6805_v11 = vld [vmem:[%s6964_s13 + $0x178] sm:$0xff]  }
  0x53   :  { %v638_v7 = vsel %vm522_vm0, %v6802_v6, 0  ;;  %v6806_v12 = vld [vmem:[%s6964_s13 + $0x138] sm:$0xff]   ;;  %v6815_v14 = vld [vmem:[%s6974_s21 + $0xc] ss:$24 sps:$4 sm:$0xff]   ;;  %8168 = vst [vmem:[#allocation24_spill] sm:$0xff] %v7258_v18  ;;  %v266_v34 = vsub.s32 3, %v7258_v18 }
  0x54   :  { %6016 = vmatpush3.bf16.xpose.msra.mxu0 %v533_v13  ;;  %v644_v13 = vsel %vm522_vm0, %v6806_v12, 0  ;;  %v1174_v15 = vld [vmem:[%s7039_s4] sm:$0xff]  ;;  %v262_v35 = vsub.s32 2, %v7258_v18  ;;  %v6821_v41 = vld [vmem:[%s6974_s21 + $0x14] ss:$24 sps:$4 sm:$0xff]   ;;  %v270_v52 = vsub.s32 4, %v7258_v18 }
  0x55   :  { %6679 = vmatprep.subr.msk.bf16.mxu0 %vm522_vm0, %v6765_v10  ;;  %v641_v10 = vsel %vm522_vm0, %v6804_v9, 0  ;;  %v274_v53 = vsub.s32 5, %v7258_v18  ;;  %v999_v59 = vld [vmem:[%s6984_s29] sm:$0xff]  ;;  %v1001_v3 = vld [vmem:[%s6984_s29 + $0x10] sm:$0xff]  ;;  %v5781_v12 = vld [vmem:[%s7034_s27 + $0x8] sm:$0xff]  ;;  %vm1892_vm5 = vcmp.eq.s32.totalorder %v7258_v18, 0 }
  0x56   :  { %6034 = vmatpush3.bf16.xpose.msra.mxu1 %v581_v24  ;;  %v998_v6 = vld [vmem:[%s6959_s9] sm:$0x1]  ;;  %v5791_v17 = vld [vmem:[%s7034_s27 + $0x10] sm:$0xff]  ;;  %s8180_s9 = sld [smem:[#allocation8_spill]]  ;;  %s8181_s13 = sld [smem:[#allocation9_spill]] }
  0x57   :  { %6687 = vmatprep.subr.msk.bf16.mxu1 %vm522_vm0, %v6783_v25 }
  0x5c   :  { %6018 = vmatpush3.bf16.xpose.msra.mxu0 %v536_v21  ;;  %v258_v21 = vsub.s32 1, %v7258_v18 }
  0x5d   :  { %6680 = vmatprep.subr.msk.bf16.mxu0 %vm522_vm0, %v6767_v20  ;;  %v250_v20 = vld [vmem:[%s6969_s17] sm:$0x3f]  ;;  %s8182_s17 = sld [smem:[#allocation12_spill]] }
  0x5e   :  { %6036 = vmatpush3.bf16.xpose.msra.mxu1 %v584_v30  ;;  %v259_v23 = vrot.slane %v250_v20, %v258_v21  ;;  %v5801_v21 = vld [vmem:[%s7034_s27 + $0x18] sm:$0xff] }
  0x5f   :  { %6688 = vmatprep.subr.msk.bf16.mxu1 %vm522_vm0, %v6787_v31 }
  0x64   :  { %6020 = vmatpush3.bf16.xpose.msra.mxu0 %v539_v27 }
  0x65   :  { %6681 = vmatprep.subr.msk.bf16.mxu0 %vm522_vm0, %v6769_v26 }
  0x66   :  { %6038 = vmatpush3.bf16.xpose.msra.mxu1 %v587_v36  ;;  %v267_v36 = vrot.slane %v250_v20, %v266_v34  ;;  %v7362_v34 = vld [vmem:[%s6989_s3 + $0x8] sm:$0xff] }
  0x67   :  { %6689 = vmatprep.subr.msk.bf16.mxu1 %vm522_vm0, %v6791_v37  ;;  %v263_v37 = vrot.slane %v250_v20, %v262_v35  ;;  %8176 = vst [vmem:[#allocation31_spill] sm:$0xff] %v7362_v34  ;;  %v7365_v35 = vld [vmem:[%s7004_s19 + $0x1] ss:$0 sm:$0xff] }
  0x6c   :  { %6022 = vmatpush3.bf16.xpose.msra.mxu0 %v542_v33  ;;  %v6818_v33 = vld [vmem:[%s6974_s21 + $0x3c] ss:$24 sps:$4 sm:$0xff]  }
  0x6d   :  { %6682 = vmatprep.subr.msk.bf16.mxu0 %vm522_vm0, %v6773_v32  ;;  %v6813_v32 = vld [vmem:[%s6974_s21 + $0x8] ss:$24 sps:$4 sm:$0xff]  }
  0x6e   :  { %6040 = vmatpush3.bf16.xpose.msra.mxu1 %v590_v42 }
  0x6f   :  { %6690 = vmatprep.subr.msk.bf16.mxu1 %vm522_vm0, %v6795_v43 }
  0x74   :  { %6024 = vmatpush3.bf16.xpose.msra.mxu0 %v545_v39  ;;  %v6816_v39 = vld [vmem:[%s6974_s21 + $0x38] ss:$24 sps:$4 sm:$0xff]  }
  0x75   :  { %6683 = vmatprep.subr.msk.bf16.mxu0 %vm522_vm0, %v6777_v38 }
  0x76   :  { %6042 = vmatpush3.bf16.xpose.msra.mxu1 %v593_v48  ;;  %v6819_v48 = vld [vmem:[%s6974_s21 + $0x10] ss:$24 sps:$4 sm:$0xff]  }
  0x77   :  { %6691 = vmatprep.subr.msk.bf16.mxu1 %vm522_vm0, %v6799_v49  ;;  %v6824_v49 = vld [vmem:[%s6974_s21 + $0x44] ss:$24 sps:$4 sm:$0xff]  }
  0x7c   :  { %6026 = vmatpush3.bf16.xpose.msra.mxu0 %v548_v44 }
  0x7d   :  { %6692 = vmatprep.subr.msk.bf16.mxu0 %vm522_vm0, %v6781_v45 }
  0x7e   :  { %6044 = vmatpush3.bf16.xpose.msra.mxu1 %v596_v54  ;;  %v271_v54 = vrot.slane %v250_v20, %v270_v52  ;;  %v7416_v52 = vld [vmem:[%s6999_s14 + $0x10] sm:$0xff] }
  0x7f   :  { %878 = vmatprep.subr.bf16.mxu1 %v6809_v55  ;;  %v275_v55 = vrot.slane %v250_v20, %v274_v53  ;;  %v7419_v53 = vld [vmem:[%s8175_s0 + $0x2] ss:$0 sm:$0xff] }
  0x83   :  { %6028 = vmatmul.mubr.msk.bf16.vlgmr.msra.gmra.mrb[0].mxu0 %vm522_vm0, %v7161_v19 }
  0x84   :  { %6048 = vmatpush3.bf16.xpose.msra.mxu0 %v623_v50  ;;  %6063 = vmatprep.mubr.msk.bf16.mxu0 %vm522_vm0, %v7161_v19  ;;  %v6822_v50 = vld [vmem:[%s6974_s21 + $0x40] ss:$24 sps:$4 sm:$0xff]   ;;  %s8194_s21 = sld [smem:[#allocation7_spill]] }
  0x85   :  { %6693 = vmatprep.subr.msk.bf16.mxu0 %vm522_vm0, %v6785_v51  ;;  %6046 = vmatmul.mubr.msk.bf16.vlgmr.msra.gmra.mrb[0].mxu1 %vm522_vm0, %v7161_v19  ;;  %v6941_v51 = vmov 0.0|0.0  }
  0x86   :  { %879 = vmatpush1.bf16.xpose.msra.mxu1 %v6807_v58 }
  0x87   :  { %880 = vmatprep.subr.bf16.mxu1 %v6812_v60  ;;  %v1000_v60 = vld [vmem:[%s6984_s29 + $0x8] sm:$0xff] }
  0x8c   :  { %6050 = vmatpush3.bf16.xpose.msra.mxu0 %v626_v56 }
  0x8d   :  { %6694 = vmatprep.subr.msk.bf16.mxu0 %vm522_vm0, %v6789_v57 }
  0x8e   :  { %881 = vmatpush1.bf16.xpose.msra.mxu1 %v6810_v63 }
  0x8f   :  { %918 = vmatprep.subr.bf16.mxu1 %v6815_v14 }
  0x94   :  { %6052 = vmatpush3.bf16.xpose.msra.mxu0 %v629_v61 }
  0x95   :  { %6695 = vmatprep.subr.msk.bf16.mxu0 %vm522_vm0, %v6793_v62 }
  0x9c   :  { %6054 = vmatpush3.bf16.xpose.msra.mxu0 %v632_v1  ;;  %v6560_v1 = vpack.c.bf16 %v1000_v60, %v999_v59  ;;  %v7437_v59 = vld [vmem:[%s8178_s5 + $0x18] sm:$0xff]  ;;  %v7440_v60 = vld [vmem:[%s8178_s5 + $0x20] sm:$0xff] }
  0x9d   :  { %6696 = vmatprep.subr.msk.bf16.mxu0 %vm522_vm0, %v6797_v2 }
  0xa4   :  { %6056 = vmatpush3.bf16.xpose.msra.mxu0 %v635_v4  ;;  %v1002_v4 = vld [vmem:[%s6984_s29 + $0x18] sm:$0xff]  ;;  %s8198_s29 = sld [smem:[#allocation14_spill]] }
  0xa5   :  { %6697 = vmatprep.subr.msk.bf16.mxu0 %vm522_vm0, %v6801_v5  ;;  %v6564_v5 = vpack.c.bf16 %v1002_v4, %v1001_v3  ;;  %v7461_v3 = vld [vmem:[%s8178_s5 + $0x58] sm:$0xff]  ;;  %v7464_v4 = vld [vmem:[%s8178_s5 + $0x60] sm:$0xff] }
  0xac   :  { %6058 = vmatpush3.bf16.xpose.msra.mxu0 %v638_v7  ;;  %v1089_v7 = vld [vmem:[%s7034_s27] sm:$0xff]  ;;  %s8234_s27 = sld [smem:[#allocation23_spill]] }
  0xad   :  { %6698 = vmatprep.subr.msk.bf16.mxu0 %vm522_vm0, %v6803_v8  ;;  %v5757_v8 = vld [vmem:[%s6979_s25] ss:$0 sm:$0xff]  ;;  %s8196_s25 = sld [smem:[#allocation13_spill]] }
  0xb4   :  { %6060 = vmatpush3.bf16.xpose.msra.mxu0 %v641_v10 }
  0xb5   :  { %6699 = vmatprep.subr.msk.bf16.mxu0 %vm522_vm0, %v6805_v11 }
  0xbc   :  { %6062 = vmatpush3.bf16.xpose.msra.mxu0 %v644_v13  ;;  %v5786_v13 = vld [vmem:[%s7039_s4 + $0x8] sm:$0xff] }
  0xbd   :  { %6228 = vmatprep.subr.mxu0 %v6939_v16 }
  0xc3   :  { %6064 = vmatmul.mubr.msk.bf16.vlgmr.msra.gmra.mrb[4].mxu0 %vm522_vm0, %v7161_v19  ;;  %v7261_v19 = vsub.s32 0, %v7258_v18  ;;  %v7524_v18 = vld [vmem:[%s8182_s17 + $0x40] sm:$0xff] }
  0xc4   :  { %6230 = vmatprep.mubr.msk.f32.mxu0 %vm6940_vm2, %v6939_v16  ;;  %6229 = vmatpush3.xpose.msk.msra.mxu0 %vm1097_vm1, %v1174_v15  ;;  %8204 = vst [vmem:[#allocation52_spill] sm:$0xff] %v7524_v18  ;;  %v7545_v18 = vld [vmem:[%s8182_s17 + $0x78] sm:$0xff] }
  0xc5   :  { %6238 = vmatprep.subr.mxu0 %v6939_v16  ;;  %8169 = vst [vmem:[#allocation25_spill] sm:$0xff] %v7261_v19  ;;  %v255_v22 = vrot.slane %v250_v20, %v7261_v19  ;;  %v5796_v20 = vld [vmem:[%s7039_s4 + $0x10] sm:$0xff]  ;;  %8213 = vst [vmem:[#allocation59_spill] sm:$0xff] %v7545_v18  ;;  %v7566_v18 = vld [vmem:[%s8198_s29 + $0x20] sm:$0xff] }
  0xc6   :  { %8223 = vst [vmem:[#allocation66_spill] sm:$0xff] %v7566_v18 }
 0x156   :  { %v704_v24 = vpop.f32.mrb[0].mxu0 }
 0x157   :  { %v705_v25 = vadd.f32 %v704_v24, %v255_v22  ;;  %v706_v26 = vpop.f32.mrb[1].mxu0  ;;  %v5806_v22 = vld [vmem:[%s7039_s4 + $0x18] sm:$0xff]  ;;  %s8236_s4 = sld [smem:[#allocation10_spill]] }
 0x158   :  { %v707_v27 = vadd.f32 %v706_v26, %v259_v23  ;;  %v708_v28 = vpop.f32.mrb[2].mxu0  ;;  %v745_v38 = vpop.f32.mrb[0].mxu1  ;;  %v7338_v26 = vld [vmem:[%s7119_s30] sm:$0xff]  ;;  %s8224_s30 = sld [smem:[#allocation20_spill]] }
 0x159   :  { %v793_v29 = vpack.c.bf16 %v705_v25, %v705_v25  ;;  %v709_v30 = vpop.f32.mrb[3].mxu0  ;;  %v747_v40 = vpop.f32.mrb[1].mxu1  ;;  %v746_v44 = vadd.f32 %v745_v38, %v263_v37  ;;  %8171 = vst [vmem:[#allocation27_spill] sm:$0xff] %v7338_v26  ;;  %v7344_v28 = vld [vmem:[%s7124_s12 + $0x8] sm:$0xff]  ;;  %v7371_v37 = vld [vmem:[%s7004_s19 + $0x2] ss:$0 sm:$0xff] }
 0x15a   :  { %v794_v31 = vpack.c.bf16 %v707_v27, %v707_v27  ;;  %v748_v42 = vadd.f32 %v747_v40, %v267_v36  ;;  %v749_v43 = vpop.f32.mrb[2].mxu1  ;;  %v7341_v27 = vld [vmem:[%s7124_s12] sm:$0xff]  ;;  %v7350_v30 = vld [vmem:[%s7124_s12 + $0x18] sm:$0xff]  ;;  %v7368_v36 = vld [vmem:[%s6989_s3 + $0x10] sm:$0xff] }
 0x15b   :  { %v750_v45 = vpop.f32.mrb[3].mxu1  ;;  %v795_v47 = vpack.c.bf16 %v746_v44, %v746_v44  ;;  %v7374_v38 = vld [vmem:[%s6989_s3 + $0x18] sm:$0xff]  ;;  %v7380_v40 = vld [vmem:[%s6994_s8] sm:$0xff]  ;;  %v7392_v44 = vld [vmem:[%s6994_s8 + $0x10] sm:$0xff] }
 0x15c   :  { %910 = vmatprep.mubr.bf16.mxu1 %v794_v31  ;;  %v796_v46 = vpack.c.bf16 %v748_v42, %v748_v42  ;;  %v7353_v31 = vld [vmem:[%s7129_s20] sm:$0xff]  ;;  %8177 = vst [vmem:[#allocation32_spill] sm:$0xff] %v7380_v40  ;;  %v7386_v42 = vld [vmem:[%s6994_s8 + $0x8] sm:$0xff]  ;;  %s8229_s20 = sld [smem:[#allocation22_spill]] }
 0x15d   :  { %911 = vmatmul.mubr.bf16.vlgmr.msra.gmra.mrb[4].mxu1 %v793_v29  ;;  %v7347_v29 = vld [vmem:[%s7124_s12 + $0x10] sm:$0xff]  ;;  %8172 = vst [vmem:[#allocation28_spill] sm:$0xff] %v7353_v31  ;;  %v7389_v43 = vld [vmem:[%s7009_s24 + $0x1] ss:$0 sm:$0xff]  ;;  %v7395_v45 = vld [vmem:[%s7009_s24 + $0x2] ss:$0 sm:$0xff] }
 0x15e   :  { %919 = vmatpush1.bf16.xpose.msra.mxu1 %v6813_v32  ;;  %950 = vmatprep.mubr.bf16.mxu1 %v796_v46  ;;  %v7356_v32 = vld [vmem:[%s6989_s3] sm:$0xff]  ;;  %v7398_v46 = vld [vmem:[%s6994_s8 + $0x18] sm:$0xff]  ;;  %s8207_s3 = sld [smem:[#allocation15_spill]]  ;;  %s8209_s8 = sld [smem:[#allocation16_spill]] }
 0x15f   :  { %920 = vmatprep.subr.bf16.mxu1 %v6818_v33  ;;  %8173 = vst [vmem:[#allocation29_spill] sm:$0xff] %v7356_v32  ;;  %v7359_v33 = vld [vmem:[%s7004_s19] ss:$0 sm:$0xff]  ;;  %s8227_s12 = sld [smem:[#allocation21_spill]]  ;;  %v5783_v31 = vld [vmem:[%s8236_s4 + $0x1] ss:$0 sm:$0xff] }
 0x160   :  { %8174 = vst [vmem:[#allocation30_spill] sm:$0xff] %v7359_v33 }
 0x164   :  { %v7587_v18 = vld [vmem:[%s8209_s8 + $0x10] sm:$0xff] }
 0x165   :  { %8233 = vst [vmem:[#allocation73_spill] sm:$0xff] %v7587_v18  ;;  %v7614_v18 = vld [vmem:[%s8224_s30] sm:$0xff] }
 0x166   :  { %921 = vmatpush1.bf16.xpose.msra.mxu1 %v6816_v39  ;;  %v7377_v39 = vld [vmem:[%s7004_s19 + $0x3] ss:$0 sm:$0xff]  ;;  %s8216_s19 = sld [smem:[#allocation18_spill]]  ;;  %8245 = vst [vmem:[#allocation82_spill] sm:$0xff] %v7614_v18 }
 0x167   :  { %958 = vmatprep.subr.bf16.mxu1 %v6821_v41  ;;  %v7383_v41 = vld [vmem:[%s7009_s24] ss:$0 sm:$0xff] }
 0x168   :  { %8179 = vst [vmem:[#allocation33_spill] sm:$0xff] %v7383_v41 }
 0x16d   :  { %951 = vmatmul.mubr.bf16.vlgmr.msra.gmra.mrb[4].mxu1 %v795_v47  ;;  %v7401_v47 = vld [vmem:[%s7009_s24 + $0x3] ss:$0 sm:$0xff]  ;;  %s8220_s24 = sld [smem:[#allocation19_spill]] }
 0x16e   :  { %959 = vmatpush1.bf16.xpose.msra.mxu1 %v6819_v48  ;;  %v7404_v48 = vld [vmem:[%s6999_s14] sm:$0xff] }
 0x16f   :  { %960 = vmatprep.subr.bf16.mxu1 %v6824_v49  ;;  %v7407_v49 = vld [vmem:[%s8175_s0] ss:$0 sm:$0xff] }
 0x176   :  { %961 = vmatpush1.bf16.xpose.msra.mxu1 %v6822_v50  ;;  %v7410_v50 = vld [vmem:[%s6999_s14 + $0x8] sm:$0xff] }
 0x177   :  { %6559 = vmatprep.subr.bf16.mxu1 %v6941_v51 }
 0x196   :  { %v786_v56 = vpop.f32.mrb[4].mxu0 }
 0x197   :  { %v787_v57 = vadd.f32 %v786_v56, %v271_v54  ;;  %v788_v58 = vpop.f32.mrb[5].mxu0  ;;  %v7422_v54 = vld [vmem:[%s6999_s14 + $0x18] sm:$0xff]  ;;  %v7428_v56 = vld [vmem:[%s8178_s5] sm:$0xff]  ;;  %s8214_s14 = sld [smem:[#allocation17_spill]] }
 0x198   :  { %v789_v61 = vadd.f32 %v788_v58, %v275_v55  ;;  %v790_v62 = vpop.f32.mrb[6].mxu0  ;;  %v7425_v55 = vld [vmem:[%s8175_s0 + $0x3] ss:$0 sm:$0xff]  ;;  %v7434_v58 = vld [vmem:[%s8178_s5 + $0x10] sm:$0xff] }
 0x199   :  { %v791_v63 = vpop.f32.mrb[7].mxu0  ;;  %v797_v2 = vpack.c.bf16 %v787_v57, %v787_v57  ;;  %v7431_v57 = vld [vmem:[%s8178_s5 + $0x8] sm:$0xff]  ;;  %v7446_v62 = vld [vmem:[%s8178_s5 + $0x30] sm:$0xff] }
 0x19a   :  { %v798_v0 = vpack.c.bf16 %v789_v61, %v789_v61  ;;  %v7443_v61 = vld [vmem:[%s8178_s5 + $0x28] sm:$0xff]  ;;  %v7449_v63 = vld [vmem:[%s8178_s5 + $0x38] sm:$0xff] }
 0x19c   :  { %990 = vmatprep.mubr.bf16.mxu1 %v798_v0  ;;  %v7452_v0 = vld [vmem:[%s8178_s5 + $0x40] sm:$0xff] }
 0x19d   :  { %991 = vmatmul.mubr.bf16.vlgmr.msra.gmra.mrb[4].mxu1 %v797_v2  ;;  %v7458_v2 = vld [vmem:[%s8178_s5 + $0x50] sm:$0xff] }
 0x19e   :  { %6562 = vmatpush3.bf16.xpose.msk.msra.mxu1 %vm6561_vm4, %v6560_v1  ;;  %6220 = vmatprep.mubr.msk.f32.mxu1 %vm6940_vm2, %v6939_v16  ;;  %v7455_v1 = vld [vmem:[%s8178_s5 + $0x48] sm:$0xff] }
 0x19f   :  { %6563 = vmatprep.subr.bf16.mxu1 %v6941_v51  ;;  %v7413_v51 = vld [vmem:[%s8175_s0 + $0x1] ss:$0 sm:$0xff] }
 0x1a6   :  { %6566 = vmatpush3.bf16.xpose.msk.msra.mxu1 %vm6561_vm4, %v6564_v5  ;;  %v7467_v5 = vld [vmem:[%s8178_s5 + $0x68] sm:$0xff] }
 0x1a7   :  { %6223 = vmatprep.subr.mxu1 %v6939_v16  ;;  %8183 = vst [vmem:[#allocation34_spill] sm:$0xff] %v7467_v5 }
 0x1ad   :  { %6221 = vmatmul.mubr.msk.f32.vlgmr.msra.gmra.mrb[8].mxu1 %vm1003_vm3, %v998_v6  ;;  %v7470_v6 = vld [vmem:[%s8178_s5 + $0x70] sm:$0xff] }
 0x1ae   :  { %6224 = vmatpush3.xpose.msk.msra.mxu1 %vm1097_vm1, %v1089_v7  ;;  %6225 = vmatprep.mubr.msk.f32.mxu1 %vm6940_vm2, %v6939_v16  ;;  %8184 = vst [vmem:[#allocation35_spill] sm:$0xff] %v7470_v6  ;;  %v7473_v7 = vld [vmem:[%s8178_s5 + $0x78] sm:$0xff] }
 0x1af   :  { %6233 = vmatprep.subr.mxu1 %v6939_v16  ;;  %8185 = vst [vmem:[#allocation36_spill] sm:$0xff] %v7473_v7  ;;  %v5798_v7 = vld [vmem:[%s8238_s28 + $0x2] ss:$0 sm:$0xff] }
 0x270   :  { %v992_v9 = vpop.f32.mrb[4].mxu1 }
 0x271   :  { %v6667_v10 = vadd.f32 %v5757_v8, %v992_v9  ;;  %v994_v11 = vpop.f32.mrb[5].mxu1  ;;  %v7476_v8 = vld [vmem:[%s8180_s9] sm:$0xff] }
 0x272   :  { %v995_v14 = vpop.f32.mrb[6].mxu1  ;;  %v7479_v9 = vld [vmem:[%s8181_s13] ss:$0 sm:$0xff]  ;;  %v7485_v11 = vld [vmem:[%s8181_s13 + $0x1] ss:$0 sm:$0xff] }
 0x273   :  { %v996_v15 = vpop.f32.mrb[7].mxu1  ;;  %6226 = vmatmul.mubr.msk.f32.vlgmr.msra.gmra.mrb[10].mxu1 %vm1097_vm1, %v6667_v10  ;;  %6231 = vmatmul.mubr.msk.f32.vlgmr.msra.gmra.mrb[8].mxu0 %vm1097_vm1, %v6667_v10  ;;  %8186 = vst [vmem:[#allocation37_spill] sm:$0xff] %v7479_v9  ;;  %8188 = vst [vmem:[#allocation39_spill] sm:$0xff] %v7485_v11  ;;  %v7494_v14 = vld [vmem:[%s8180_s9 + $0x18] sm:$0xff] }
 0x274   :  { %6234 = vmatpush3.xpose.msk.msra.mxu1 %vm1097_vm1, %v5781_v12  ;;  %6239 = vmatpush3.xpose.msk.msra.mxu0 %vm1097_vm1, %v5786_v13  ;;  %v7488_v12 = vld [vmem:[%s8180_s9 + $0x10] sm:$0xff]  ;;  %v7491_v13 = vld [vmem:[%s8181_s13 + $0x2] ss:$0 sm:$0xff]  ;;  %8191 = vst [vmem:[#allocation42_spill] sm:$0xff] %v7494_v14  ;;  %v7497_v15 = vld [vmem:[%s8181_s13 + $0x3] ss:$0 sm:$0xff] }
 0x275   :  { %6235 = vmatprep.mubr.msk.f32.mxu1 %vm6940_vm2, %v6939_v16  ;;  %6240 = vmatprep.mubr.msk.f32.mxu0 %vm6940_vm2, %v6939_v16  ;;  %8189 = vst [vmem:[#allocation40_spill] sm:$0xff] %v7488_v12  ;;  %8190 = vst [vmem:[#allocation41_spill] sm:$0xff] %v7491_v13  ;;  %v7530_v14 = vld [vmem:[%s8182_s17 + $0x50] sm:$0xff]  ;;  %v7533_v13 = vld [vmem:[%s8182_s17 + $0x58] sm:$0xff] }
 0x276   :  { %6243 = vmatprep.subr.mxu1 %v6939_v16  ;;  %6248 = vmatprep.subr.mxu0 %v6939_v16  ;;  %8192 = vst [vmem:[#allocation43_spill] sm:$0xff] %v7497_v15  ;;  %v7527_v15 = vld [vmem:[%s8182_s17 + $0x48] sm:$0xff]  ;;  %8206 = vst [vmem:[#allocation54_spill] sm:$0xff] %v7530_v14  ;;  %v7536_v12 = vld [vmem:[%s8182_s17 + $0x60] sm:$0xff] }
 0x277   :  { %6236 = vmatmul.mubr.msk.f32.vlgmr.msra.gmra.mrb[12].mxu1 %vm1097_vm1, %v6667_v10  ;;  %6241 = vmatmul.mubr.msk.f32.vlgmr.msra.gmra.mrb[10].mxu0 %vm1097_vm1, %v6667_v10  ;;  %8205 = vst [vmem:[#allocation53_spill] sm:$0xff] %v7527_v15  ;;  %8208 = vst [vmem:[#allocation55_spill] sm:$0xff] %v7533_v13  ;;  %v7548_v15 = vld [vmem:[%s8194_s21] ss:$0 sm:$0xff] }
 0x278   :  { %6244 = vmatpush3.xpose.msk.msra.mxu1 %vm1097_vm1, %v5791_v17  ;;  %6249 = vmatpush3.xpose.msk.msra.mxu0 %vm1097_vm1, %v5796_v20  ;;  %v7500_v17 = vld [vmem:[%s8182_s17] sm:$0xff]  ;;  %v7503_v20 = vld [vmem:[%s8182_s17 + $0x8] sm:$0xff]  ;;  %8210 = vst [vmem:[#allocation56_spill] sm:$0xff] %v7536_v12  ;;  %8215 = vst [vmem:[#allocation60_spill] sm:$0xff] %v7548_v15 }
 0x279   :  { %6245 = vmatprep.mubr.msk.f32.mxu1 %vm6940_vm2, %v6939_v16  ;;  %6250 = vmatprep.mubr.msk.f32.mxu0 %vm6940_vm2, %v6939_v16  ;;  %8193 = vst [vmem:[#allocation44_spill] sm:$0xff] %v7500_v17  ;;  %8195 = vst [vmem:[#allocation45_spill] sm:$0xff] %v7503_v20  ;;  %v7551_v14 = vld [vmem:[%s8196_s25] ss:$0 sm:$0xff]  ;;  %v7557_v12 = vld [vmem:[%s8198_s29 + $0x8] sm:$0xff] }
 0x27a   :  { %6253 = vmatprep.subr.mxu1 %v6939_v16  ;;  %6258 = vmatprep.subr.mxu0 %v6939_v16  ;;  %8217 = vst [vmem:[#allocation61_spill] sm:$0xff] %v7551_v14  ;;  %v7554_v13 = vld [vmem:[%s8198_s29] sm:$0xff]  ;;  %8219 = vst [vmem:[#allocation63_spill] sm:$0xff] %v7557_v12  ;;  %v7569_v20 = vld [vmem:[%s8198_s29 + $0x28] sm:$0xff] }
 0x27b   :  { %6246 = vmatmul.mubr.msk.f32.vlgmr.msra.gmra.mrb[14].mxu1 %vm1097_vm1, %v6667_v10  ;;  %6251 = vmatmul.mubr.msk.f32.vlgmr.msra.gmra.mrb[12].mxu0 %vm1097_vm1, %v6667_v10  ;;  %8218 = vst [vmem:[#allocation62_spill] sm:$0xff] %v7554_v13  ;;  %8225 = vst [vmem:[#allocation67_spill] sm:$0xff] %v7569_v20  ;;  %v7572_v14 = vld [vmem:[%s8198_s29 + $0x30] sm:$0xff]  ;;  %v7575_v13 = vld [vmem:[%s8198_s29 + $0x38] sm:$0xff] }
 0x27c   :  { %6254 = vmatpush3.xpose.msk.msra.mxu1 %vm1097_vm1, %v5801_v21  ;;  %6259 = vmatpush3.xpose.msk.msra.mxu0 %vm1097_vm1, %v5806_v22  ;;  %v7506_v21 = vld [vmem:[%s8182_s17 + $0x10] sm:$0xff]  ;;  %v7509_v22 = vld [vmem:[%s8182_s17 + $0x18] sm:$0xff]  ;;  %8226 = vst [vmem:[#allocation68_spill] sm:$0xff] %v7572_v14  ;;  %8228 = vst [vmem:[#allocation69_spill] sm:$0xff] %v7575_v13 }
 0x27d   :  { %6255 = vmatprep.mubr.msk.f32.mxu1 %vm6940_vm2, %v6939_v16  ;;  %6260 = vmatprep.mubr.msk.f32.mxu0 %vm6940_vm2, %v6939_v16  ;;  %8197 = vst [vmem:[#allocation46_spill] sm:$0xff] %v7506_v21  ;;  %8199 = vst [vmem:[#allocation47_spill] sm:$0xff] %v7509_v22  ;;  %v7539_v22 = vld [vmem:[%s8182_s17 + $0x68] sm:$0xff]  ;;  %v7542_v21 = vld [vmem:[%s8182_s17 + $0x70] sm:$0xff] }
 0x27e   :  { %8211 = vst [vmem:[#allocation57_spill] sm:$0xff] %v7539_v22  ;;  %8212 = vst [vmem:[#allocation58_spill] sm:$0xff] %v7542_v21  ;;  %v7560_v22 = vld [vmem:[%s8198_s29 + $0x10] sm:$0xff]  ;;  %v7563_v21 = vld [vmem:[%s8198_s29 + $0x18] sm:$0xff] }
 0x27f   :  { %6256 = vmatmul.mubr.msk.f32.vlgmr.msra.gmra.mrb[16].mxu1 %vm1097_vm1, %v6667_v10  ;;  %6261 = vmatmul.mubr.msk.f32.vlgmr.msra.gmra.mrb[14].mxu0 %vm1097_vm1, %v6667_v10  ;;  %v7482_v10 = vld [vmem:[%s8180_s9 + $0x8] sm:$0xff]  ;;  %8221 = vst [vmem:[#allocation64_spill] sm:$0xff] %v7560_v22  ;;  %8222 = vst [vmem:[#allocation65_spill] sm:$0xff] %v7563_v21  ;;  %v7578_v12 = vld [vmem:[%s8207_s3] ss:$0 sm:$0xff] }
 0x280   :  { %v7330_v23 = vpop.f32.mrb[8].mxu1  ;;  %8187 = vst [vmem:[#allocation38_spill] sm:$0xff] %v7482_v10  ;;  %8230 = vst [vmem:[#allocation70_spill] sm:$0xff] %v7578_v12  ;;  %v7581_v22 = vld [vmem:[%s8209_s8] sm:$0xff]  ;;  %v7584_v21 = vld [vmem:[%s8209_s8 + $0x8] sm:$0xff] }
 0x281   :  { %8170 = vst [vmem:[#allocation26_spill] sm:$0xff] %v7330_v23  ;;  %v1896_v24 = vrot.slane %v7330_v23, %v7261_v19  ;;  %v6222_v25 = vpop.f32.mrb[9].mxu1  ;;  %v7518_v19 = vld [vmem:[%s8182_s17 + $0x30] sm:$0xff]  ;;  %v7521_v23 = vld [vmem:[%s8182_s17 + $0x38] sm:$0xff]  ;;  %8231 = vst [vmem:[#allocation71_spill] sm:$0xff] %v7581_v22 }
 0x282   :  { %v7515_v25 = vld [vmem:[%s8182_s17 + $0x28] sm:$0xff]  ;;  %8202 = vst [vmem:[#allocation50_spill] sm:$0xff] %v7518_v19  ;;  %8203 = vst [vmem:[#allocation51_spill] sm:$0xff] %v7521_v23  ;;  %v7590_v20 = vld [vmem:[%s8209_s8 + $0x18] sm:$0xff] }
 0x283   :  { %v7335_v16 = vsel %vm1892_vm5, %v1896_v24, 0.0   ;;  %v7512_v24 = vld [vmem:[%s8182_s17 + $0x20] sm:$0xff]  ;;  %8201 = vst [vmem:[#allocation49_spill] sm:$0xff] %v7515_v25  ;;  %8232 = vst [vmem:[#allocation72_spill] sm:$0xff] %v7584_v21  ;;  %v7626_v25 = vld [vmem:[%s8229_s20 + $0x8] sm:$0xff] }
 0x284   :  { %8200 = vst [vmem:[#allocation48_spill] sm:$0xff] %v7512_v24  ;;  %8235 = vst [vmem:[#allocation74_spill] sm:$0xff] %v7590_v20  ;;  %v7593_v14 = vld [vmem:[%s8214_s14] ss:$0 sm:$0xff]  ;;  %v7599_v17 = vld [vmem:[%s8216_s19 + $0x1] ss:$0 sm:$0xff] }
 0x285   :  { %8237 = vst [vmem:[#allocation75_spill] sm:$0xff] %v7593_v14  ;;  %v7596_v13 = vld [vmem:[%s8216_s19] ss:$0 sm:$0xff]  ;;  %8240 = vst [vmem:[#allocation77_spill] sm:$0xff] %v7599_v17  ;;  %v7602_v12 = vld [vmem:[%s8216_s19 + $0x2] ss:$0 sm:$0xff] }
 0x286   :  { %8239 = vst [vmem:[#allocation76_spill] sm:$0xff] %v7596_v13  ;;  %8241 = vst [vmem:[#allocation78_spill] sm:$0xff] %v7602_v12  ;;  %v7605_v22 = vld [vmem:[%s8220_s24] ss:$0 sm:$0xff]  ;;  %v7608_v23 = vld [vmem:[%s8220_s24 + $0x1] ss:$0 sm:$0xff] }
 0x287   :  { %8242 = vst [vmem:[#allocation79_spill] sm:$0xff] %v7605_v22  ;;  %8243 = vst [vmem:[#allocation80_spill] sm:$0xff] %v7608_v23  ;;  %v7611_v21 = vld [vmem:[%s8220_s24 + $0x2] ss:$0 sm:$0xff]  ;;  %v7617_v20 = vld [vmem:[%s8224_s30 + $0x8] sm:$0xff] }
 0x288   :  { %8244 = vst [vmem:[#allocation81_spill] sm:$0xff] %v7611_v21  ;;  %8246 = vst [vmem:[#allocation83_spill] sm:$0xff] %v7617_v20  ;;  %v7620_v14 = vld [vmem:[%s8227_s12] ss:$0 sm:$0xff]  ;;  %v7629_v17 = vld [vmem:[%s8229_s20 + $0x10] sm:$0xff] }
 0x289   :  { %8247 = vst [vmem:[#allocation84_spill] sm:$0xff] %v7620_v14  ;;  %v7623_v19 = vld [vmem:[%s8229_s20] sm:$0xff]  ;;  %8249 = vst [vmem:[#allocation86_spill] sm:$0xff] %v7626_v25  ;;  %v7632_v12 = vld [vmem:[%s8229_s20 + $0x18] sm:$0xff] }
 0x28a   :  { %8248 = vst [vmem:[#allocation85_spill] sm:$0xff] %v7623_v19  ;;  %8250 = vst [vmem:[#allocation87_spill] sm:$0xff] %v7629_v17  ;;  %v7635_v24 = vld [vmem:[%s8234_s27] sm:$0x1]  ;;  %v5788_v25 = vld [vmem:[%s8238_s28 + $0x1] ss:$0 sm:$0xff] }
 0x28b   :  { %8251 = vst [vmem:[#allocation88_spill] sm:$0xff] %v7632_v12  ;;  %8252 = vst [vmem:[#allocation89_spill] sm:$0xff] %v7635_v24  ;;  %v5775_v23 = vld [vmem:[%s8236_s4] ss:$0 sm:$0xff]  ;;  %v5793_v15 = vld [vmem:[%s8236_s4 + $0x2] ss:$0 sm:$0xff] }
 0x28c   :  { %v5778_v21 = vld [vmem:[%s8238_s28] ss:$0 sm:$0xff] }
 0x346   :  { %v1170_v18 = vpop.f32.mrb[10].mxu1  ;;  %v1251_v11 = vpop.f32.mrb[8].mxu0 }
 0x347   :  { %v7639_v20 = vadd.f32 %v5775_v23, %v1170_v18  ;;  %v7641_v10 = vadd.f32 %v5778_v21, %v1251_v11  ;;  %v6227_v14 = vpop.f32.mrb[11].mxu1  ;;  %v6232_v19 = vpop.f32.mrb[9].mxu0 }
 0x349   :  { %8253 = vst [vmem:[#allocation90_spill] sm:$0xff] %v7639_v20  ;;  %8254 = vst [vmem:[#allocation91_spill] sm:$0xff] %v7641_v10  ;;  %v5803_v10 = vld [vmem:[%s8236_s4 + $0x3] ss:$0 sm:$0xff] }
 0x34a   :  { %v1334_v17 = vpop.f32.mrb[12].mxu1  ;;  %v1417_v12 = vpop.f32.mrb[10].mxu0  ;;  %v5808_v20 = vld [vmem:[%s8238_s28 + $0x3] ss:$0 sm:$0xff] }
 0x34b   :  { %v7645_v9 = vadd.f32 %v5783_v31, %v1334_v17  ;;  %v7647_v24 = vadd.f32 %v5788_v25, %v1417_v12  ;;  %v6237_v22 = vpop.f32.mrb[13].mxu1  ;;  %v6242_v13 = vpop.f32.mrb[11].mxu0 }
 0x34e   :  { %v1500_v18 = vpop.f32.mrb[14].mxu1  ;;  %v1583_v23 = vpop.f32.mrb[12].mxu0 }
 0x34f   :  { %v7651_v11 = vadd.f32 %v5793_v15, %v1500_v18  ;;  %v7653_v14 = vadd.f32 %v5798_v7, %v1583_v23  ;;  %v6247_v19 = vpop.f32.mrb[15].mxu1  ;;  %v6252_v21 = vpop.f32.mrb[13].mxu0 }
 0x352   :  { %v1666_v6 = vpop.f32.mrb[16].mxu1  ;;  %v1749_v5 = vpop.f32.mrb[14].mxu0 }
 0x353   :  { %v7657_v31 = vadd.f32 %v5803_v10, %v1666_v6  ;;  %v7659_v12 = vadd.f32 %v5808_v20, %v1749_v5  ;;  %v6257_v17 = vpop.f32.mrb[17].mxu1  ;;  %v6262_v13 = vpop.f32.mrb[15].mxu0 }
 0x354 LB: > { %v8147_v7 = vmov 0.0   ;;  %vm6943_vm6 = vmmov 0   ;;  %v8255_v40 = vld [vmem:[#allocation32_spill] sm:$0xff]  ;;  %v8256_v26 = vld [vmem:[#allocation27_spill] sm:$0xff]  ;;  %v8257_v32 = vld [vmem:[#allocation29_spill] sm:$0xff]  ;;  %vm2621_vm7 = vcmask 64512   ;;  %s6901_s1 = sphi %s7664_s1, %s5635_s1   ;;  %v6897_v16 = vphi %v7335_v16, %v5642_v16  }
 0x355   : > { %6263 = vmatprep.subr.mxu0 %v8147_v7  ;;  %6265 = vmatprep.mubr.msk.f32.mxu0 %vm6943_vm6, %v8147_v7  ;;  %v7679_v5 = vadd.f32 %v6897_v16, %v8256_v26  ;;  %v8258_v41 = vld [vmem:[#allocation33_spill] sm:$0xff]  ;;  %v8259_v33 = vld [vmem:[#allocation30_spill] sm:$0xff]  ;;  %v8260_v34 = vld [vmem:[#allocation31_spill] sm:$0xff]  ;;  %vm5541_vm11 = vcmask 130048  }
 0x356   : > { %6264 = vmatpush3.xpose.msk.msra.mxu0 %vm1097_vm1, %v8255_v40  ;;  %6278 = vmatprep.subr.mxu1 %v8147_v7  ;;  %vm7791_vm8 = vmpackc.low %vm2621_vm7, %vm2621_vm7 }
 0x357   : > { %6268 = vmatprep.subr.mxu0 %v8147_v7  ;;  %6279 = vmatpush3.xpose.msk.msra.mxu1 %vm1097_vm1, %v7410_v50  ;;  %vm8051_vm9 = vmpackc.low %vm1097_vm1, %vm1097_vm1 }
 0x358   : > { %6280 = vmatprep.mubr.msk.f32.mxu1 %vm6943_vm6, %v8147_v7  ;;  %6288 = vmatprep.subr.mxu1 %v8147_v7  ;;  %vm6649_vm10 = vmpackc.low %vm522_vm0, %vm522_vm0 }
 0x359   : > { %6266 = vmatmul.mubr.msk.f32.vlgmr.msra.gmra.mrb[0].mxu0 %vm1097_vm1, %v7679_v5  ;;  %vm6661_vm12 = vmpackc.low %vm5541_vm11, %vm5541_vm11 }
 0x35a   : > { %6269 = vmatpush3.xpose.msk.msra.mxu0 %vm1097_vm1, %v7404_v48  ;;  %6270 = vmatprep.mubr.msk.f32.mxu0 %vm6943_vm6, %v8147_v7 }
 0x35b   : > { %6273 = vmatprep.subr.mxu0 %v8147_v7  ;;  %6281 = vmatmul.mubr.msk.f32.vlgmr.msra.gmra.mrb[0].mxu1 %vm1097_vm1, %v7679_v5 }
 0x35c   : > { %6289 = vmatpush3.xpose.msk.msra.mxu1 %vm1097_vm1, %v7416_v52  ;;  %6290 = vmatprep.mubr.msk.f32.mxu1 %vm6943_vm6, %v8147_v7 }
 0x35d   : > { %6271 = vmatmul.mubr.msk.f32.vlgmr.msra.gmra.mrb[2].mxu0 %vm1097_vm1, %v7679_v5  ;;  %6298 = vmatprep.subr.mxu1 %v8147_v7 }
 0x35e   : > { %6274 = vmatpush3.xpose.msk.msra.mxu0 %vm1097_vm1, %v7386_v42  ;;  %6275 = vmatprep.mubr.msk.f32.mxu0 %vm6943_vm6, %v8147_v7 }
 0x35f   : > { %6283 = vmatprep.subr.mxu0 %v8147_v7  ;;  %6291 = vmatmul.mubr.msk.f32.vlgmr.msra.gmra.mrb[2].mxu1 %vm1097_vm1, %v7679_v5 }
 0x360   : > { %6299 = vmatpush3.xpose.msk.msra.mxu1 %vm1097_vm1, %v7422_v54  ;;  %6300 = vmatprep.mubr.msk.f32.mxu1 %vm6943_vm6, %v8147_v7 }
 0x361   : > { %6276 = vmatmul.mubr.msk.f32.vlgmr.msra.gmra.mrb[4].mxu0 %vm1097_vm1, %v7679_v5  ;;  %6308 = vmatprep.subr.mxu1 %v8147_v7 }
 0x362   : > { %6284 = vmatpush3.xpose.msk.msra.mxu0 %vm1097_vm1, %v7392_v44  ;;  %6285 = vmatprep.mubr.msk.f32.mxu0 %vm6943_vm6, %v8147_v7 }
 0x363   : > { %6293 = vmatprep.subr.mxu0 %v8147_v7  ;;  %6301 = vmatmul.mubr.msk.f32.vlgmr.msra.gmra.mrb[4].mxu1 %vm1097_vm1, %v7679_v5 }
 0x364   : > { %6310 = vmatprep.mubr.msk.f32.mxu1 %vm6943_vm6, %v8147_v7 }
 0x365   : > { %6286 = vmatmul.mubr.msk.f32.vlgmr.msra.gmra.mrb[6].mxu0 %vm1097_vm1, %v7679_v5 }
 0x366   : > { %6294 = vmatpush3.xpose.msk.msra.mxu0 %vm1097_vm1, %v7398_v46  ;;  %6295 = vmatprep.mubr.msk.f32.mxu0 %vm6943_vm6, %v8147_v7 }
 0x367   : > { %6303 = vmatprep.subr.mxu0 %v8147_v7 }
 0x369   : > { %6296 = vmatmul.mubr.msk.f32.vlgmr.msra.gmra.mrb[8].mxu0 %vm1097_vm1, %v7679_v5 }
 0x36a   : > { %6304 = vmatpush3.xpose.msk.msra.mxu0 %vm1097_vm1, %v8257_v32  ;;  %6305 = vmatprep.mubr.msk.f32.mxu0 %vm6943_vm6, %v8147_v7 }
 0x36b   : > { %6313 = vmatprep.subr.mxu0 %v8147_v7 }
 0x36d   : > { %6306 = vmatmul.mubr.msk.f32.vlgmr.msra.gmra.mrb[10].mxu0 %vm1097_vm1, %v7679_v5 }
 0x36e   : > { %6315 = vmatprep.mubr.msk.f32.mxu0 %vm6943_vm6, %v8147_v7 }
 0x42c   : > { %v1985_v6 = vpop.f32.mrb[0].mxu0 }
 0x42d   : > { %v1986_v10 = vadd.f32 %v8258_v41, %v1985_v6  ;;  %v6267_v15 = vpop.f32.mrb[1].mxu0 }
 0x42e   : > { %v2222_v20 = vpop.f32.mrb[0].mxu1 }
 0x42f   : > { %6309 = vmatpush3.xpose.msk.msra.mxu1 %vm2621_vm7, %v1986_v10  ;;  %v6282_v22 = vpop.f32.mrb[1].mxu1 }
 0x430   : > { %v2064_v25 = vpop.f32.mrb[2].mxu0  ;;  %6318 = vmatprep.subr.mxu1 %v8147_v7 }
 0x431   : > { %v2065_v18 = vadd.f32 %v7407_v49, %v2064_v25  ;;  %v6272_v23 = vpop.f32.mrb[3].mxu0 }
 0x432   : > { %v7749_v19 = vpop.f32.mrb[2].mxu1 }
 0x433   : > { %6314 = vmatpush3.msra.mxu0 %v2065_v18  ;;  %v6292_v21 = vpop.f32.mrb[3].mxu1  ;;  %v2223_v18 = vadd.f32 %v7413_v51, %v2222_v20 }
 0x434   : > { %v2143_v17 = vpop.f32.mrb[4].mxu0  ;;  %6323 = vmatprep.subr.mxu0 %v8147_v7 }
 0x435   : > { %v6277_v13 = vpop.f32.mrb[5].mxu0 }
 0x436   : > { %v7752_v6 = vpop.f32.mrb[4].mxu1 }
 0x437   : > { %v6302_v15 = vpop.f32.mrb[5].mxu1 }
 0x438   : > { %v7754_v26 = vpop.f32.mrb[6].mxu0 }
 0x439   : > { %v6287_v10 = vpop.f32.mrb[7].mxu0 }
 0x43c   : > { %v7756_v22 = vpop.f32.mrb[8].mxu0 }
 0x43d   : > { %v6297_v32 = vpop.f32.mrb[9].mxu0 }
 0x440   : > { %v2617_v40 = vpop.f32.mrb[10].mxu0 }
 0x441   : > { %v2618_v25 = vadd.f32 %v8259_v33, %v2617_v40  ;;  %v6307_v23 = vpop.f32.mrb[11].mxu0 }
 0x443   : > { %6311 = vmatmul.mubr.msk.f32.vlgmr.msra.gmra.mrb[6].mxu1 %vm2621_vm7, %v2618_v25 }
 0x444   : > { %6319 = vmatpush3.xpose.msk.msra.mxu1 %vm1097_vm1, %v8260_v34  ;;  %6320 = vmatprep.mubr.msk.f32.mxu1 %vm6943_vm6, %v8147_v7 }
 0x445   : > { %6328 = vmatprep.subr.mxu1 %v8147_v7 }
 0x447   : > { %6321 = vmatmul.mubr.msk.f32.vlgmr.msra.gmra.mrb[8].mxu1 %vm1097_vm1, %v7679_v5 }
 0x448   : > { %6329 = vmatpush3.msra.mxu1 %v2223_v18  ;;  %6330 = vmatprep.mubr.msk.f32.mxu1 %vm6943_vm6, %v8147_v7 }
 0x516   : > { %v2694_v32 = vpop.f32.mrb[6].mxu1 }
 0x517   : > { %v2698_v40 = vmul.f32 0.35355338, %v2694_v32  ;;  %v6312_v21 = vpop.f32.mrb[7].mxu1 }
 0x518   : > { %v2144_v21 = vadd.f32 %v7389_v43, %v2143_v17 }
 0x519   : > { %v2699_v20 = vadd.f32 %v2698_v40, %v7341_v27 }
 0x51a   : > { %v2859_v18 = vpop.f32.mrb[8].mxu1 }
 0x51b   : > { %v2700_v13 = vsel %vm2621_vm7, %v2699_v20, -inf  ;;  %v6322_v34 = vpop.f32.mrb[9].mxu1  ;;  %v2860_v40 = vadd.f32 %v7365_v35, %v2859_v18 }
 0x51c   : > { %2701 = vmax.xlane.f32.xlu0 %v2700_v13 }
 0x5a9   : > { %v2702_v15 = vpop.xlane.xlu0 %2701 }
 0x5aa   : > { %v2703_v10 = vsub.f32 %v2699_v20, %v2702_v15  ;;  %v8261_v20 = vmov 0.0  }
 0x5ac   : > { %v2704_v25 = vmul.f32 1.442695, %v2703_v10 }
 0x5ae   : > { %6825 = vpow2.f32 %v2704_v25 }
 0x5b8   : > { %v6826_v23 = vpop.eup %6825 }
 0x5b9   : > { %v2706_v33 = vsel %vm2621_vm7, %v6826_v23, 0.0 }
 0x5ba   : > { %2707 = vadd.xlane.f32.xlu0 %v2706_v33 }
 0x647   : > { %v2708_v41 = vpop.xlane.xlu0 %2707 }
 0x648   : > { %6827 = vrcp.f32 %v2708_v41 }
 0x652   : > { %v6828_v7 = vpop.eup %6827 }
 0x653   : > { %v2710_v32 = vmul.f32 %v6828_v7, %v6826_v23 }
 0x655   : > { %6316 = vmatmul.mubr.msk.f32.vlgmr.msra.gmra.mrb[12].mxu0 %vm2621_vm7, %v2710_v32 }
 0x656   : > { %6324 = vmatpush3.xpose.msk.msra.mxu0 %vm2621_vm7, %v2144_v21  ;;  %6325 = vmatprep.mubr.msk.f32.mxu0 %vm6943_vm6, %v8261_v20  ;;  %v6944_v21 = vmov 0.0|0.0  }
 0x657   : > { %6575 = vmatprep.subr.bf16.mxu1 %v6944_v21  ;;  %6567 = vmatprep.subr.bf16.mxu0 %v6944_v21 }
 0x659   : > { %6326 = vmatmul.mubr.msk.f32.vlgmr.msra.gmra.mrb[14].mxu0 %vm2621_vm7, %v2860_v40  ;;  %v6568_v40 = vpack.c.bf16 %v7443_v61, %v7440_v60 }
 0x65a   : > { %6341 = vmatprep.mubr.msk.f32.mxu0 %vm6943_vm6, %v8261_v20 }
 0x65b   : > { %6570 = vmatpush3.bf16.xpose.msk.msra.mxu0 %vm7791_vm8, %v6568_v40 }
 0x65c   : > { %6571 = vmatprep.subr.bf16.mxu0 %v6944_v21 }
 0x728   : > { %v2780_v33 = vpop.f32.mrb[12].mxu0 }
 0x729   : > { %v6317_v34 = vpop.f32.mrb[13].mxu0 }
 0x72a   : > { %v8297_v34 = vld [vmem:[#allocation62_spill] sm:$0xff] }
 0x72c   : > { %v2935_v41 = vpop.f32.mrb[14].mxu0 }
 0x72d   : > { %v2939_v7 = vmul.f32 0.35355338, %v2935_v41  ;;  %v6327_v13 = vpop.f32.mrb[15].mxu0  ;;  %v6572_v41 = vpack.c.bf16 %v7449_v63, %v7446_v62 }
 0x72f   : > { %v2940_v17 = vadd.f32 %v7344_v28, %v2939_v7  ;;  %6574 = vmatpush3.bf16.xpose.msk.msra.mxu0 %vm7791_vm8, %v6572_v41 }
 0x730   : > { %6355 = vmatprep.subr.mxu0 %v8261_v20 }
 0x731   : > { %v2941_v15 = vsel %vm2621_vm7, %v2940_v17, -inf }
 0x732   : > { %2942 = vmax.xlane.f32.xlu1 %v2941_v15 }
 0x7bf   : > { %v2943_v10 = vpop.xlane.xlu1 %2942 }
 0x7c0   : > { %v2944_v25 = vsub.f32 %v2940_v17, %v2943_v10  ;;  %v6576_v17 = vpack.c.bf16 %v7431_v57, %v7428_v56  ;;  %v6580_v10 = vpack.c.bf16 %v7437_v59, %v7434_v58 }
 0x7c2   : > { %v2945_v23 = vmul.f32 1.442695, %v2944_v25  ;;  %v2302_v25 = vadd.f32 %v7395_v45, %v7754_v26  ;;  %v2381_v26 = vadd.f32 %v7419_v53, %v7749_v19 }
 0x7c4   : > { %6829 = vpow2.f32 %v2945_v23 }
 0x7ce   : > { %v6830_v18 = vpop.eup %6829 }
 0x7cf   : > { %v2947_v32 = vsel %vm2621_vm7, %v6830_v18, 0.0 }
 0x7d0   : > { %2948 = vadd.xlane.f32.xlu1 %v2947_v32 }
 0x85d   : > { %v2949_v7 = vpop.xlane.xlu1 %2948 }
 0x85e   : > { %6831 = vrcp.f32 %v2949_v7 }
 0x868   : > { %v6832_v13 = vpop.eup %6831 }
 0x869   : > { %v2951_v15 = vmul.f32 %v6832_v13, %v6830_v18 }
 0x86b   : > { %6331 = vmatmul.mubr.msk.f32.vlgmr.msra.gmra.mrb[10].mxu1 %vm2621_vm7, %v2951_v15 }
 0x86c   : > { %6578 = vmatpush3.bf16.xpose.msk.msra.mxu1 %vm7791_vm8, %v6576_v17  ;;  %6352 = vmatprep.mubr.msk.f32.mxu1 %vm6943_vm6, %v8261_v20 }
 0x86d   : > { %6579 = vmatprep.subr.bf16.mxu1 %v6944_v21 }
 0x874   : > { %6582 = vmatpush3.bf16.xpose.msk.msra.mxu1 %vm7791_vm8, %v6580_v10 }
 0x875   : > { %6360 = vmatprep.subr.mxu1 %v8261_v20 }
 0x87b   : > { %6353 = vmatmul.mubr.msk.f32.vlgmr.msra.gmra.mrb[12].mxu1 %vm2621_vm7, %v2780_v33 }
 0x87c   : > { %6361 = vmatpush3.xpose.msk.msra.mxu1 %vm2621_vm7, %v2302_v25  ;;  %6362 = vmatprep.mubr.msk.f32.mxu1 %vm6943_vm6, %v8261_v20 }
 0x87d   : > { %6583 = vmatprep.subr.bf16.mxu1 %v6944_v21 }
 0x93e   : > { %v3021_v23 = vpop.f32.mrb[10].mxu1 }
 0x93f   : > { %v6332_v18 = vpop.f32.mrb[11].mxu1  ;;  %6342 = vmatmul.mubr.msk.f32.vlgmr.msra.gmra.mrb[16].mxu0 %vm2621_vm7, %v3021_v23 }
 0x940   : > { %6356 = vmatpush3.xpose.msk.msra.mxu0 %vm1097_vm1, %v7368_v36  ;;  %6357 = vmatprep.mubr.msk.f32.mxu0 %vm6943_vm6, %v8261_v20 }
 0x941   : > { %6365 = vmatprep.subr.mxu0 %v8261_v20 }
 0x943   : > { %6358 = vmatmul.mubr.msk.f32.vlgmr.msra.gmra.mrb[18].mxu0 %vm1097_vm1, %v7679_v5 }
 0x944   : > { %6366 = vmatpush3.msra.mxu0 %v2381_v26  ;;  %6367 = vmatprep.mubr.msk.f32.mxu0 %vm6943_vm6, %v8261_v20 }
 0x945   : > { %6381 = vmatprep.subr.mxu0 %v8261_v20 }
 0x94e   : > { %v3191_v33 = vpop.f32.mrb[12].mxu1 }
 0x94f   : > { %v6354_v32 = vpop.f32.mrb[13].mxu1 }
 0xa12   : > { %v3106_v40 = vpop.f32.mrb[16].mxu0 }
 0xa13   : > { %v3192_v41 = vadd.f32 %v3191_v33, %v3106_v40  ;;  %v6343_v7 = vpop.f32.mrb[17].mxu0 }
 0xa16   : > { %v3270_v13 = vpop.f32.mrb[18].mxu0 }
 0xa17   : > { %v3271_v17 = vadd.f32 %v7371_v37, %v3270_v13  ;;  %v6359_v15 = vpop.f32.mrb[19].mxu0  ;;  %v6584_v13 = vpack.c.bf16 %v7455_v1, %v7452_v0 }
 0xa19   : > { %6363 = vmatmul.mubr.msk.f32.vlgmr.msra.gmra.mrb[14].mxu1 %vm2621_vm7, %v3271_v17  ;;  %v6588_v17 = vpack.c.bf16 %v7461_v3, %v7458_v2 }
 0xa1a   : > { %6378 = vmatprep.mubr.msk.f32.mxu1 %vm6943_vm6, %v8261_v20  ;;  %6586 = vmatpush3.bf16.xpose.msk.msra.mxu1 %vm7791_vm8, %v6584_v13 }
 0xa1b   : > { %6587 = vmatprep.subr.bf16.mxu1 %v6944_v21 }
 0xa22   : > { %6590 = vmatpush3.bf16.xpose.msk.msra.mxu1 %vm7791_vm8, %v6588_v17 }
 0xa23   : > { %6407 = vmatprep.subr.mxu1 %v8261_v20 }
 0xaec   : > { %v3346_v19 = vpop.f32.mrb[14].mxu1 }
 0xaed   : > { %v3350_v10 = vmul.f32 0.35355338, %v3346_v19  ;;  %v6364_v25 = vpop.f32.mrb[15].mxu1 }
 0xaee   : > { %v2460_v25 = vadd.f32 %v7401_v47, %v7756_v22 }
 0xaef   : > { %v3351_v23 = vadd.f32 %v7347_v29, %v3350_v10 }
 0xaf1   : > { %v3352_v18 = vsel %vm2621_vm7, %v3351_v23, -inf }
 0xaf2   : > { %3353 = vmax.xlane.f32.xlu0 %v3352_v18 }
 0xb7f   : > { %v3354_v26 = vpop.xlane.xlu0 %3353 }
 0xb80   : > { %v3355_v33 = vsub.f32 %v3351_v23, %v3354_v26 }
 0xb82   : > { %v3356_v32 = vmul.f32 1.442695, %v3355_v33 }
 0xb84   : > { %6833 = vpow2.f32 %v3356_v32  ;;  %v2539_v32 = vadd.f32 %v7425_v55, %v7752_v6 }
 0xb8e   : > { %v6834_v40 = vpop.eup %6833 }
 0xb8f   : > { %v3358_v7 = vsel %vm2621_vm7, %v6834_v40, 0.0 }
 0xb90   : > { %3359 = vadd.xlane.f32.xlu1 %v3358_v7 }
 0xc1d   : > { %v3360_v15 = vpop.xlane.xlu1 %3359 }
 0xc1e   : > { %6835 = vrcp.f32 %v3360_v15 }
 0xc28   : > { %v6836_v19 = vpop.eup %6835 }
 0xc29   : > { %v3362_v10 = vmul.f32 %v6836_v19, %v6834_v40 }
 0xc2b   : > { %6368 = vmatmul.mubr.msk.f32.vlgmr.msra.gmra.mrb[20].mxu0 %vm2621_vm7, %v3362_v10 }
 0xc2c   : > { %6382 = vmatpush3.xpose.msk.msra.mxu0 %vm1097_vm1, %v7374_v38  ;;  %6383 = vmatprep.mubr.msk.f32.mxu0 %vm6943_vm6, %v8261_v20 }
 0xc2d   : > { %6386 = vmatprep.subr.mxu0 %v8261_v20 }
 0xc2f   : > { %6384 = vmatmul.mubr.msk.f32.vlgmr.msra.gmra.mrb[22].mxu0 %vm1097_vm1, %v7679_v5 }
 0xc30   : > { %6387 = vmatpush3.xpose.msk.msra.mxu0 %vm2621_vm7, %v2460_v25  ;;  %6388 = vmatprep.mubr.msk.f32.mxu0 %vm6943_vm6, %v8261_v20 }
 0xc31   : > { %6391 = vmatprep.subr.mxu0 %v8261_v20 }
 0xcfe   : > { %v3432_v23 = vpop.f32.mrb[20].mxu0 }
 0xcff   : > { %v6369_v18 = vpop.f32.mrb[21].mxu0  ;;  %6379 = vmatmul.mubr.msk.f32.vlgmr.msra.gmra.mrb[16].mxu1 %vm2621_vm7, %v3432_v23 }
 0xd00   : > { %6408 = vmatpush3.xpose.msk.msra.mxu1 %vm1097_vm1, %v7476_v8  ;;  %6409 = vmatprep.mubr.msk.f32.mxu1 %vm6943_vm6, %v8261_v20 }
 0xd01   : > { %6412 = vmatprep.subr.mxu1 %v8261_v20 }
 0xd02   : > { %v3597_v22 = vpop.f32.mrb[22].mxu0 }
 0xd03   : > { %v3598_v26 = vadd.f32 %v7377_v39, %v3597_v22  ;;  %v6385_v33 = vpop.f32.mrb[23].mxu0 }
 0xd05   : > { %6389 = vmatmul.mubr.msk.f32.vlgmr.msra.gmra.mrb[24].mxu0 %vm2621_vm7, %v3598_v26 }
 0xd06   : > { %6392 = vmatpush3.msra.mxu0 %v2539_v32  ;;  %6393 = vmatprep.mubr.msk.f32.mxu0 %vm6943_vm6, %v8261_v20  ;;  %v8264_v32 = vld [vmem:[#allocation34_spill] sm:$0xff] }
 0xd07   : > { %6591 = vmatprep.subr.bf16.mxu0 %v6944_v21 }
 0xdd2   : > { %v3517_v40 = vpop.f32.mrb[16].mxu1 }
 0xdd3   : > { %v3521_v7 = vadd.f32 %v3517_v40, %v3192_v41  ;;  %v6380_v13 = vpop.f32.mrb[17].mxu1  ;;  %v6592_v40 = vpack.c.bf16 %v8264_v32, %v7464_v4 }
 0xdd8   : > { %v3673_v17 = vpop.f32.mrb[24].mxu0 }
 0xdd9   : > { %v3677_v15 = vmul.f32 0.35355338, %v3673_v17  ;;  %v6390_v19 = vpop.f32.mrb[25].mxu0  ;;  %v8265_v17 = vld [vmem:[#allocation35_spill] sm:$0xff] }
 0xddb   : > { %v3678_v10 = vadd.f32 %v7350_v30, %v3677_v15  ;;  %v8266_v15 = vld [vmem:[#allocation36_spill] sm:$0xff] }
 0xddc   : > { %v6596_v19 = vpack.c.bf16 %v8266_v15, %v8265_v17 }
 0xddd   : > { %v3679_v25 = vsel %vm2621_vm7, %v3678_v10, -inf }
 0xdde   : > { %3680 = vmax.xlane.f32.xlu0 %v3679_v25 }
 0xe6b   : > { %v3681_v6 = vpop.xlane.xlu0 %3680 }
 0xe6c   : > { %v3682_v23 = vsub.f32 %v3678_v10, %v3681_v6 }
 0xe6e   : > { %v3683_v18 = vmul.f32 1.442695, %v3682_v23 }
 0xe70   : > { %6837 = vpow2.f32 %v3683_v18 }
 0xe7a   : > { %v6838_v22 = vpop.eup %6837 }
 0xe7b   : > { %v3685_v26 = vsel %vm2621_vm7, %v6838_v22, 0.0 }
 0xe7c   : > { %3686 = vadd.xlane.f32.xlu1 %v3685_v26 }
 0xf09   : > { %v3687_v33 = vpop.xlane.xlu1 %3686 }
 0xf0a   : > { %6839 = vrcp.f32 %v3687_v33 }
 0xf14   : > { %v6840_v41 = vpop.eup %6839 }
 0xf15   : > { %v3689_v13 = vmul.f32 %v6840_v41, %v6838_v22  ;;  %v8267_v22 = vld [vmem:[#allocation60_spill] sm:$0xff] }
 0xf17   : > { %6394 = vmatmul.mubr.msk.f32.vlgmr.msra.gmra.mrb[26].mxu0 %vm2621_vm7, %v3689_v13 }
 0xf18   : > { %6594 = vmatpush3.bf16.xpose.msk.msra.mxu0 %vm7791_vm8, %v6592_v40  ;;  %6404 = vmatprep.mubr.msk.f32.mxu0 %vm6943_vm6, %v8261_v20 }
 0xf19   : > { %6595 = vmatprep.subr.bf16.mxu0 %v6944_v21 }
 0xf20   : > { %6598 = vmatpush3.bf16.xpose.msk.msra.mxu0 %vm7791_vm8, %v6596_v19 }
 0xf21   : > { %6427 = vmatprep.subr.mxu0 %v8261_v20 }
 0xfea   : > { %v3759_v10 = vpop.f32.mrb[26].mxu0 }
 0xfeb   : > { %v6395_v25 = vpop.f32.mrb[27].mxu0  ;;  %6405 = vmatmul.mubr.msk.f32.vlgmr.msra.gmra.mrb[28].mxu0 %vm2621_vm7, %v3759_v10 }
 0xfec   : > { %6428 = vmatpush3.xpose.msk.msra.mxu0 %vm2621_vm7, %v7645_v9  ;;  %6429 = vmatprep.mubr.msk.f32.mxu0 %vm6943_vm6, %v8261_v20 }
 0xfed   : > { %6599 = vmatprep.subr.bf16.mxu0 %v6944_v21 }
0x10be   : > { %v3844_v6 = vpop.f32.mrb[28].mxu0 }
0x10bf   : > { %v3848_v23 = vadd.f32 %v3844_v6, %v3521_v7  ;;  %v6406_v18 = vpop.f32.mrb[29].mxu0 }
0x10c0   : > { %v8268_v18 = vld [vmem:[#allocation76_spill] sm:$0xff] }
0x10c1   : > { %v3855_v26 = vadd.f32 %v8267_v22, %v3848_v23  ;;  %v8269_v22 = vld [vmem:[#allocation79_spill] sm:$0xff] }
0x10c3   : > { %v3856_v33 = vadd.f32 %v3855_v26, %v7679_v5  ;;  %v8270_v26 = vld [vmem:[#allocation90_spill] sm:$0xff] }
0x10c5   : > { %v3857_v41 = vsel %vm1097_vm1, %v3856_v33, 0.0 }
0x10c6   : > { %3858 = vadd.xlane.f32.xlu0 %v3857_v41  ;;  %v8271_v41 = vld [vmem:[#allocation37_spill] sm:$0xff] }
0x1153   : > { %v3859_v32 = vpop.xlane.xlu0 %3858 }
0x1154   : > { %v3861_v40 = vmul.f32 0.03125, %v3859_v32 }
0x1156   : > { %v3862_v13 = vsub.f32 %v3856_v33, %v3861_v40 }
0x1158   : > { %v3863_v17 = vmul.f32 %v3862_v13, %v3862_v13 }
0x115a   : > { %v3864_v15 = vsel %vm1097_vm1, %v3863_v17, 0.0 }
0x115b   : > { %3865 = vadd.xlane.f32.xlu1 %v3864_v15 }
0x11e8   : > { %v3866_v19 = vpop.xlane.xlu1 %3865 }
0x11e9   : > { %v3867_v10 = vmul.f32 0.03125, %v3866_v19 }
0x11eb   : > { %v3868_v25 = vadd.f32 1e-05, %v3867_v10  ;;  %v8273_v10 = vld [vmem:[#allocation28_spill] sm:$0xff] }
0x11ed   : > { %6841 = vrsqrt.f32 %v3868_v25 }
0x11f7   : > { %v6842_v7 = vpop.eup %6841 }
0x11f8   : > { %v3870_v6 = vmul.f32 %v6842_v7, %v3862_v13  ;;  %v8272_v13 = vld [vmem:[#allocation91_spill] sm:$0xff] }
0x11fa   : > { %v3877_v23 = vmul.f32 %v8268_v18, %v3870_v6 }
0x11fc   : > { %v7908_v5 = vadd.f32 %v8269_v22, %v3877_v23 }
0x11fe   : > { %6410 = vmatmul.mubr.msk.f32.vlgmr.msra.gmra.mrb[18].mxu1 %vm1097_vm1, %v7908_v5 }
0x11ff   : > { %6413 = vmatpush3.xpose.msk.msra.mxu1 %vm2621_vm7, %v8270_v26  ;;  %6414 = vmatprep.mubr.msk.f32.mxu1 %vm6943_vm6, %v8261_v20 }
0x1200   : > { %6417 = vmatprep.subr.mxu1 %v8261_v20 }
0x12d1   : > { %v3963_v33 = vpop.f32.mrb[18].mxu1 }
0x12d2   : > { %v3964_v32 = vadd.f32 %v8271_v41, %v3963_v33  ;;  %v6411_v40 = vpop.f32.mrb[19].mxu1 }
0x12d3   : > { %v8274_v40 = vld [vmem:[#allocation38_spill] sm:$0xff] }
0x12d4   : > { %6415 = vmatmul.mubr.msk.f32.vlgmr.msra.gmra.mrb[20].mxu1 %vm2621_vm7, %v3964_v32 }
0x12d5   : > { %6418 = vmatpush3.msra.mxu1 %v8272_v13  ;;  %6419 = vmatprep.mubr.msk.f32.mxu1 %vm6943_vm6, %v8261_v20 }
0x12d6   : > { %6422 = vmatprep.subr.mxu1 %v8261_v20 }
0x13a7   : > { %v4039_v17 = vpop.f32.mrb[20].mxu1 }
0x13a8   : > { %v4043_v15 = vmul.f32 0.35355338, %v4039_v17  ;;  %v6416_v19 = vpop.f32.mrb[21].mxu1 }
0x13a9   : > { %v8275_v19 = vld [vmem:[#allocation39_spill] sm:$0xff] }
0x13aa   : > { %v4044_v25 = vadd.f32 %v4043_v15, %v8273_v10 }
0x13ac   : > { %v4045_v7 = vsel %vm2621_vm7, %v4044_v25, -inf }
0x13ad   : > { %4046 = vmax.xlane.f32.xlu0 %v4045_v7 }
0x143a   : > { %v4047_v6 = vpop.xlane.xlu0 %4046 }
0x143b   : > { %v4048_v18 = vsub.f32 %v4044_v25, %v4047_v6 }
0x143d   : > { %v4049_v23 = vmul.f32 1.442695, %v4048_v18 }
0x143f   : > { %6843 = vpow2.f32 %v4049_v23 }
0x1449   : > { %v6844_v22 = vpop.eup %6843 }
0x144a   : > { %v4051_v26 = vsel %vm2621_vm7, %v6844_v22, 0.0 }
0x144b   : > { %4052 = vadd.xlane.f32.xlu1 %v4051_v26 }
0x14d8   : > { %v4053_v33 = vpop.xlane.xlu1 %4052 }
0x14d9   : > { %6845 = vrcp.f32 %v4053_v33 }
0x14e3   : > { %v6846_v41 = vpop.eup %6845 }
0x14e4   : > { %v4055_v32 = vmul.f32 %v6846_v41, %v6844_v22 }
0x14e6   : > { %6420 = vmatmul.mubr.msk.f32.vlgmr.msra.gmra.mrb[22].mxu1 %vm2621_vm7, %v4055_v32 }
0x14e7   : > { %6423 = vmatpush3.xpose.msk.msra.mxu1 %vm1097_vm1, %v8274_v40  ;;  %6424 = vmatprep.mubr.msk.f32.mxu1 %vm6943_vm6, %v8261_v20 }
0x14e8   : > { %6432 = vmatprep.subr.mxu1 %v8261_v20 }
0x14ea   : > { %6425 = vmatmul.mubr.msk.f32.vlgmr.msra.gmra.mrb[24].mxu1 %vm1097_vm1, %v7908_v5 }
0x14eb   : > { %6433 = vmatpush3.msra.mxu1 %v7647_v24  ;;  %6434 = vmatprep.mubr.msk.f32.mxu1 %vm6943_vm6, %v8261_v20 }
0x14ec   : > { %6607 = vmatprep.subr.bf16.mxu1 %v6944_v21 }
0x15b9   : > { %v4125_v13 = vpop.f32.mrb[22].mxu1 }
0x15ba   : > { %v6421_v17 = vpop.f32.mrb[23].mxu1 }
0x15bd   : > { %v4204_v15 = vpop.f32.mrb[24].mxu1 }
0x15be   : > { %v4205_v25 = vadd.f32 %v8275_v19, %v4204_v15  ;;  %v6426_v7 = vpop.f32.mrb[25].mxu1  ;;  %v8276_v15 = vld [vmem:[#allocation48_spill] sm:$0xff]  ;;  %v8277_v19 = vld [vmem:[#allocation49_spill] sm:$0xff] }
0x15bf   : > { %v8278_v7 = vld [vmem:[#allocation50_spill] sm:$0xff] }
0x15c0   : > { %6430 = vmatmul.mubr.msk.f32.vlgmr.msra.gmra.mrb[30].mxu0 %vm2621_vm7, %v4205_v25  ;;  %v6600_v25 = vpack.c.bf16 %v8277_v19, %v8276_v15  ;;  %v8283_v15 = vld [vmem:[#allocation47_spill] sm:$0xff] }
0x15c1   : > { %6445 = vmatprep.mubr.msk.f32.mxu0 %vm6943_vm6, %v8261_v20 }
0x15c2   : > { %6602 = vmatpush3.bf16.xpose.msk.msra.mxu0 %vm7791_vm8, %v6600_v25 }
0x15c3   : > { %6603 = vmatprep.subr.bf16.mxu0 %v6944_v21 }
0x1693   : > { %v4280_v6 = vpop.f32.mrb[30].mxu0 }
0x1694   : > { %v4284_v18 = vmul.f32 0.35355338, %v4280_v6  ;;  %v6431_v23 = vpop.f32.mrb[31].mxu0  ;;  %v8279_v6 = vld [vmem:[#allocation51_spill] sm:$0xff] }
0x1696   : > { %v4285_v22 = vadd.f32 %v4284_v18, %v8273_v10  ;;  %v6604_v18 = vpack.c.bf16 %v8279_v6, %v8278_v7  ;;  %v8284_v7 = vld [vmem:[#allocation40_spill] sm:$0xff] }
0x1698   : > { %v4286_v26 = vsel %vm2621_vm7, %v4285_v22, -inf  ;;  %6606 = vmatpush3.bf16.xpose.msk.msra.mxu0 %vm7791_vm8, %v6604_v18 }
0x1699   : > { %4287 = vmax.xlane.f32.xlu0 %v4286_v26  ;;  %6459 = vmatprep.subr.mxu0 %v8261_v20  ;;  %v8280_v26 = vld [vmem:[#allocation44_spill] sm:$0xff] }
0x1726   : > { %v4288_v33 = vpop.xlane.xlu0 %4287 }
0x1727   : > { %v4289_v41 = vsub.f32 %v4285_v22, %v4288_v33  ;;  %v8281_v33 = vld [vmem:[#allocation45_spill] sm:$0xff] }
0x1729   : > { %v4290_v32 = vmul.f32 1.442695, %v4289_v41  ;;  %v6608_v41 = vpack.c.bf16 %v8281_v33, %v8280_v26  ;;  %v8285_v33 = vld [vmem:[#allocation41_spill] sm:$0xff] }
0x172b   : > { %6847 = vpow2.f32 %v4290_v32 }
0x1735   : > { %v6848_v40 = vpop.eup %6847 }
0x1736   : > { %v4292_v17 = vsel %vm2621_vm7, %v6848_v40, 0.0 }
0x1737   : > { %4293 = vadd.xlane.f32.xlu1 %v4292_v17  ;;  %v8282_v17 = vld [vmem:[#allocation46_spill] sm:$0xff] }
0x1738   : > { %v6612_v19 = vpack.c.bf16 %v8283_v15, %v8282_v17 }
0x17c4   : > { %v4294_v23 = vpop.xlane.xlu1 %4293 }
0x17c5   : > { %6849 = vrcp.f32 %v4294_v23 }
0x17cf   : > { %v6850_v22 = vpop.eup %6849 }
0x17d0   : > { %v4296_v32 = vmul.f32 %v6850_v22, %v6848_v40 }
0x17d2   : > { %6435 = vmatmul.mubr.msk.f32.vlgmr.msra.gmra.mrb[26].mxu1 %vm2621_vm7, %v4296_v32 }
0x17d3   : > { %6610 = vmatpush3.bf16.xpose.msk.msra.mxu1 %vm7791_vm8, %v6608_v41  ;;  %6456 = vmatprep.mubr.msk.f32.mxu1 %vm6943_vm6, %v8261_v20 }
0x17d4   : > { %6611 = vmatprep.subr.bf16.mxu1 %v6944_v21 }
0x17db   : > { %6614 = vmatpush3.bf16.xpose.msk.msra.mxu1 %vm7791_vm8, %v6612_v19 }
0x17dc   : > { %6464 = vmatprep.subr.mxu1 %v8261_v20 }
0x17e2   : > { %6457 = vmatmul.mubr.msk.f32.vlgmr.msra.gmra.mrb[28].mxu1 %vm2621_vm7, %v4125_v13 }
0x17e3   : > { %6465 = vmatpush3.xpose.msk.msra.mxu1 %vm2621_vm7, %v7651_v11  ;;  %6466 = vmatprep.mubr.msk.f32.mxu1 %vm6943_vm6, %v8261_v20 }
0x17e4   : > { %6615 = vmatprep.subr.bf16.mxu1 %v6944_v21 }
0x18a5   : > { %v4366_v40 = vpop.f32.mrb[26].mxu1 }
0x18a6   : > { %v6436_v25 = vpop.f32.mrb[27].mxu1  ;;  %6446 = vmatmul.mubr.msk.f32.vlgmr.msra.gmra.mrb[32].mxu0 %vm2621_vm7, %v4366_v40 }
0x18a7   : > { %6460 = vmatpush3.xpose.msk.msra.mxu0 %vm1097_vm1, %v8284_v7  ;;  %6461 = vmatprep.mubr.msk.f32.mxu0 %vm6943_vm6, %v8261_v20 }
0x18a8   : > { %6469 = vmatprep.subr.mxu0 %v8261_v20 }
0x18aa   : > { %6462 = vmatmul.mubr.msk.f32.vlgmr.msra.gmra.mrb[34].mxu0 %vm1097_vm1, %v7908_v5 }
0x18ab   : > { %6470 = vmatpush3.msra.mxu0 %v7653_v14  ;;  %6471 = vmatprep.mubr.msk.f32.mxu0 %vm6943_vm6, %v8261_v20 }
0x18ac   : > { %6485 = vmatprep.subr.mxu0 %v8261_v20 }
0x18b5   : > { %v4536_v13 = vpop.f32.mrb[28].mxu1 }
0x18b6   : > { %v6458_v6 = vpop.f32.mrb[29].mxu1 }
0x1979   : > { %v4451_v18 = vpop.f32.mrb[32].mxu0 }
0x197a   : > { %v4537_v23 = vadd.f32 %v4536_v13, %v4451_v18  ;;  %v6447_v22 = vpop.f32.mrb[33].mxu0 }
0x197d   : > { %v4615_v26 = vpop.f32.mrb[34].mxu0 }
0x197e   : > { %v4616_v41 = vadd.f32 %v8285_v33, %v4615_v26  ;;  %v6463_v32 = vpop.f32.mrb[35].mxu0  ;;  %v8286_v26 = vld [vmem:[#allocation52_spill] sm:$0xff]  ;;  %v8287_v33 = vld [vmem:[#allocation53_spill] sm:$0xff] }
0x197f   : > { %v8288_v32 = vld [vmem:[#allocation54_spill] sm:$0xff] }
0x1980   : > { %6467 = vmatmul.mubr.msk.f32.vlgmr.msra.gmra.mrb[30].mxu1 %vm2621_vm7, %v4616_v41  ;;  %v6616_v41 = vpack.c.bf16 %v8287_v33, %v8286_v26 }
0x1981   : > { %6482 = vmatprep.mubr.msk.f32.mxu1 %vm6943_vm6, %v8261_v20 }
0x1982   : > { %6618 = vmatpush3.bf16.xpose.msk.msra.mxu1 %vm7791_vm8, %v6616_v41 }
0x1983   : > { %6619 = vmatprep.subr.bf16.mxu1 %v6944_v21 }
0x1a53   : > { %v4691_v17 = vpop.f32.mrb[30].mxu1 }
0x1a54   : > { %v4695_v15 = vmul.f32 0.35355338, %v4691_v17  ;;  %v6468_v19 = vpop.f32.mrb[31].mxu1  ;;  %v8289_v17 = vld [vmem:[#allocation55_spill] sm:$0xff] }
0x1a56   : > { %v4696_v40 = vadd.f32 %v4695_v15, %v8273_v10  ;;  %v6620_v15 = vpack.c.bf16 %v8289_v17, %v8288_v32 }
0x1a58   : > { %v4697_v25 = vsel %vm2621_vm7, %v4696_v40, -inf  ;;  %6622 = vmatpush3.bf16.xpose.msk.msra.mxu1 %vm7791_vm8, %v6620_v15 }
0x1a59   : > { %4698 = vmax.xlane.f32.xlu0 %v4697_v25  ;;  %6631 = vmatprep.subr.bf16.mxu1 %v6944_v21 }
0x1ae6   : > { %v4699_v7 = vpop.xlane.xlu0 %4698 }
0x1ae7   : > { %v4700_v13 = vsub.f32 %v4696_v40, %v4699_v7  ;;  %v8290_v7 = vld [vmem:[#allocation42_spill] sm:$0xff] }
0x1ae9   : > { %v4701_v6 = vmul.f32 1.442695, %v4700_v13 }
0x1aeb   : > { %6851 = vpow2.f32 %v4701_v6 }
0x1af5   : > { %v6852_v18 = vpop.eup %6851 }
0x1af6   : > { %v4703_v22 = vsel %vm2621_vm7, %v6852_v18, 0.0 }
0x1af7   : > { %4704 = vadd.xlane.f32.xlu1 %v4703_v22  ;;  %v8291_v22 = vld [vmem:[#allocation43_spill] sm:$0xff] }
0x1b84   : > { %v4705_v19 = vpop.xlane.xlu1 %4704 }
0x1b85   : > { %6853 = vrcp.f32 %v4705_v19 }
0x1b8f   : > { %v6854_v40 = vpop.eup %6853 }
0x1b90   : > { %v4707_v25 = vmul.f32 %v6854_v40, %v6852_v18 }
0x1b92   : > { %6472 = vmatmul.mubr.msk.f32.vlgmr.msra.gmra.mrb[36].mxu0 %vm2621_vm7, %v4707_v25 }
0x1b93   : > { %6486 = vmatpush3.xpose.msk.msra.mxu0 %vm1097_vm1, %v8290_v7  ;;  %6487 = vmatprep.mubr.msk.f32.mxu0 %vm6943_vm6, %v8261_v20 }
0x1b94   : > { %6490 = vmatprep.subr.mxu0 %v8261_v20 }
0x1b96   : > { %6488 = vmatmul.mubr.msk.f32.vlgmr.msra.gmra.mrb[38].mxu0 %vm1097_vm1, %v7908_v5 }
0x1b97   : > { %6491 = vmatpush3.xpose.msk.msra.mxu0 %vm2621_vm7, %v7657_v31  ;;  %6492 = vmatprep.mubr.msk.f32.mxu0 %vm6943_vm6, %v8261_v20 }
0x1b98   : > { %6495 = vmatprep.subr.mxu0 %v8261_v20 }
0x1c65   : > { %v4777_v13 = vpop.f32.mrb[36].mxu0 }
0x1c66   : > { %v6473_v6 = vpop.f32.mrb[37].mxu0  ;;  %6483 = vmatmul.mubr.msk.f32.vlgmr.msra.gmra.mrb[32].mxu1 %vm2621_vm7, %v4777_v13 }
0x1c67   : > { %6527 = vmatprep.mubr.msk.f32.mxu1 %vm6943_vm6, %v8261_v20 }
0x1c69   : > { %v4942_v18 = vpop.f32.mrb[38].mxu0 }
0x1c6a   : > { %v4943_v26 = vadd.f32 %v8291_v22, %v4942_v18  ;;  %v6489_v33 = vpop.f32.mrb[39].mxu0 }
0x1c6c   : > { %6493 = vmatmul.mubr.msk.f32.vlgmr.msra.gmra.mrb[40].mxu0 %vm2621_vm7, %v4943_v26 }
0x1c6d   : > { %6496 = vmatpush3.msra.mxu0 %v7659_v12  ;;  %6497 = vmatprep.mubr.msk.f32.mxu0 %vm6943_vm6, %v8261_v20 }
0x1c6e   : > { %6623 = vmatprep.subr.bf16.mxu0 %v6944_v21 }
0x1d39   : > { %v4862_v41 = vpop.f32.mrb[32].mxu1 }
0x1d3a   : > { %v4866_v32 = vadd.f32 %v4862_v41, %v4537_v23  ;;  %v6484_v17 = vpop.f32.mrb[33].mxu1  ;;  %v8292_v41 = vld [vmem:[#allocation56_spill] sm:$0xff] }
0x1d3b   : > { %v8293_v17 = vld [vmem:[#allocation57_spill] sm:$0xff] }
0x1d3f   : > { %v5018_v15 = vpop.f32.mrb[40].mxu0 }
0x1d40   : > { %v5022_v19 = vmul.f32 0.35355338, %v5018_v15  ;;  %v6494_v40 = vpop.f32.mrb[41].mxu0  ;;  %v6624_v15 = vpack.c.bf16 %v8293_v17, %v8292_v41 }
0x1d42   : > { %v5023_v25 = vadd.f32 %v5022_v19, %v8273_v10  ;;  %v8294_v19 = vld [vmem:[#allocation58_spill] sm:$0xff] }
0x1d44   : > { %v5024_v7 = vsel %vm2621_vm7, %v5023_v25, -inf }
0x1d45   : > { %5025 = vmax.xlane.f32.xlu0 %v5024_v7 }
0x1dd2   : > { %v5026_v13 = vpop.xlane.xlu0 %5025 }
0x1dd3   : > { %v5027_v6 = vsub.f32 %v5023_v25, %v5026_v13  ;;  %v8295_v25 = vld [vmem:[#allocation59_spill] sm:$0xff] }
0x1dd4   : > { %v6628_v7 = vpack.c.bf16 %v8295_v25, %v8294_v19  ;;  %v8302_v25 = vld [vmem:[#allocation65_spill] sm:$0xff]  ;;  %v8321_v19 = vld [vmem:[#allocation87_spill] sm:$0xff] }
0x1dd5   : > { %v5028_v18 = vmul.f32 1.442695, %v5027_v6 }
0x1dd7   : > { %6855 = vpow2.f32 %v5028_v18 }
0x1de1   : > { %v6856_v22 = vpop.eup %6855 }
0x1de2   : > { %v5030_v26 = vsel %vm2621_vm7, %v6856_v22, 0.0 }
0x1de3   : > { %5031 = vadd.xlane.f32.xlu1 %v5030_v26 }
0x1e70   : > { %v5032_v33 = vpop.xlane.xlu1 %5031 }
0x1e71   : > { %6857 = vrcp.f32 %v5032_v33  ;;  %v8296_v33 = vld [vmem:[#allocation61_spill] sm:$0xff] }
0x1e7b   : > { %v6858_v23 = vpop.eup %6857 }
0x1e7c   : > { %v5034_v40 = vmul.f32 %v6858_v23, %v6856_v22 }
0x1e7e   : > { %6498 = vmatmul.mubr.msk.f32.vlgmr.msra.gmra.mrb[42].mxu0 %vm2621_vm7, %v5034_v40 }
0x1e7f   : > { %6626 = vmatpush3.bf16.xpose.msk.msra.mxu0 %vm7791_vm8, %v6624_v15  ;;  %6508 = vmatprep.mubr.msk.f32.mxu0 %vm6943_vm6, %v8261_v20  ;;  %v8298_v15 = vld [vmem:[#allocation63_spill] sm:$0xff] }
0x1e80   : > { %6627 = vmatprep.subr.bf16.mxu0 %v6944_v21  ;;  %v6632_v40 = vpack.c.bf16 %v8298_v15, %v8297_v34  ;;  %v8306_v34 = vld [vmem:[#allocation69_spill] sm:$0xff] }
0x1e82   : > { %6634 = vmatpush3.bf16.xpose.msk.msra.mxu1 %vm8051_vm9, %v6632_v40  ;;  %v8308_v40 = vld [vmem:[#allocation72_spill] sm:$0xff] }
0x1e83   : > { %6635 = vmatprep.subr.bf16.mxu1 %v6944_v21 }
0x1e87   : > { %6630 = vmatpush3.bf16.xpose.msk.msra.mxu0 %vm7791_vm8, %v6628_v7 }
0x1e88   : > { %6647 = vmatprep.subr.bf16.mxu0 %v6944_v21 }
0x1f51   : > { %v5104_v13 = vpop.f32.mrb[42].mxu0 }
0x1f52   : > { %v6499_v6 = vpop.f32.mrb[43].mxu0  ;;  %6509 = vmatmul.mubr.msk.f32.vlgmr.msra.gmra.mrb[44].mxu0 %vm2621_vm7, %v5104_v13 }
0x1f53   : > { %6538 = vmatprep.mubr.msk.f32.mxu0 %vm6943_vm6, %v8261_v20 }
0x2025   : > { %v5189_v18 = vpop.f32.mrb[44].mxu0 }
0x2026   : > { %v5193_v22 = vadd.f32 %v5189_v18, %v4866_v32  ;;  %v6510_v26 = vpop.f32.mrb[45].mxu0  ;;  %v8301_v32 = vld [vmem:[#allocation64_spill] sm:$0xff] }
0x2027   : > { %v8303_v26 = vld [vmem:[#allocation66_spill] sm:$0xff] }
0x2028   : > { %v5200_v23 = vadd.f32 %v8296_v33, %v5193_v22  ;;  %v8304_v33 = vld [vmem:[#allocation67_spill] sm:$0xff] }
0x202a   : > { %v5201_v41 = vadd.f32 %v5200_v23, %v7908_v5  ;;  %v6636_v5 = vpack.c.bf16 %v8302_v25, %v8301_v32  ;;  %v6640_v23 = vpack.c.bf16 %v8304_v33, %v8303_v26  ;;  %v8309_v25 = vld [vmem:[#allocation73_spill] sm:$0xff] }
0x202c   : > { %v5202_v17 = vsel %vm1097_vm1, %v5201_v41, 0.0  ;;  %6638 = vmatpush3.bf16.xpose.msk.msra.mxu1 %vm8051_vm9, %v6636_v5  ;;  %v8310_v5 = vld [vmem:[#allocation74_spill] sm:$0xff] }
0x202d   : > { %5203 = vadd.xlane.f32.xlu0 %v5202_v17  ;;  %6639 = vmatprep.subr.bf16.mxu1 %v6944_v21  ;;  %v8305_v17 = vld [vmem:[#allocation68_spill] sm:$0xff] }
0x202e   : > { %v6644_v15 = vpack.c.bf16 %v8306_v34, %v8305_v17  ;;  %v8312_v34 = vld [vmem:[#allocation80_spill] sm:$0xff] }
0x2034   : > { %6642 = vmatpush3.bf16.xpose.msk.msra.mxu1 %vm8051_vm9, %v6640_v23  ;;  %v8311_v23 = vld [vmem:[#allocation77_spill] sm:$0xff] }
0x2035   : > { %6643 = vmatprep.subr.bf16.mxu1 %v6944_v21 }
0x203c   : > { %6646 = vmatpush3.bf16.xpose.msk.msra.mxu1 %vm8051_vm9, %v6644_v15 }
0x203d   : > { %6659 = vmatprep.subr.bf16.mxu1 %v6944_v21 }
0x20ba   : > { %v5204_v7 = vpop.xlane.xlu0 %5203 }
0x20bb   : > { %v5205_v13 = vmul.f32 0.03125, %v5204_v7  ;;  %v6652_v7 = vpack.c.bf16 %v8310_v5, %v8309_v25 }
0x20bd   : > { %v5206_v6 = vsub.f32 %v5201_v41, %v5205_v13  ;;  %v8307_v41 = vld [vmem:[#allocation71_spill] sm:$0xff] }
0x20be   : > { %v6648_v32 = vpack.c.bf16 %v8308_v40, %v8307_v41  ;;  %v8313_v40 = vld [vmem:[#allocation70_spill] sm:$0xff] }
0x20bf   : > { %v5207_v18 = vmul.f32 %v5206_v6, %v5206_v6 }
0x20c0   : > { %6650 = vmatpush3.bf16.xpose.msk.msra.mxu0 %vm6649_vm10, %v6648_v32 }
0x20c1   : > { %v5208_v22 = vsel %vm1097_vm1, %v5207_v18, 0.0  ;;  %6651 = vmatprep.subr.bf16.mxu0 %v6944_v21 }
0x20c2   : > { %5209 = vadd.xlane.f32.xlu1 %v5208_v22 }
0x20c8   : > { %6654 = vmatpush3.bf16.xpose.msk.msra.mxu0 %vm6649_vm10, %v6652_v7 }
0x20c9   : > { %6655 = vmatprep.subr.bf16.mxu0 %v6944_v21 }
0x214f   : > { %v5210_v13 = vpop.xlane.xlu1 %5209 }
0x2150   : > { %v5211_v18 = vmul.f32 0.03125, %v5210_v13 }
0x2152   : > { %v5212_v22 = vadd.f32 1e-05, %v5211_v18  ;;  %v8314_v18 = vld [vmem:[#allocation75_spill] sm:$0xff] }
0x2154   : > { %6859 = vrsqrt.f32 %v5212_v22 }
0x215e   : > { %v6860_v26 = vpop.eup %6859 }
0x215f   : > { %v5214_v33 = vmul.f32 %v6860_v26, %v5206_v6 }
0x2161   : > { %v5221_v17 = vmul.f32 %v8311_v23, %v5214_v33 }
0x2163   : > { %v5228_v15 = vadd.f32 %v8312_v34, %v5221_v17 }
0x2165   : > { %6528 = vmatmul.mubr.msk.f32.vlgmr.msra.gmra.mrb[34].mxu1 %vm1097_vm1, %v5228_v15 }
0x2166   : > { %6556 = vmatprep.mubr.msk.f32.mxu1 %vm6943_vm6, %v8261_v20 }
0x2238   : > { %v5328_v41 = vpop.f32.mrb[34].mxu1 }
0x2239   : > { %v5329_v32 = vadd.f32 %v8313_v40, %v5328_v41  ;;  %v6529_v25 = vpop.f32.mrb[35].mxu1  ;;  %v8315_v40 = vld [vmem:[#allocation82_spill] sm:$0xff] }
0x223b   : > { %v5332_v5 = vmax.f32 %v5329_v32, 0.0  ;;  %v8316_v32 = vld [vmem:[#allocation83_spill] sm:$0xff] }
0x223c   : > { %v6656_v25 = vpack.c.bf16 %v8316_v32, %v8315_v40 }
0x223d   : > { %6539 = vmatmul.mubr.msk.f32.vlgmr.msra.gmra.mrb[46].mxu0 %vm522_vm0, %v5332_v5 }
0x223e   : > { %6545 = vmatprep.mubr.msk.f32.mxu0 %vm6943_vm6, %v8261_v20  ;;  %6658 = vmatpush3.bf16.xpose.msk.msra.mxu0 %vm8051_vm9, %v6656_v25  ;;  %v8323_v25 = vld [vmem:[#allocation24_spill] sm:$0xff] }
0x2310   : > { %v5414_v6 = vpop.f32.mrb[46].mxu0 }
0x2311   : > { %v5418_v7 = vadd.f32 %v5414_v6, %v5228_v15  ;;  %v6540_v13 = vpop.f32.mrb[47].mxu0 }
0x2312   : > { %v8317_v13 = vld [vmem:[#allocation78_spill] sm:$0xff] }
0x2313   : > { %v5425_v22 = vadd.f32 %v8314_v18, %v5418_v7 }
0x2315   : > { %v5426_v26 = vsel %vm1097_vm1, %v5425_v22, 0.0 }
0x2316   : > { %5427 = vadd.xlane.f32.xlu0 %v5426_v26 }
0x23a3   : > { %v5428_v33 = vpop.xlane.xlu0 %5427 }
0x23a4   : > { %v5429_v23 = vmul.f32 0.03125, %v5428_v33  ;;  %v8319_v33 = vld [vmem:[#allocation85_spill] sm:$0xff] }
0x23a6   : > { %v5430_v17 = vsub.f32 %v5425_v22, %v5429_v23  ;;  %v8318_v22 = vld [vmem:[#allocation81_spill] sm:$0xff]  ;;  %v8320_v23 = vld [vmem:[#allocation86_spill] sm:$0xff] }
0x23a8   : > { %v5431_v34 = vmul.f32 %v5430_v17, %v5430_v17 }
0x23aa   : > { %v5432_v41 = vsel %vm1097_vm1, %v5431_v34, 0.0  ;;  %v6660_v34 = vpack.c.bf16 %v8320_v23, %v8319_v33 }
0x23ab   : > { %5433 = vadd.xlane.f32.xlu1 %v5432_v41  ;;  %v8322_v41 = vld [vmem:[#allocation88_spill] sm:$0xff] }
0x23ac   : > { %6662 = vmatpush3.bf16.xpose.msk.msra.mxu1 %vm6661_vm12, %v6660_v34  ;;  %v6664_v40 = vpack.c.bf16 %v8322_v41, %v8321_v19  ;;  %v8325_v19 = vld [vmem:[#allocation89_spill] sm:$0xff] }
0x23ad   : > { %6663 = vmatprep.subr.bf16.mxu1 %v6944_v21 }
0x23b4   : > { %6666 = vmatpush3.bf16.xpose.msk.msra.mxu1 %vm6661_vm12, %v6664_v40 }
0x2438   : > { %v5434_v20 = vpop.xlane.xlu1 %5433 }
0x2439   : > { %v5435_v15 = vmul.f32 0.03125, %v5434_v20  ;;  %v8324_v20 = vld [vmem:[#allocation84_spill] sm:$0xff] }
0x243b   : > { %v5436_v5 = vadd.f32 1e-05, %v5435_v15 }
0x243d   : > { %6861 = vrsqrt.f32 %v5436_v5 }
0x2447   : > { %v6862_v6 = vpop.eup %6861 }
0x2448   : > { %v5438_v7 = vmul.f32 %v6862_v6, %v5430_v17  ;;  %v5538_v17 = vstv %s6901_s1  ;;  %s5635_s1 = sadd.s32 1, %s6901_s1  }
0x2449   : > { %vm5539_vm13 = vcmp.eq.s32.totalorder %v8323_v25, %v5538_v17  ;;  %v5636_v34 = vstv %s5635_s1  ;;  %v8326_v17 = vld [vmem:[#allocation26_spill] sm:$0xff]  ;;  %p1900_p0 = scmp.ge.s32.totalorder %s5635_s1, 8  }
0x244a   : > { %v5445_v18 = vmul.f32 %v8317_v13, %v5438_v7  ;;  %vm5637_vm14 = vcmp.eq.s32.totalorder %v8323_v25, %v5636_v34  ;;  %s6945_s2 = smov (%p1900_p0), [#allocation2]  }
0x244b   :  { %s5651_s7 = sshll.u32 (%p1900_p0), %s6945_s2, 4  ;;  %s5652_s7 = int_to_ptr.vmem [resolvable:$true] %s5651_s7 }
0x244c   : > { %v5452_v26 = vadd.f32 %v8318_v22, %v5445_v18  ;;  %s6863_s10 = scalar_lea.vmem (%p1900_p0), %s5652_s7, 128  ;;  %p6868_p2 = scmp.lt.s32.totalorder (%p1900_p0), %s5652_s7, %s5652_s7 }
0x244d   :  { %p6864_p1 = scmp.ne.s32.totalorder (%p1900_p0), %s5652_s7, %s6863_s10  ;;  %p6869_p3 = scmp.lt.s32.totalorder (%p1900_p0), %s6863_s10, %s6863_s10 }
0x244e   : > { %6546 = vmatmul.mubr.msk.f32.vlgmr.msra.gmra.mrb[48].mxu0 %vm1097_vm1, %v5452_v26 }
0x244f   :  { %p6870_p4 = por (%p1900_p0), %p6869_p3, %p6868_p2 }
0x2451   :  { %p6871_p5 = pnand (%p1900_p0), %p6870_p4, %p6864_p1 }
0x2521   : > { %v5534_v32 = vpop.f32.mrb[48].mxu0 }
0x2522   : > { %v5535_v15 = vadd.f32 %v8324_v20, %v5534_v32  ;;  %v6547_v5 = vpop.f32.mrb[49].mxu0  ;;  %v8327_v20 = vld [vmem:[#allocation25_spill] sm:$0xff] }
0x2524   : > { %v5540_v6 = vsel %vm5539_vm13, %v5535_v15, 0.0  ;;  %5644 = vst.msk [vmem:[#allocation2] sm:$0xff] (%p1900_p0), %vm5541_vm11, %v5535_v15 }
0x2525   : > { %v5542_v7 = vsel %vm5541_vm11, %v5540_v6, 0.0 }
0x2526   : > { %v5543_v13 = vrot.slane %v5542_v7, 4 }
0x2528   : > { %v5544_v18 = vadd.f32 %v5543_v13, %v5542_v7 }
0x252a   : > { %v5545_v22 = vrot.slane %v5544_v18, 2 }
0x252c   : > { %v5546_v26 = vadd.f32 %v5545_v22, %v5544_v18 }
0x252e   : > { %v5547_v21 = vrot.slane %v5546_v26, 1 }
0x2530   : > { %v5548_v33 = vadd.f32 %v5547_v21, %v5546_v26 }
0x2532   : > { %6557 = vmatmul.mubr.msk.f32.vlgmr.msra.gmra.mrb[36].mxu1 %vm5541_vm11, %v5548_v33 }
0x2605   : > { %v5630_v23 = vpop.f32.mrb[36].mxu1 }
0x2606   : > { %v5631_v41 = vadd.f32 %v5630_v23, %v8325_v19  ;;  %v6558_v40 = vpop.f32.mrb[37].mxu1  ;;  %1902 = sbr.rel (!%p1900_p0) target bundleno = 852 (0x354), region = 256 }
0x2608   : > { %v5634_v32 = vadd.f32 %v5631_v41, %v8326_v17 }
0x260a   : > { %v5641_v5 = vrot.slane %v5634_v32, %v8327_v20 }
0x260c   : > { %v5642_v16 = vsel %vm5637_vm14, %v5641_v5, %v6897_v16  }
0x260d   :  { %6874 = shalt.err (!%p6871_p5)
}
0x260e   :  { %s6875_s11 = scalar_lea.hbm %s7134_s6, 128 }
0x260f   :  { %p6876_p6 = scmp.ne.s32.totalorder %s7134_s6, %s6875_s11  ;;  %p6879_p7 = scmp.lt.u32.totalorder %s6875_s11, %s7134_s6 }
0x2611   :  { %p6881_p8 = pnand %p6879_p7, %p6876_p6 }
0x2613   :  { %6884 = shalt.err (!%p6881_p8)
}
0x2614   :  { %5654 = dma.vmem_to_hbm [thread:$0]  %s5652_s7, 128, %s7134_s6, [#allocation3]  }
0x2615   :  { %6893 = dma.done.wait [#allocation3], 128  }
0x2616   :  { %6894 = vsyncadd [#allocation3], 4294967168 }
0x2617   :  { %5658 = vsyncpa [#allocation3], 1 }

</bundles_post_ra>
